<compile_context>
chip_gen: v7x
topology: tpu7x:2x2x1
jax: 0.10.0
libtpu: 0.0.40
codegen_flags: <defaults>
</compile_context>

<pallas_src>
import jax
import jax.numpy as jnp
from jax import lax
from jax.experimental import pallas as pl
from jax.experimental.pallas import tpu as pltpu


# ----------------------------- fused per-batch kernel -----------------------------

def _fused_kernel(x_ref, col_ref, row_ref, rmask_ref,
                  wd_ref, bd_ref, wcca_ref, bcca_ref,
                  wcat_ref, bcat_ref, w3_ref, o_ref):
    f32 = jnp.float32
    C = wd_ref.shape[0]                       # reduced channel count
    Cq = (wcca_ref.shape[0] - C) // 2         # query/key channels of CCA
    V = rmask_ref.shape[0]                    # real spatial rows (= V0 + 2)
    N2 = x_ref.shape[2]                       # halo-padded flat spatial size = (V+2)*(T+2)
    T2 = N2 // (V + 2)                        # halo-padded row stride

    x = x_ref[0]                                                                   # (Cin, N2)

    # ---------- down_channel: 1x1 conv with padding=1 (input pre-zero-padded on host) ----------
    xd = jnp.dot(wd_ref[...], x, preferred_element_type=f32) + bd_ref[...]         # (C, N2)

    # ---------- CrissCrossAttention: one masked softmax over the flat spatial grid ----------
    # fused projection rows = [gamma*value (C) | query (Cq) | key (Cq)]
    qkv = jnp.dot(wcca_ref[...], xd, preferred_element_type=f32) + bcca_ref[...]   # (C+2Cq, N2)
    val = qkv[:C]                              # (C, N2), gamma folded into the weights
    q = qkv[C:C + Cq]                          # (Cq, N2)
    kT = qkv[C + Cq:C + 2 * Cq].T              # (N2, Cq)  (tiny transpose)

    # energies e[m, n] = q(n) . k(m): attended position m in sublanes, query n in lanes.
    # Cq == 2 -> two VPU broadcast outer products instead of a K=2 MXU pass.
    e = kT[:, 0:1] * q[0:1, :]
    for c in range(1, Cq):
        e = e + kT[:, c:c + 1] * q[c:c + 1, :]                                     # (N2, N2)

    col = col_ref[...]                         # (N2, 3): [v, t, interior] of attended position
    row = row_ref[...]                         # (2, N2): [v, t] of query position
    valid = ((col[:, 0:1] == row[0:1, :]) | (col[:, 1:2] == row[1:2, :])) \
            & (col[:, 2:3] > 0.5)              # same row OR same column, key must be interior
    e = jnp.where(valid, e, -1e30)
    m = jnp.max(e, axis=0, keepdims=True)
    pexp = jnp.exp(e - m)
    attn_cc = pexp / jnp.sum(pexp, axis=0, keepdims=True)                          # (N2, N2)
    x1 = jnp.dot(val, attn_cc, preferred_element_type=f32)                         # (C, N2)

    # ---------- cAttn: per-spatial-row channel attention, batched via masked row stacking ----------
    qkvc = jnp.dot(wcat_ref[...], xd, preferred_element_type=f32) + bcat_ref[...]  # (3C, N2)
    qc, kc, vc = qkvc[:C], qkvc[C:2 * C], qkvc[2 * C:]
    rmask = rmask_ref[...]                                                         # (V, N2)
    # Qbig rows [v*C + c] = qc[c, :] restricted to the interior lanes of spatial row v.
    qbig = jnp.concatenate([qc * rmask[v:v + 1, :] for v in range(V)], axis=0)     # (V*C, N2)
    s = jnp.dot(qbig, kc.T, preferred_element_type=f32)                            # (V*C, C)
    sm = jnp.max(s, axis=-1, keepdims=True)
    sp = jnp.exp(s - sm)
    attn_c = sp / jnp.sum(sp, axis=-1, keepdims=True)                              # (V*C, C)
    av_big = jnp.dot(attn_c, vc, preferred_element_type=f32)                       # (V*C, N2)
    # select row-v block on row-v lanes (also zeroes the halo, as the 3x3 conv padding requires)
    av = av_big[0:C, :] * rmask[0:1, :]
    for v in range(1, V):
        av = av + av_big[v * C:(v + 1) * C, :] * rmask[v:v + 1, :]                 # (C, N2)

    # ---------- 3x3 conv (padding=1, bias-free, sigma folded): 9 accumulated matmuls ----------
    x2 = jnp.dot(w3_ref[4], av, preferred_element_type=f32)                        # centre tap
    tap = 0
    for di in range(3):
        for dj in range(3):
            off = (di - 1) * T2 + (dj - 1)
            if off != 0:
                sft = off % N2
                # shifted[:, n] = av[:, (n + off) % N2]; halo lanes are zero so interior is exact
                shifted = jnp.concatenate([av[:, sft:], av[:, :sft]], axis=1)
                x2 = x2 + jnp.dot(w3_ref[tap], shifted, preferred_element_type=f32)
            tap += 1

    # ---------- residual combine: single lane-dense store ----------
    o_ref[0] = xd + x1 + x2


# ----------------------------- host wrapper -----------------------------

def parallel_c_attention(x, p):
    """x: (B, Cin, V0, T0) NCHW.  Returns (B, Cin//4, V0+2, T0+2) NCHW."""
    B, Cin, V0, T0 = x.shape
    C = p['w_down'].shape[1]
    Cq = p['w_q'].shape[1]
    V, T = V0 + 2, T0 + 2            # spatial extent after the down-conv's padding=1
    V2, T2 = V + 2, T + 2            # + 1-wide halo ring for the 3x3 conv
    N2 = V2 * T2

    # two zero rings: one is the down-conv padding, one is the 3x3-conv halo (NCHW kept, no transpose)
    xp = jnp.pad(x, ((0, 0), (0, 0), (2, 2), (2, 2))).reshape(B, Cin, N2)

    # channel-major (transposed) weights; gamma / sigma folded; projections fused
    wd_t = jnp.transpose(p['w_down'])                                              # (C, Cin)
    bd = p['b_down'][:, None]                                                      # (C, 1)
    wcca_t = jnp.transpose(
        jnp.concatenate([p['gamma'] * p['w_v'], p['w_q'], p['w_k']], axis=1))      # (C+2Cq, C)
    bcca = jnp.concatenate([p['gamma'] * p['b_v'], p['b_q'], p['b_k']])[:, None]   # (C+2Cq, 1)
    wcat_t = jnp.transpose(
        jnp.concatenate([p['w_qc'], p['w_kc'], p['w_vc']], axis=1))                # (3C, C)
    bcat = jnp.concatenate([p['b_qc'], p['b_kc'], p['b_vc']])[:, None]             # (3C, 1)
    w3k = jnp.transpose(p['sigma'] * p['w3'], (0, 1, 3, 2)).reshape(9, C, C)       # (9, Cout, Cin)

    # compact flat-grid metadata (replaces the dense (N,N) mask input); f32 holds small ints exactly
    n = jnp.arange(N2)
    vv = (n // T2).astype(jnp.float32)
    tt = (n % T2).astype(jnp.float32)
    interior = ((vv >= 1) & (vv <= V) & (tt >= 1) & (tt <= T)).astype(jnp.float32)
    colinfo = jnp.stack([vv, tt, interior], axis=1)                                # (N2, 3)
    rowinfo = jnp.stack([vv, tt], axis=0)                                          # (2, N2)
    rowmask = ((vv[None, :] == (1.0 + jnp.arange(V, dtype=jnp.float32))[:, None])
               * interior[None, :]).astype(jnp.float32)                            # (V, N2)

    out_flat = pl.pallas_call(
        _fused_kernel,
        out_shape=jax.ShapeDtypeStruct((B, C, N2), jnp.float32),
        grid=(B,),
        in_specs=[
            pl.BlockSpec((1, Cin, N2), lambda b: (b, 0, 0)),     # x (per batch, channel-major flat)
            pl.BlockSpec((N2, 3), lambda b: (0, 0)),             # colinfo [v, t, interior]
            pl.BlockSpec((2, N2), lambda b: (0, 0)),             # rowinfo [v, t]
            pl.BlockSpec((V, N2), lambda b: (0, 0)),             # per-row interior mask
            pl.BlockSpec((C, Cin), lambda b: (0, 0)),            # w_down^T
            pl.BlockSpec((C, 1), lambda b: (0, 0)),              # b_down
            pl.BlockSpec((C + 2 * Cq, C), lambda b: (0, 0)),     # [gamma*v | q | k]^T
            pl.BlockSpec((C + 2 * Cq, 1), lambda b: (0, 0)),     # fused CCA bias
            pl.BlockSpec((3 * C, C), lambda b: (0, 0)),          # [qc | kc | vc]^T
            pl.BlockSpec((3 * C, 1), lambda b: (0, 0)),          # fused cAttn bias
            pl.BlockSpec((9, C, C), lambda b: (0, 0, 0)),        # 3x3 taps (sigma folded, (o, i))
        ],
        out_specs=pl.BlockSpec((1, C, N2), lambda b: (b, 0, 0)),
        compiler_params=pltpu.CompilerParams(dimension_semantics=("parallel",)),
    )(xp, colinfo, rowinfo, rowmask, wd_t, bd, wcca_t, bcca, wcat_t, bcat, w3k)

    # cheap host-side view change: drop the halo ring, already NCHW
    return out_flat.reshape(B, C, V2, T2)[:, :, 1:1 + V, 1:1 + T]


# ----------------------------- pure-JAX reference -----------------------------

def reference_forward(x, p):
    xp = jnp.pad(x, ((0, 0), (0, 0), (1, 1), (1, 1)))
    pw = lambda z, w, b: jnp.einsum('bcvt,co->bovt', z, w) + b[None, :, None, None]
    xd = pw(xp, p['w_down'], p['b_down'])
    B, C, V, T = xd.shape

    q = pw(xd, p['w_q'], p['b_q']); k = pw(xd, p['w_k'], p['b_k'])
    val = pw(xd, p['w_v'], p['b_v'])
    eH = jnp.einsum('bcvt,bcwt->bvtw', q, k)
    diag = jnp.arange(V)[:, None] == jnp.arange(V)[None, :]
    eH = jnp.where(diag[None, :, None, :], -1e30, eH)
    eW = jnp.einsum('bcvt,bcvs->bvts', q, k)
    a = jax.nn.softmax(jnp.concatenate([eH, eW], axis=-1), axis=-1)
    aH, aW = a[..., :V], a[..., V:]
    outH = jnp.einsum('bvtw,bcwt->bcvt', aH, val)
    outW = jnp.einsum('bvts,bcvs->bcvt', aW, val)
    x1 = p['gamma'] * (outH + outW)

    qc = pw(xd, p['w_qc'], p['b_qc']); kc = pw(xd, p['w_kc'], p['b_kc'])
    vc = pw(xd, p['w_vc'], p['b_vc'])
    s = jnp.einsum('bcvt,bdvt->bvcd', qc, kc)
    a2 = jax.nn.softmax(s, axis=-1)
    av = jnp.einsum('bvcd,bdvt->bcvt', a2, vc)
    w_oihw = jnp.transpose(p['w3'], (3, 2, 0, 1))
    conv = lax.conv_general_dilated(av, w_oihw, (1, 1), ((1, 1), (1, 1)),
                                    dimension_numbers=('NCHW', 'OIHW', 'NCHW'))
    x2 = p['sigma'] * conv
    return xd + x1 + x2


# ----------------------------- main -----------------------------

if __name__ == "__main__":
    B, Cin, V0, T0 = 2, 64, 8, 8
    C = Cin // 4     # 16
    Cq = C // 8      # 2
    ks = jax.random.split(jax.random.PRNGKey(0), 16)
    s = 0.1
    params = {
        'w_down': jax.random.normal(ks[0], (Cin, C), jnp.float32) * s,
        'b_down': jax.random.normal(ks[1], (C,), jnp.float32) * s,
        'w_q': jax.random.normal(ks[2], (C, Cq), jnp.float32) * s,
        'b_q': jax.random.normal(ks[3], (Cq,), jnp.float32) * s,
        'w_k': jax.random.normal(ks[4], (C, Cq), jnp.float32) * s,
        'b_k': jax.random.normal(ks[5], (Cq,), jnp.float32) * s,
        'w_v': jax.random.normal(ks[6], (C, C), jnp.float32) * s,
        'b_v': jax.random.normal(ks[7], (C,), jnp.float32) * s,
        # PyTorch inits gamma/sigma to 0 (output would reduce to the down-channel conv);
        # use nonzero deterministic values so both attention paths are exercised.
        'gamma': jnp.float32(0.7),
        'w_qc': jax.random.normal(ks[8], (C, C), jnp.float32) * s,
        'b_qc': jax.random.normal(ks[9], (C,), jnp.float32) * s,
        'w_kc': jax.random.normal(ks[10], (C, C), jnp.float32) * s,
        'b_kc': jax.random.normal(ks[11], (C,), jnp.float32) * s,
        'w_vc': jax.random.normal(ks[12], (C, C), jnp.float32) * s,
        'b_vc': jax.random.normal(ks[13], (C,), jnp.float32) * s,
        'w3': jax.random.normal(ks[14], (3, 3, C, C), jnp.float32) * s,  # HWIO, bias=False
        'sigma': jnp.float32(0.3),
    }
    x = jax.random.normal(ks[15], (B, Cin, V0, T0), jnp.float32)

    out = jax.jit(parallel_c_attention)(x, params)
    out = jax.block_until_ready(out)
    assert out.shape == (B, C, V0 + 2, T0 + 2), out.shape

    ref = reference_forward(x, params)
    if not jnp.allclose(out, ref, atol=2e-3, rtol=2e-3):
        max_err = float(jnp.max(jnp.abs(out - ref)))
        raise AssertionError(f"mismatch vs pure-JAX reference, max abs err = {max_err}")

    print("KERNEL_OK")
</pallas_src>

<mosaic_0001>
module attributes {stable_mosaic.version = 11 : i64} {
  func.func @_fused_kernel(%arg0: i32, %arg1: memref<1x64x144xf32, #tpu.memory_space<vmem>>, %arg2: memref<144x3xf32, #tpu.memory_space<vmem>>, %arg3: memref<2x144xf32, #tpu.memory_space<vmem>>, %arg4: memref<10x144xf32, #tpu.memory_space<vmem>>, %arg5: memref<16x64xf32, #tpu.memory_space<vmem>>, %arg6: memref<16x1xf32, #tpu.memory_space<vmem>>, %arg7: memref<20x16xf32, #tpu.memory_space<vmem>>, %arg8: memref<20x1xf32, #tpu.memory_space<vmem>>, %arg9: memref<48x16xf32, #tpu.memory_space<vmem>>, %arg10: memref<48x1xf32, #tpu.memory_space<vmem>>, %arg11: memref<9x16x16xf32, #tpu.memory_space<vmem>>, %arg12: memref<1x16x144xf32, #tpu.memory_space<vmem>>) attributes {dimension_semantics = [#tpu.dimension_semantics<parallel>], iteration_bounds = array<i64: 2>, scalar_prefetch = 0 : i64, scratch_operands = 0 : i64, tpu.core_type = #tpu.core_type<tc>, window_params = [{transform_indices = @transform_0, window_bounds = array<i64: 1, 64, 144>}, {pipeline_mode = #tpu.pipeline_mode<synchronous>, transform_indices = @transform_1, window_bounds = array<i64: 144, 3>}, {pipeline_mode = #tpu.pipeline_mode<synchronous>, transform_indices = @transform_2, window_bounds = array<i64: 2, 144>}, {pipeline_mode = #tpu.pipeline_mode<synchronous>, transform_indices = @transform_3, window_bounds = array<i64: 10, 144>}, {pipeline_mode = #tpu.pipeline_mode<synchronous>, transform_indices = @transform_4, window_bounds = array<i64: 16, 64>}, {pipeline_mode = #tpu.pipeline_mode<synchronous>, transform_indices = @transform_5, window_bounds = array<i64: 16, 1>}, {pipeline_mode = #tpu.pipeline_mode<synchronous>, transform_indices = @transform_6, window_bounds = array<i64: 20, 16>}, {pipeline_mode = #tpu.pipeline_mode<synchronous>, transform_indices = @transform_7, window_bounds = array<i64: 20, 1>}, {pipeline_mode = #tpu.pipeline_mode<synchronous>, transform_indices = @transform_8, window_bounds = array<i64: 48, 16>}, {pipeline_mode = #tpu.pipeline_mode<synchronous>, transform_indices = @transform_9, window_bounds = array<i64: 48, 1>}, {pipeline_mode = #tpu.pipeline_mode<synchronous>, transform_indices = @transform_10, window_bounds = array<i64: 9, 16, 16>}, {transform_indices = @transform_11, window_bounds = array<i64: 1, 16, 144>}]} {
    %c0 = arith.constant 0 : index
    %c0_0 = arith.constant 0 : index
    %c0_1 = arith.constant 0 : index
    %0 = vector.load %arg1[%c0, %c0_0, %c0_1] : memref<1x64x144xf32, #tpu.memory_space<vmem>>, vector<1x64x144xf32>
    %1 = vector.shape_cast %0 : vector<1x64x144xf32> to vector<64x144xf32>
    %c0_2 = arith.constant 0 : index
    %c0_3 = arith.constant 0 : index
    %2 = vector.load %arg5[%c0_2, %c0_3] : memref<16x64xf32, #tpu.memory_space<vmem>>, vector<16x64xf32>
    %cst = arith.constant dense<0.000000e+00> : vector<16x144xf32>
    %3 = tpu.matmul %2, %1, %cst {dimension_numbers = #tpu.dot_dimension_numbers<[1], [0], [0], [1], [0, 0, 1, 1], [], []>} : vector<16x64xf32>, vector<64x144xf32>, vector<16x144xf32> -> vector<16x144xf32>
    %c0_4 = arith.constant 0 : index
    %c0_5 = arith.constant 0 : index
    %4 = vector.load %arg6[%c0_4, %c0_5] : memref<16x1xf32, #tpu.memory_space<vmem>>, vector<16x1xf32>
    %5 = vector.broadcast %4 : vector<16x1xf32> to vector<16x144xf32>
    %6 = arith.addf %3, %5 : vector<16x144xf32>
    %c0_6 = arith.constant 0 : index
    %c0_7 = arith.constant 0 : index
    %7 = vector.load %arg7[%c0_6, %c0_7] : memref<20x16xf32, #tpu.memory_space<vmem>>, vector<20x16xf32>
    %cst_8 = arith.constant dense<0.000000e+00> : vector<20x144xf32>
    %8 = tpu.matmul %7, %6, %cst_8 {dimension_numbers = #tpu.dot_dimension_numbers<[1], [0], [0], [1], [0, 0, 1, 1], [], []>} : vector<20x16xf32>, vector<16x144xf32>, vector<20x144xf32> -> vector<20x144xf32>
    %c0_9 = arith.constant 0 : index
    %c0_10 = arith.constant 0 : index
    %9 = vector.load %arg8[%c0_9, %c0_10] : memref<20x1xf32, #tpu.memory_space<vmem>>, vector<20x1xf32>
    %10 = vector.broadcast %9 : vector<20x1xf32> to vector<20x144xf32>
    %11 = arith.addf %8, %10 : vector<20x144xf32>
    %12 = vector.extract_strided_slice %11 {offsets = [0, 0], sizes = [16, 144], strides = [1, 1]} : vector<20x144xf32> to vector<16x144xf32>
    %13 = vector.extract_strided_slice %11 {offsets = [16, 0], sizes = [2, 144], strides = [1, 1]} : vector<20x144xf32> to vector<2x144xf32>
    %14 = vector.extract_strided_slice %11 {offsets = [18, 0], sizes = [2, 144], strides = [1, 1]} : vector<20x144xf32> to vector<2x144xf32>
    %15 = tpu.transpose %14, [1, 0] : vector<2x144xf32> -> vector<144x2xf32>
    %16 = vector.extract_strided_slice %15 {offsets = [0, 0], sizes = [144, 1], strides = [1, 1]} : vector<144x2xf32> to vector<144x1xf32>
    %17 = vector.extract_strided_slice %13 {offsets = [0, 0], sizes = [1, 144], strides = [1, 1]} : vector<2x144xf32> to vector<1x144xf32>
    %18 = vector.broadcast %16 : vector<144x1xf32> to vector<144x144xf32>
    %19 = vector.broadcast %17 : vector<1x144xf32> to vector<144x144xf32>
    %20 = arith.mulf %18, %19 : vector<144x144xf32>
    %21 = vector.extract_strided_slice %15 {offsets = [0, 1], sizes = [144, 1], strides = [1, 1]} : vector<144x2xf32> to vector<144x1xf32>
    %22 = vector.extract_strided_slice %13 {offsets = [1, 0], sizes = [1, 144], strides = [1, 1]} : vector<2x144xf32> to vector<1x144xf32>
    %23 = vector.broadcast %21 : vector<144x1xf32> to vector<144x144xf32>
    %24 = vector.broadcast %22 : vector<1x144xf32> to vector<144x144xf32>
    %25 = arith.mulf %23, %24 : vector<144x144xf32>
    %26 = arith.addf %20, %25 : vector<144x144xf32>
    %c0_11 = arith.constant 0 : index
    %c0_12 = arith.constant 0 : index
    %27 = vector.load %arg2[%c0_11, %c0_12] : memref<144x3xf32, #tpu.memory_space<vmem>>, vector<144x3xf32>
    %c0_13 = arith.constant 0 : index
    %c0_14 = arith.constant 0 : index
    %28 = vector.load %arg3[%c0_13, %c0_14] : memref<2x144xf32, #tpu.memory_space<vmem>>, vector<2x144xf32>
    %29 = vector.extract_strided_slice %27 {offsets = [0, 0], sizes = [144, 1], strides = [1, 1]} : vector<144x3xf32> to vector<144x1xf32>
    %30 = vector.extract_strided_slice %28 {offsets = [0, 0], sizes = [1, 144], strides = [1, 1]} : vector<2x144xf32> to vector<1x144xf32>
    %31 = vector.broadcast %29 : vector<144x1xf32> to vector<144x144xf32>
    %32 = vector.broadcast %30 : vector<1x144xf32> to vector<144x144xf32>
    %33 = arith.cmpf oeq, %31, %32 : vector<144x144xf32>
    %34 = vector.extract_strided_slice %27 {offsets = [0, 1], sizes = [144, 1], strides = [1, 1]} : vector<144x3xf32> to vector<144x1xf32>
    %35 = vector.extract_strided_slice %28 {offsets = [1, 0], sizes = [1, 144], strides = [1, 1]} : vector<2x144xf32> to vector<1x144xf32>
    %36 = vector.broadcast %34 : vector<144x1xf32> to vector<144x144xf32>
    %37 = vector.broadcast %35 : vector<1x144xf32> to vector<144x144xf32>
    %38 = arith.cmpf oeq, %36, %37 : vector<144x144xf32>
    %39 = arith.ori %33, %38 : vector<144x144xi1>
    %40 = vector.extract_strided_slice %27 {offsets = [0, 2], sizes = [144, 1], strides = [1, 1]} : vector<144x3xf32> to vector<144x1xf32>
    %cst_15 = arith.constant 5.000000e-01 : f32
    %41 = vector.broadcast %cst_15 : f32 to vector<144x1xf32>
    %42 = arith.cmpf ogt, %40, %41 : vector<144x1xf32>
    %43 = vector.broadcast %42 : vector<144x1xi1> to vector<144x144xi1>
    %44 = arith.andi %39, %43 : vector<144x144xi1>
    %cst_16 = arith.constant -1.000000e+30 : f32
    %45 = vector.broadcast %cst_16 : f32 to vector<144x144xf32>
    %46 = arith.select %44, %26, %45 : vector<144x144xi1>, vector<144x144xf32>
    %cst_17 = arith.constant dense<0xFF800000> : vector<144xf32>
    %47 = vector.multi_reduction <maximumf>, %46, %cst_17 [0] : vector<144x144xf32> to vector<144xf32>
    %48 = vector.shape_cast %47 : vector<144xf32> to vector<1x144xf32>
    %49 = vector.broadcast %48 : vector<1x144xf32> to vector<144x144xf32>
    %50 = arith.subf %46, %49 : vector<144x144xf32>
    %51 = math.exp %50 : vector<144x144xf32>
    %cst_18 = arith.constant dense<0.000000e+00> : vector<144xf32>
    %52 = vector.multi_reduction <add>, %51, %cst_18 [0] : vector<144x144xf32> to vector<144xf32>
    %53 = vector.shape_cast %52 : vector<144xf32> to vector<1x144xf32>
    %54 = vector.broadcast %53 : vector<1x144xf32> to vector<144x144xf32>
    %55 = arith.divf %51, %54 : vector<144x144xf32>
    %cst_19 = arith.constant dense<0.000000e+00> : vector<16x144xf32>
    %56 = tpu.matmul %12, %55, %cst_19 {dimension_numbers = #tpu.dot_dimension_numbers<[1], [0], [0], [1], [0, 0, 1, 1], [], []>} : vector<16x144xf32>, vector<144x144xf32>, vector<16x144xf32> -> vector<16x144xf32>
    %c0_20 = arith.constant 0 : index
    %c0_21 = arith.constant 0 : index
    %57 = vector.load %arg9[%c0_20, %c0_21] : memref<48x16xf32, #tpu.memory_space<vmem>>, vector<48x16xf32>
    %cst_22 = arith.constant dense<0.000000e+00> : vector<48x144xf32>
    %58 = tpu.matmul %57, %6, %cst_22 {dimension_numbers = #tpu.dot_dimension_numbers<[1], [0], [0], [1], [0, 0, 1, 1], [], []>} : vector<48x16xf32>, vector<16x144xf32>, vector<48x144xf32> -> vector<48x144xf32>
    %c0_23 = arith.constant 0 : index
    %c0_24 = arith.constant 0 : index
    %59 = vector.load %arg10[%c0_23, %c0_24] : memref<48x1xf32, #tpu.memory_space<vmem>>, vector<48x1xf32>
    %60 = vector.broadcast %59 : vector<48x1xf32> to vector<48x144xf32>
    %61 = arith.addf %58, %60 : vector<48x144xf32>
    %62 = vector.extract_strided_slice %61 {offsets = [0, 0], sizes = [16, 144], strides = [1, 1]} : vector<48x144xf32> to vector<16x144xf32>
    %63 = vector.extract_strided_slice %61 {offsets = [16, 0], sizes = [16, 144], strides = [1, 1]} : vector<48x144xf32> to vector<16x144xf32>
    %64 = vector.extract_strided_slice %61 {offsets = [32, 0], sizes = [16, 144], strides = [1, 1]} : vector<48x144xf32> to vector<16x144xf32>
    %c0_25 = arith.constant 0 : index
    %c0_26 = arith.constant 0 : index
    %65 = vector.load %arg4[%c0_25, %c0_26] : memref<10x144xf32, #tpu.memory_space<vmem>>, vector<10x144xf32>
    %66 = vector.extract_strided_slice %65 {offsets = [0, 0], sizes = [1, 144], strides = [1, 1]} : vector<10x144xf32> to vector<1x144xf32>
    %67 = vector.broadcast %66 : vector<1x144xf32> to vector<16x144xf32>
    %68 = arith.mulf %62, %67 : vector<16x144xf32>
    %69 = vector.extract_strided_slice %65 {offsets = [1, 0], sizes = [1, 144], strides = [1, 1]} : vector<10x144xf32> to vector<1x144xf32>
    %70 = vector.broadcast %69 : vector<1x144xf32> to vector<16x144xf32>
    %71 = arith.mulf %62, %70 : vector<16x144xf32>
    %72 = vector.extract_strided_slice %65 {offsets = [2, 0], sizes = [1, 144], strides = [1, 1]} : vector<10x144xf32> to vector<1x144xf32>
    %73 = vector.broadcast %72 : vector<1x144xf32> to vector<16x144xf32>
    %74 = arith.mulf %62, %73 : vector<16x144xf32>
    %75 = vector.extract_strided_slice %65 {offsets = [3, 0], sizes = [1, 144], strides = [1, 1]} : vector<10x144xf32> to vector<1x144xf32>
    %76 = vector.broadcast %75 : vector<1x144xf32> to vector<16x144xf32>
    %77 = arith.mulf %62, %76 : vector<16x144xf32>
    %78 = vector.extract_strided_slice %65 {offsets = [4, 0], sizes = [1, 144], strides = [1, 1]} : vector<10x144xf32> to vector<1x144xf32>
    %79 = vector.broadcast %78 : vector<1x144xf32> to vector<16x144xf32>
    %80 = arith.mulf %62, %79 : vector<16x144xf32>
    %81 = vector.extract_strided_slice %65 {offsets = [5, 0], sizes = [1, 144], strides = [1, 1]} : vector<10x144xf32> to vector<1x144xf32>
    %82 = vector.broadcast %81 : vector<1x144xf32> to vector<16x144xf32>
    %83 = arith.mulf %62, %82 : vector<16x144xf32>
    %84 = vector.extract_strided_slice %65 {offsets = [6, 0], sizes = [1, 144], strides = [1, 1]} : vector<10x144xf32> to vector<1x144xf32>
    %85 = vector.broadcast %84 : vector<1x144xf32> to vector<16x144xf32>
    %86 = arith.mulf %62, %85 : vector<16x144xf32>
    %87 = vector.extract_strided_slice %65 {offsets = [7, 0], sizes = [1, 144], strides = [1, 1]} : vector<10x144xf32> to vector<1x144xf32>
    %88 = vector.broadcast %87 : vector<1x144xf32> to vector<16x144xf32>
    %89 = arith.mulf %62, %88 : vector<16x144xf32>
    %90 = vector.extract_strided_slice %65 {offsets = [8, 0], sizes = [1, 144], strides = [1, 1]} : vector<10x144xf32> to vector<1x144xf32>
    %91 = vector.broadcast %90 : vector<1x144xf32> to vector<16x144xf32>
    %92 = arith.mulf %62, %91 : vector<16x144xf32>
    %93 = vector.extract_strided_slice %65 {offsets = [9, 0], sizes = [1, 144], strides = [1, 1]} : vector<10x144xf32> to vector<1x144xf32>
    %94 = vector.broadcast %93 : vector<1x144xf32> to vector<16x144xf32>
    %95 = arith.mulf %62, %94 : vector<16x144xf32>
    %96 = tpu.concatenate %68, %71, %74, %77, %80, %83, %86, %89, %92, %95 in 0 : vector<16x144xf32>, vector<16x144xf32>, vector<16x144xf32>, vector<16x144xf32>, vector<16x144xf32>, vector<16x144xf32>, vector<16x144xf32>, vector<16x144xf32>, vector<16x144xf32>, vector<16x144xf32> -> vector<160x144xf32>
    %97 = tpu.transpose %63, [1, 0] : vector<16x144xf32> -> vector<144x16xf32>
    %cst_27 = arith.constant dense<0.000000e+00> : vector<160x16xf32>
    %98 = tpu.matmul %96, %97, %cst_27 {dimension_numbers = #tpu.dot_dimension_numbers<[1], [0], [0], [1], [0, 0, 1, 1], [], []>} : vector<160x144xf32>, vector<144x16xf32>, vector<160x16xf32> -> vector<160x16xf32>
    %cst_28 = arith.constant dense<0xFF800000> : vector<160xf32>
    %99 = vector.multi_reduction <maximumf>, %98, %cst_28 [1] : vector<160x16xf32> to vector<160xf32>
    %100 = vector.shape_cast %99 : vector<160xf32> to vector<160x1xf32>
    %101 = vector.broadcast %100 : vector<160x1xf32> to vector<160x16xf32>
    %102 = arith.subf %98, %101 : vector<160x16xf32>
    %103 = math.exp %102 : vector<160x16xf32>
    %cst_29 = arith.constant dense<0.000000e+00> : vector<160xf32>
    %104 = vector.multi_reduction <add>, %103, %cst_29 [1] : vector<160x16xf32> to vector<160xf32>
    %105 = vector.shape_cast %104 : vector<160xf32> to vector<160x1xf32>
    %106 = vector.broadcast %105 : vector<160x1xf32> to vector<160x16xf32>
    %107 = arith.divf %103, %106 : vector<160x16xf32>
    %cst_30 = arith.constant dense<0.000000e+00> : vector<160x144xf32>
    %108 = tpu.matmul %107, %64, %cst_30 {dimension_numbers = #tpu.dot_dimension_numbers<[1], [0], [0], [1], [0, 0, 1, 1], [], []>} : vector<160x16xf32>, vector<16x144xf32>, vector<160x144xf32> -> vector<160x144xf32>
    %109 = vector.extract_strided_slice %108 {offsets = [0, 0], sizes = [16, 144], strides = [1, 1]} : vector<160x144xf32> to vector<16x144xf32>
    %110 = vector.extract_strided_slice %65 {offsets = [0, 0], sizes = [1, 144], strides = [1, 1]} : vector<10x144xf32> to vector<1x144xf32>
    %111 = vector.broadcast %110 : vector<1x144xf32> to vector<16x144xf32>
    %112 = arith.mulf %109, %111 : vector<16x144xf32>
    %113 = vector.extract_strided_slice %108 {offsets = [16, 0], sizes = [16, 144], strides = [1, 1]} : vector<160x144xf32> to vector<16x144xf32>
    %114 = vector.extract_strided_slice %65 {offsets = [1, 0], sizes = [1, 144], strides = [1, 1]} : vector<10x144xf32> to vector<1x144xf32>
    %115 = vector.broadcast %114 : vector<1x144xf32> to vector<16x144xf32>
    %116 = arith.mulf %113, %115 : vector<16x144xf32>
    %117 = arith.addf %112, %116 : vector<16x144xf32>
    %118 = vector.extract_strided_slice %108 {offsets = [32, 0], sizes = [16, 144], strides = [1, 1]} : vector<160x144xf32> to vector<16x144xf32>
    %119 = vector.extract_strided_slice %65 {offsets = [2, 0], sizes = [1, 144], strides = [1, 1]} : vector<10x144xf32> to vector<1x144xf32>
    %120 = vector.broadcast %119 : vector<1x144xf32> to vector<16x144xf32>
    %121 = arith.mulf %118, %120 : vector<16x144xf32>
    %122 = arith.addf %117, %121 : vector<16x144xf32>
    %123 = vector.extract_strided_slice %108 {offsets = [48, 0], sizes = [16, 144], strides = [1, 1]} : vector<160x144xf32> to vector<16x144xf32>
    %124 = vector.extract_strided_slice %65 {offsets = [3, 0], sizes = [1, 144], strides = [1, 1]} : vector<10x144xf32> to vector<1x144xf32>
    %125 = vector.broadcast %124 : vector<1x144xf32> to vector<16x144xf32>
    %126 = arith.mulf %123, %125 : vector<16x144xf32>
    %127 = arith.addf %122, %126 : vector<16x144xf32>
    %128 = vector.extract_strided_slice %108 {offsets = [64, 0], sizes = [16, 144], strides = [1, 1]} : vector<160x144xf32> to vector<16x144xf32>
    %129 = vector.extract_strided_slice %65 {offsets = [4, 0], sizes = [1, 144], strides = [1, 1]} : vector<10x144xf32> to vector<1x144xf32>
    %130 = vector.broadcast %129 : vector<1x144xf32> to vector<16x144xf32>
    %131 = arith.mulf %128, %130 : vector<16x144xf32>
    %132 = arith.addf %127, %131 : vector<16x144xf32>
    %133 = vector.extract_strided_slice %108 {offsets = [80, 0], sizes = [16, 144], strides = [1, 1]} : vector<160x144xf32> to vector<16x144xf32>
    %134 = vector.extract_strided_slice %65 {offsets = [5, 0], sizes = [1, 144], strides = [1, 1]} : vector<10x144xf32> to vector<1x144xf32>
    %135 = vector.broadcast %134 : vector<1x144xf32> to vector<16x144xf32>
    %136 = arith.mulf %133, %135 : vector<16x144xf32>
    %137 = arith.addf %132, %136 : vector<16x144xf32>
    %138 = vector.extract_strided_slice %108 {offsets = [96, 0], sizes = [16, 144], strides = [1, 1]} : vector<160x144xf32> to vector<16x144xf32>
    %139 = vector.extract_strided_slice %65 {offsets = [6, 0], sizes = [1, 144], strides = [1, 1]} : vector<10x144xf32> to vector<1x144xf32>
    %140 = vector.broadcast %139 : vector<1x144xf32> to vector<16x144xf32>
    %141 = arith.mulf %138, %140 : vector<16x144xf32>
    %142 = arith.addf %137, %141 : vector<16x144xf32>
    %143 = vector.extract_strided_slice %108 {offsets = [112, 0], sizes = [16, 144], strides = [1, 1]} : vector<160x144xf32> to vector<16x144xf32>
    %144 = vector.extract_strided_slice %65 {offsets = [7, 0], sizes = [1, 144], strides = [1, 1]} : vector<10x144xf32> to vector<1x144xf32>
    %145 = vector.broadcast %144 : vector<1x144xf32> to vector<16x144xf32>
    %146 = arith.mulf %143, %145 : vector<16x144xf32>
    %147 = arith.addf %142, %146 : vector<16x144xf32>
    %148 = vector.extract_strided_slice %108 {offsets = [128, 0], sizes = [16, 144], strides = [1, 1]} : vector<160x144xf32> to vector<16x144xf32>
    %149 = vector.extract_strided_slice %65 {offsets = [8, 0], sizes = [1, 144], strides = [1, 1]} : vector<10x144xf32> to vector<1x144xf32>
    %150 = vector.broadcast %149 : vector<1x144xf32> to vector<16x144xf32>
    %151 = arith.mulf %148, %150 : vector<16x144xf32>
    %152 = arith.addf %147, %151 : vector<16x144xf32>
    %153 = vector.extract_strided_slice %108 {offsets = [144, 0], sizes = [16, 144], strides = [1, 1]} : vector<160x144xf32> to vector<16x144xf32>
    %154 = vector.extract_strided_slice %65 {offsets = [9, 0], sizes = [1, 144], strides = [1, 1]} : vector<10x144xf32> to vector<1x144xf32>
    %155 = vector.broadcast %154 : vector<1x144xf32> to vector<16x144xf32>
    %156 = arith.mulf %153, %155 : vector<16x144xf32>
    %157 = arith.addf %152, %156 : vector<16x144xf32>
    %c4 = arith.constant 4 : index
    %c0_31 = arith.constant 0 : index
    %c0_32 = arith.constant 0 : index
    %158 = vector.load %arg11[%c4, %c0_31, %c0_32] : memref<9x16x16xf32, #tpu.memory_space<vmem>>, vector<1x16x16xf32>
    %159 = vector.shape_cast %158 : vector<1x16x16xf32> to vector<16x16xf32>
    %cst_33 = arith.constant dense<0.000000e+00> : vector<16x144xf32>
    %160 = tpu.matmul %159, %157, %cst_33 {dimension_numbers = #tpu.dot_dimension_numbers<[1], [0], [0], [1], [0, 0, 1, 1], [], []>} : vector<16x16xf32>, vector<16x144xf32>, vector<16x144xf32> -> vector<16x144xf32>
    %161 = vector.extract_strided_slice %157 {offsets = [0, 131], sizes = [16, 13], strides = [1, 1]} : vector<16x144xf32> to vector<16x13xf32>
    %162 = vector.extract_strided_slice %157 {offsets = [0, 0], sizes = [16, 131], strides = [1, 1]} : vector<16x144xf32> to vector<16x131xf32>
    %163 = tpu.concatenate %161, %162 in 1 : vector<16x13xf32>, vector<16x131xf32> -> vector<16x144xf32>
    %c0_34 = arith.constant 0 : index
    %c0_35 = arith.constant 0 : index
    %c0_36 = arith.constant 0 : index
    %164 = vector.load %arg11[%c0_34, %c0_35, %c0_36] : memref<9x16x16xf32, #tpu.memory_space<vmem>>, vector<1x16x16xf32>
    %165 = vector.shape_cast %164 : vector<1x16x16xf32> to vector<16x16xf32>
    %cst_37 = arith.constant dense<0.000000e+00> : vector<16x144xf32>
    %166 = tpu.matmul %165, %163, %cst_37 {dimension_numbers = #tpu.dot_dimension_numbers<[1], [0], [0], [1], [0, 0, 1, 1], [], []>} : vector<16x16xf32>, vector<16x144xf32>, vector<16x144xf32> -> vector<16x144xf32>
    %167 = arith.addf %160, %166 : vector<16x144xf32>
    %168 = vector.extract_strided_slice %157 {offsets = [0, 132], sizes = [16, 12], strides = [1, 1]} : vector<16x144xf32> to vector<16x12xf32>
    %169 = vector.extract_strided_slice %157 {offsets = [0, 0], sizes = [16, 132], strides = [1, 1]} : vector<16x144xf32> to vector<16x132xf32>
    %170 = tpu.concatenate %168, %169 in 1 : vector<16x12xf32>, vector<16x132xf32> -> vector<16x144xf32>
    %c1 = arith.constant 1 : index
    %c0_38 = arith.constant 0 : index
    %c0_39 = arith.constant 0 : index
    %171 = vector.load %arg11[%c1, %c0_38, %c0_39] : memref<9x16x16xf32, #tpu.memory_space<vmem>>, vector<1x16x16xf32>
    %172 = vector.shape_cast %171 : vector<1x16x16xf32> to vector<16x16xf32>
    %cst_40 = arith.constant dense<0.000000e+00> : vector<16x144xf32>
    %173 = tpu.matmul %172, %170, %cst_40 {dimension_numbers = #tpu.dot_dimension_numbers<[1], [0], [0], [1], [0, 0, 1, 1], [], []>} : vector<16x16xf32>, vector<16x144xf32>, vector<16x144xf32> -> vector<16x144xf32>
    %174 = arith.addf %167, %173 : vector<16x144xf32>
    %175 = vector.extract_strided_slice %157 {offsets = [0, 133], sizes = [16, 11], strides = [1, 1]} : vector<16x144xf32> to vector<16x11xf32>
    %176 = vector.extract_strided_slice %157 {offsets = [0, 0], sizes = [16, 133], strides = [1, 1]} : vector<16x144xf32> to vector<16x133xf32>
    %177 = tpu.concatenate %175, %176 in 1 : vector<16x11xf32>, vector<16x133xf32> -> vector<16x144xf32>
    %c2 = arith.constant 2 : index
    %c0_41 = arith.constant 0 : index
    %c0_42 = arith.constant 0 : index
    %178 = vector.load %arg11[%c2, %c0_41, %c0_42] : memref<9x16x16xf32, #tpu.memory_space<vmem>>, vector<1x16x16xf32>
    %179 = vector.shape_cast %178 : vector<1x16x16xf32> to vector<16x16xf32>
    %cst_43 = arith.constant dense<0.000000e+00> : vector<16x144xf32>
    %180 = tpu.matmul %179, %177, %cst_43 {dimension_numbers = #tpu.dot_dimension_numbers<[1], [0], [0], [1], [0, 0, 1, 1], [], []>} : vector<16x16xf32>, vector<16x144xf32>, vector<16x144xf32> -> vector<16x144xf32>
    %181 = arith.addf %174, %180 : vector<16x144xf32>
    %182 = vector.extract_strided_slice %157 {offsets = [0, 143], sizes = [16, 1], strides = [1, 1]} : vector<16x144xf32> to vector<16x1xf32>
    %183 = vector.extract_strided_slice %157 {offsets = [0, 0], sizes = [16, 143], strides = [1, 1]} : vector<16x144xf32> to vector<16x143xf32>
    %184 = tpu.concatenate %182, %183 in 1 : vector<16x1xf32>, vector<16x143xf32> -> vector<16x144xf32>
    %c3 = arith.constant 3 : index
    %c0_44 = arith.constant 0 : index
    %c0_45 = arith.constant 0 : index
    %185 = vector.load %arg11[%c3, %c0_44, %c0_45] : memref<9x16x16xf32, #tpu.memory_space<vmem>>, vector<1x16x16xf32>
    %186 = vector.shape_cast %185 : vector<1x16x16xf32> to vector<16x16xf32>
    %cst_46 = arith.constant dense<0.000000e+00> : vector<16x144xf32>
    %187 = tpu.matmul %186, %184, %cst_46 {dimension_numbers = #tpu.dot_dimension_numbers<[1], [0], [0], [1], [0, 0, 1, 1], [], []>} : vector<16x16xf32>, vector<16x144xf32>, vector<16x144xf32> -> vector<16x144xf32>
    %188 = arith.addf %181, %187 : vector<16x144xf32>
    %189 = vector.extract_strided_slice %157 {offsets = [0, 1], sizes = [16, 143], strides = [1, 1]} : vector<16x144xf32> to vector<16x143xf32>
    %190 = vector.extract_strided_slice %157 {offsets = [0, 0], sizes = [16, 1], strides = [1, 1]} : vector<16x144xf32> to vector<16x1xf32>
    %191 = tpu.concatenate %189, %190 in 1 : vector<16x143xf32>, vector<16x1xf32> -> vector<16x144xf32>
    %c5 = arith.constant 5 : index
    %c0_47 = arith.constant 0 : index
    %c0_48 = arith.constant 0 : index
    %192 = vector.load %arg11[%c5, %c0_47, %c0_48] : memref<9x16x16xf32, #tpu.memory_space<vmem>>, vector<1x16x16xf32>
    %193 = vector.shape_cast %192 : vector<1x16x16xf32> to vector<16x16xf32>
    %cst_49 = arith.constant dense<0.000000e+00> : vector<16x144xf32>
    %194 = tpu.matmul %193, %191, %cst_49 {dimension_numbers = #tpu.dot_dimension_numbers<[1], [0], [0], [1], [0, 0, 1, 1], [], []>} : vector<16x16xf32>, vector<16x144xf32>, vector<16x144xf32> -> vector<16x144xf32>
    %195 = arith.addf %188, %194 : vector<16x144xf32>
    %196 = vector.extract_strided_slice %157 {offsets = [0, 11], sizes = [16, 133], strides = [1, 1]} : vector<16x144xf32> to vector<16x133xf32>
    %197 = vector.extract_strided_slice %157 {offsets = [0, 0], sizes = [16, 11], strides = [1, 1]} : vector<16x144xf32> to vector<16x11xf32>
    %198 = tpu.concatenate %196, %197 in 1 : vector<16x133xf32>, vector<16x11xf32> -> vector<16x144xf32>
    %c6 = arith.constant 6 : index
    %c0_50 = arith.constant 0 : index
    %c0_51 = arith.constant 0 : index
    %199 = vector.load %arg11[%c6, %c0_50, %c0_51] : memref<9x16x16xf32, #tpu.memory_space<vmem>>, vector<1x16x16xf32>
    %200 = vector.shape_cast %199 : vector<1x16x16xf32> to vector<16x16xf32>
    %cst_52 = arith.constant dense<0.000000e+00> : vector<16x144xf32>
    %201 = tpu.matmul %200, %198, %cst_52 {dimension_numbers = #tpu.dot_dimension_numbers<[1], [0], [0], [1], [0, 0, 1, 1], [], []>} : vector<16x16xf32>, vector<16x144xf32>, vector<16x144xf32> -> vector<16x144xf32>
    %202 = arith.addf %195, %201 : vector<16x144xf32>
    %203 = vector.extract_strided_slice %157 {offsets = [0, 12], sizes = [16, 132], strides = [1, 1]} : vector<16x144xf32> to vector<16x132xf32>
    %204 = vector.extract_strided_slice %157 {offsets = [0, 0], sizes = [16, 12], strides = [1, 1]} : vector<16x144xf32> to vector<16x12xf32>
    %205 = tpu.concatenate %203, %204 in 1 : vector<16x132xf32>, vector<16x12xf32> -> vector<16x144xf32>
    %c7 = arith.constant 7 : index
    %c0_53 = arith.constant 0 : index
    %c0_54 = arith.constant 0 : index
    %206 = vector.load %arg11[%c7, %c0_53, %c0_54] : memref<9x16x16xf32, #tpu.memory_space<vmem>>, vector<1x16x16xf32>
    %207 = vector.shape_cast %206 : vector<1x16x16xf32> to vector<16x16xf32>
    %cst_55 = arith.constant dense<0.000000e+00> : vector<16x144xf32>
    %208 = tpu.matmul %207, %205, %cst_55 {dimension_numbers = #tpu.dot_dimension_numbers<[1], [0], [0], [1], [0, 0, 1, 1], [], []>} : vector<16x16xf32>, vector<16x144xf32>, vector<16x144xf32> -> vector<16x144xf32>
    %209 = arith.addf %202, %208 : vector<16x144xf32>
    %210 = vector.extract_strided_slice %157 {offsets = [0, 13], sizes = [16, 131], strides = [1, 1]} : vector<16x144xf32> to vector<16x131xf32>
    %211 = vector.extract_strided_slice %157 {offsets = [0, 0], sizes = [16, 13], strides = [1, 1]} : vector<16x144xf32> to vector<16x13xf32>
    %212 = tpu.concatenate %210, %211 in 1 : vector<16x131xf32>, vector<16x13xf32> -> vector<16x144xf32>
    %c8 = arith.constant 8 : index
    %c0_56 = arith.constant 0 : index
    %c0_57 = arith.constant 0 : index
    %213 = vector.load %arg11[%c8, %c0_56, %c0_57] : memref<9x16x16xf32, #tpu.memory_space<vmem>>, vector<1x16x16xf32>
    %214 = vector.shape_cast %213 : vector<1x16x16xf32> to vector<16x16xf32>
    %cst_58 = arith.constant dense<0.000000e+00> : vector<16x144xf32>
    %215 = tpu.matmul %214, %212, %cst_58 {dimension_numbers = #tpu.dot_dimension_numbers<[1], [0], [0], [1], [0, 0, 1, 1], [], []>} : vector<16x16xf32>, vector<16x144xf32>, vector<16x144xf32> -> vector<16x144xf32>
    %216 = arith.addf %209, %215 : vector<16x144xf32>
    %217 = arith.addf %6, %56 : vector<16x144xf32>
    %218 = arith.addf %217, %216 : vector<16x144xf32>
    %c0_59 = arith.constant 0 : index
    %c0_60 = arith.constant 0 : index
    %c0_61 = arith.constant 0 : index
    %219 = vector.load %arg12[%c0_59, %c0_60, %c0_61] : memref<1x16x144xf32, #tpu.memory_space<vmem>>, vector<1x16x144xf32>
    %220 = vector.shape_cast %219 : vector<1x16x144xf32> to vector<16x144xf32>
    %221 = vector.shape_cast %218 : vector<16x144xf32> to vector<1x16x144xf32>
    tpu.vector_store %arg12[%c0_59, %c0_60, %c0_61], %221 {strides = array<i32>} : memref<1x16x144xf32, #tpu.memory_space<vmem>>, vector<1x16x144xf32>,
    return
  }
  func.func @transform_0(%arg0: i32) -> (i32, i32, i32) {
    %c0_i32 = arith.constant 0 : i32
    %c0_i32_0 = arith.constant 0 : i32
    %c0_i32_1 = arith.constant 0 : i32
    return %arg0, %c0_i32, %c0_i32_0 : i32, i32, i32
  }
  func.func @transform_1(%arg0: i32) -> (i32, i32) {
    %c0_i32 = arith.constant 0 : i32
    %c0_i32_0 = arith.constant 0 : i32
    %c0_i32_1 = arith.constant 0 : i32
    return %c0_i32, %c0_i32_0 : i32, i32
  }
  func.func @transform_2(%arg0: i32) -> (i32, i32) {
    %c0_i32 = arith.constant 0 : i32
    %c0_i32_0 = arith.constant 0 : i32
    %c0_i32_1 = arith.constant 0 : i32
    return %c0_i32, %c0_i32_0 : i32, i32
  }
  func.func @transform_3(%arg0: i32) -> (i32, i32) {
    %c0_i32 = arith.constant 0 : i32
    %c0_i32_0 = arith.constant 0 : i32
    %c0_i32_1 = arith.constant 0 : i32
    return %c0_i32, %c0_i32_0 : i32, i32
  }
  func.func @transform_4(%arg0: i32) -> (i32, i32) {
    %c0_i32 = arith.constant 0 : i32
    %c0_i32_0 = arith.constant 0 : i32
    %c0_i32_1 = arith.constant 0 : i32
    return %c0_i32, %c0_i32_0 : i32, i32
  }
  func.func @transform_5(%arg0: i32) -> (i32, i32) {
    %c0_i32 = arith.constant 0 : i32
    %c0_i32_0 = arith.constant 0 : i32
    %c0_i32_1 = arith.constant 0 : i32
    return %c0_i32, %c0_i32_0 : i32, i32
  }
  func.func @transform_6(%arg0: i32) -> (i32, i32) {
    %c0_i32 = arith.constant 0 : i32
    %c0_i32_0 = arith.constant 0 : i32
    %c0_i32_1 = arith.constant 0 : i32
    return %c0_i32, %c0_i32_0 : i32, i32
  }
  func.func @transform_7(%arg0: i32) -> (i32, i32) {
    %c0_i32 = arith.constant 0 : i32
    %c0_i32_0 = arith.constant 0 : i32
    %c0_i32_1 = arith.constant 0 : i32
    return %c0_i32, %c0_i32_0 : i32, i32
  }
  func.func @transform_8(%arg0: i32) -> (i32, i32) {
    %c0_i32 = arith.constant 0 : i32
    %c0_i32_0 = arith.constant 0 : i32
    %c0_i32_1 = arith.constant 0 : i32
    return %c0_i32, %c0_i32_0 : i32, i32
  }
  func.func @transform_9(%arg0: i32) -> (i32, i32) {
    %c0_i32 = arith.constant 0 : i32
    %c0_i32_0 = arith.constant 0 : i32
    %c0_i32_1 = arith.constant 0 : i32
    return %c0_i32, %c0_i32_0 : i32, i32
  }
  func.func @transform_10(%arg0: i32) -> (i32, i32, i32) {
    %c0_i32 = arith.constant 0 : i32
    %c0_i32_0 = arith.constant 0 : i32
    %c0_i32_1 = arith.constant 0 : i32
    %c0_i32_2 = arith.constant 0 : i32
    return %c0_i32, %c0_i32_0, %c0_i32_1 : i32, i32, i32
  }
  func.func @transform_11(%arg0: i32) -> (i32, i32, i32) {
    %c0_i32 = arith.constant 0 : i32
    %c0_i32_0 = arith.constant 0 : i32
    %c0_i32_1 = arith.constant 0 : i32
    return %arg0, %c0_i32, %c0_i32_0 : i32, i32, i32
  }
}

</mosaic_0001>

<bundles_post_ra>
// kernel: parallel_c_attention.1
= control target key start
LH: loop header
LB: loop body
LE: loop exit
PB: predicated region body
PF: predicated region fallthrough
CT: control target
= control target key end

     0   :  { %s4650_s17 = smov 0   ;;  %s7299_s0 = inlined_call_operand.vmem [shape: f32[2,64,144], index: 0, kind: input, shape index: {}]   ;;  %s7300_s1 = inlined_call_operand.vmem [shape: f32[144,3], index: 1, kind: input, shape index: {}]   ;;  %s7301_s2 = inlined_call_operand.vmem [shape: f32[2,144], index: 2, kind: input, shape index: {}]   ;;  %s7302_s3 = inlined_call_operand.vmem [shape: f32[10,144], index: 3, kind: input, shape index: {}]   ;;  %s7303_s4 = inlined_call_operand.vmem [shape: f32[16,64], index: 4, kind: input, shape index: {}]   ;;  %s7304_s5 = inlined_call_operand.vmem [shape: f32[16,1], index: 5, kind: input, shape index: {}]   ;;  %s7305_s6 = inlined_call_operand.vmem [shape: f32[20,16], index: 6, kind: input, shape index: {}]   ;;  %s7306_s7 = inlined_call_operand.vmem [shape: f32[20,1], index: 7, kind: input, shape index: {}]   ;;  %s7307_s8 = inlined_call_operand.vmem [shape: f32[48,16], index: 8, kind: input, shape index: {}]   ;;  %s7308_s9 = inlined_call_operand.vmem [shape: f32[48,1], index: 9, kind: input, shape index: {}]   ;;  %s7309_s10 = inlined_call_operand.vmem [shape: f32[9,16,16], index: 10, kind: input, shape index: {}]   ;;  %s7310_s11 = inlined_call_operand.vmem [shape: f32[2,16,144], index: 11, kind: output, shape index: {}]  }
   0x1 LB: > { %s3951_s18 = sadd.s32 4294967295, %s4568_s17   ;;  %p3955_p0 = scmp.ge.s32.totalorder %s4568_s17, 1  ;;  %s4568_s17 = sphi %s4650_s17, %s21_s17  }
   0x2   : > { %p337_p1 = scmp.lt.s32.totalorder %s4568_s17, 3 }
   0x4   : > { %p338_p2 = pnand %p3955_p0, %p337_p1 }
   0x6   : > { %341 = sbr.rel (%p338_p2) target bundleno = 1816 (0x718), region = 64 }
   0xd   : > { %p377_p3 = scmp.lt.s32.totalorder %s3951_s18, 1  ;;  %v7313_v0 = vmov 0.0   ;;  %v7316_v1 = vmov 0   ;;  %v405_v2 = vld [vmem:[%s7304_s5] sm:$0xff]  ;;  %v1842_v3 = vld [vmem:[%s7308_s9 + $0x10] sm:$0xff]  ;;  %v406_v4 = vld [vmem:[%s7304_s5 + $0x8] sm:$0xff] }
   0xe   : > { %488 = vmatprep.mubr.f32.mxu0 %v7313_v0  ;;  %4228 = vset.pattern.permute.xlu0 %v7316_v1  ;;  %v1843_v5 = vld [vmem:[%s7308_s9 + $0x18] sm:$0xff]  ;;  %v1841_v9 = vld [vmem:[%s7308_s9 + $0x8] sm:$0xff]  ;;  %v7311_v21 = vmov 1   ;;  %v4701_v25 = vld [vmem:[%s7300_s1] sm:$0xff]  ;;  %vm417_vm1 = vcmask 523264   ;;  %v4573_v39 = vmov 2  }
   0xf   : > { %s7985_s18 = smov (!%p377_p3, %s3951_s18), 1  ;;  %409 = vperm.xlu0 %4228, %v405_v2   ;;  %4229 = vset.pattern.permute.xlu1 %v7316_v1  ;;  %v4709_v28 = vld [vmem:[%s7300_s1 + $0x8] sm:$0xff]  ;;  %v4714_v29 = vld [vmem:[%s7300_s1 + $0x10] sm:$0xff]  ;;  %v4724_v34 = vld [vmem:[%s7300_s1 + $0x18] sm:$0xff]  ;;  %vm1297_vm0 = vcmp.gt.f32.partialorder %v4701_v25, 0.5  ;;  %s4574_s28 = smov 13  }
  0x10   : > { %1858 = vperm.xlu1 %4229, %v1842_v3   ;;  %596 = vmatprep.mubr.f32.mxu1 %v7313_v0  ;;  %s4051_s25 = sshll.u32 %s7985_s18, 7  ;;  %v4730_v36 = vld [vmem:[%s7300_s1 + $0x30] sm:$0xff]  ;;  %v403_v37 = vld [vmem:[%s7303_s4] sm:$0xff]  ;;  %v1315_v38 = vsel %vm1297_vm0, 1, %v7316_v1  ;;  %vm1298_vm2 = vcmp.gt.f32.partialorder %v4709_v28, 0.5  ;;  %v404_v40 = vld [vmem:[%s7303_s4 + $0x8] sm:$0xff] }
  0x11   : > { %s4680_s30 = scalar_lea.vmem %s7299_s0, %s4051_s25  ;;  %v1316_v41 = vsel %vm1298_vm2, 1, %v7316_v1  ;;  %vm1300_vm3 = vcmp.gt.f32.partialorder %v4724_v34, 0.5  ;;  %v975_v43 = vld [vmem:[%s7300_s1 + $0x20] sm:$0xff]  ;;  %v4756_v44 = vld [vmem:[%s7300_s1 + $0x28] sm:$0xff]  ;;  %v978_v46 = vld [vmem:[%s7300_s1 + $0x38] sm:$0xff]  ;;  %vm1299_vm8 = vcmp.gt.f32.partialorder %v4714_v29, 0.5 }
  0x12   : > { %v388_v6 = vld [vmem:[%s4680_s30 + $0x8] sm:$0xff]  ;;  %v390_v7 = vld [vmem:[%s4680_s30 + $0x18] sm:$0xff]  ;;  %v387_v8 = vld [vmem:[%s4680_s30] sm:$0xff]  ;;  %v1318_v42 = vsel %vm1300_vm3, 1, %v7316_v1  ;;  %vm1301_vm4 = vcmp.gt.f32.partialorder %v975_v43, 0.5  ;;  %vm1304_vm5 = vcmp.gt.f32.partialorder %v978_v46, 0.5 }
  0x13   : > { %414 = vperm.xlu0 %4228, %v406_v4   ;;  %v4053_v10 = vpack.c.bf16 %v390_v7, %v388_v6  ;;  %v389_v11 = vld [vmem:[%s4680_s30 + $0x10] sm:$0xff]  ;;  %v392_v12 = vld [vmem:[%s4680_s30 + $0x28] sm:$0xff]  ;;  %v394_v13 = vld [vmem:[%s4680_s30 + $0x38] sm:$0xff]  ;;  %v1319_v45 = vsel %vm1301_vm4, 1, %v7316_v1  ;;  %v1322_v48 = vsel %vm1304_vm5, 1, %v7316_v1  ;;  %v1317_v60 = vsel %vm1299_vm8, 1, %v7316_v1 }
  0x14   : > { %1863 = vperm.xlu1 %4229, %v1843_v5   ;;  %v4055_v14 = vpack.c.bf16 %v389_v11, %v387_v8  ;;  %v4057_v15 = vpack.c.bf16 %v394_v13, %v392_v12  ;;  %v391_v16 = vld [vmem:[%s4680_s30 + $0x20] sm:$0xff]  ;;  %v393_v17 = vld [vmem:[%s4680_s30 + $0x30] sm:$0xff]  ;;  %v396_v18 = vld [vmem:[%s4680_s30 + $0x48] sm:$0xff]  ;;  %vm1302_vm9 = vcmp.gt.f32.partialorder %v4756_v44, 0.5  ;;  %vm1303_vm11 = vcmp.gt.f32.partialorder %v4730_v36, 0.5  ;;  %s4575_s29 = smov 12  }
  0x15   : > { %4054 = vmatprep.subr.bf16.mxu0 %v4053_v10  ;;  %v398_v19 = vld [vmem:[%s4680_s30 + $0x58] sm:$0xff]  ;;  %v4059_v20 = vpack.c.bf16 %v393_v17, %v391_v16  ;;  %v395_v23 = vld [vmem:[%s4680_s30 + $0x40] sm:$0xff]  ;;  %v397_v24 = vld [vmem:[%s4680_s30 + $0x50] sm:$0xff]  ;;  %v1320_v61 = vsel %vm1302_vm9, 1, %v7316_v1  ;;  %v1321_v63 = vsel %vm1303_vm11, 1, %v7316_v1  ;;  %vm7401_vm3 = vcmask 130048  }
  0x16   : > { %4056 = vmatpush1.bf16.msra.mxu0 %v4055_v14  ;;  %v4061_v22 = vpack.c.bf16 %v398_v19, %v396_v18  ;;  %v400_v26 = vld [vmem:[%s4680_s30 + $0x68] sm:$0xff]  ;;  %v402_v27 = vld [vmem:[%s4680_s30 + $0x78] sm:$0xff]  ;;  %v4063_v30 = vpack.c.bf16 %v397_v24, %v395_v23  ;;  %v399_v32 = vld [vmem:[%s4680_s30 + $0x60] sm:$0xff]  ;;  %s4577_s12 = smov 125   ;;  %s4578_s13 = smov 123  }
  0x17   : > { %4230 = vset.pattern.permute.xlu0 %v7311_v21  ;;  %4058 = vmatprep.subr.bf16.mxu0 %v4057_v15  ;;  %v4065_v31 = vpack.c.bf16 %v402_v27, %v400_v26  ;;  %v401_v33 = vld [vmem:[%s4680_s30 + $0x70] sm:$0xff]  ;;  %v979_v50 = vld [vmem:[%s7300_s1 + $0x40] sm:$0xff]  ;;  %v980_v53 = vld [vmem:[%s7300_s1 + $0x48] sm:$0xff]  ;;  %s4576_s30 = smov 11   ;;  %s4579_s14 = smov 1  }
  0x18   : > { %1853 = vperm.xlu1 %4229, %v1841_v9   ;;  %1136 = vperm.xlu0 %4230, %v4701_v25   ;;  %v4067_v35 = vpack.c.bf16 %v401_v33, %v399_v32  ;;  %v4771_v47 = vld [vmem:[%s7300_s1 + $0x50] sm:$0xff]  ;;  %v1840_v51 = vld [vmem:[%s7308_s9] sm:$0xff]  ;;  %vm1305_vm6 = vcmp.gt.f32.partialorder %v979_v50, 0.5  ;;  %v982_v55 = vld [vmem:[%s7300_s1 + $0x58] sm:$0xff]  ;;  %vm1306_vm12 = vcmp.gt.f32.partialorder %v980_v53, 0.5  ;;  %s4580_s15 = smov 124  }
  0x19   : > { %v4778_v49 = vld [vmem:[%s7300_s1 + $0x70] sm:$0xff]  ;;  %v1323_v54 = vsel %vm1305_vm6, 1, %v7316_v1  ;;  %vm1308_vm7 = vcmp.gt.f32.partialorder %v982_v55, 0.5  ;;  %v984_v57 = vld [vmem:[%s7300_s1 + $0x68] sm:$0xff]  ;;  %v983_v58 = vld [vmem:[%s7300_s1 + $0x60] sm:$0xff]  ;;  %v1324_v2 = vsel %vm1306_vm12, 1, %v7316_v1 }
  0x1a   : > { %4060 = vmatpush1.bf16.msra.mxu0 %v4059_v20  ;;  %v506_v52 = vld [vmem:[%s7306_s7 + $0x10] sm:$0xf]  ;;  %v1326_v56 = vsel %vm1308_vm7, 1, %v7316_v1  ;;  %v988_v59 = vld [vmem:[%s7300_s1 + $0x88] sm:$0xff]  ;;  %vm1309_vm10 = vcmp.gt.f32.partialorder %v983_v58, 0.5  ;;  %vm1307_vm13 = vcmp.gt.f32.partialorder %v4771_v47, 0.5  ;;  %vm4114_vm4 = vmpackc.low %vm7401_vm3, %vm7401_vm3 }
  0x1b   : > { %4062 = vmatprep.subr.bf16.mxu0 %v4061_v22  ;;  %v1327_v62 = vsel %vm1309_vm10, 1, %v7316_v1  ;;  %v986_v3 = vld [vmem:[%s7300_s1 + $0x78] sm:$0xff]  ;;  %v1325_v4 = vsel %vm1307_vm13, 1, %v7316_v1  ;;  %vm1310_vm14 = vcmp.gt.f32.partialorder %v984_v57, 0.5  ;;  %vm1311_vm15 = vcmp.gt.f32.partialorder %v4778_v49, 0.5  ;;  %v987_v7 = vld [vmem:[%s7300_s1 + $0x80] sm:$0xff] }
  0x1c   : > { %4231 = vset.pattern.permute.xlu1 %v7311_v21  ;;  %1144 = vperm.xlu0 %4230, %v4714_v29   ;;  %v1328_v5 = vsel %vm1310_vm14, 1, %v7316_v1  ;;  %vm1312_vm0 = vcmp.gt.f32.partialorder %v986_v3, 0.5  ;;  %v1329_v6 = vsel %vm1311_vm15, 1, %v7316_v1  ;;  %vm1314_vm2 = vcmp.gt.f32.partialorder %v988_v59, 0.5  ;;  %v501_v24 = vld [vmem:[%s7305_s6] sm:$0xff]  ;;  %v502_v26 = vld [vmem:[%s7305_s6 + $0x8] sm:$0xff] }
  0x1d   : > { %1140 = vperm.xlu1 %4231, %v4709_v28   ;;  %v1330_v8 = vsel %vm1312_vm0, 1, %v7316_v1  ;;  %v1332_v10 = vsel %vm1314_vm2, 1, %v7316_v1  ;;  %v1835_v27 = vld [vmem:[%s7307_s8 + $0x8] sm:$0xff]  ;;  %s4581_s16 = smov 127   ;;  %s4582_s19 = smov 5  }
  0x1e   : > { %4064 = vmatpush1.bf16.msra.mxu0 %v4063_v30  ;;  %v1837_v30 = vld [vmem:[%s7307_s8 + $0x18] sm:$0xff]  ;;  %v1839_v32 = vld [vmem:[%s7307_s8 + $0x28] sm:$0xff]  ;;  %s4583_s20 = smov 113   ;;  %s4584_s21 = smov 116  }
  0x1f   : > { %4066 = vmatprep.subr.bf16.mxu0 %v4065_v31  ;;  %v1838_v31 = vld [vmem:[%s7307_s8 + $0x20] sm:$0xff]  ;;  %s4585_s22 = smov 15   ;;  %s4586_s23 = smov 117  }
  0x20   : > { %1160 = vperm.xlu0 %4230, %v4730_v36   ;;  %s4587_s24 = smov 3   ;;  %s4588_s25 = smov 4  }
  0x21   : > { %1148 = vperm.xlu1 %4231, %v4724_v34   ;;  %s4589_s26 = smov 115  }
  0x22   : > { %4068 = vmatpush1.bf16.msra.mxu0 %v4067_v35 }
  0x24   : > { %1176 = vperm.xlu0 %4230, %v4771_v47  }
  0x25   : > { %4232 = vset.pattern.permute.xlu1 %v4573_v39  ;;  %3960 = vmatmul.mubr.msk.f32.vlgmr.msra.gmra.mrb[0].mxu0 %vm417_vm1, %v403_v37 }
  0x26   : > { %1334 = vperm.xlu1 %4232, %v1315_v38   ;;  %494 = vmatprep.mubr.f32.mxu0 %v7313_v0 }
  0x28   : > { %1192 = vperm.xlu0 %4230, %v4778_v49  }
  0x29   : > { %3961 = vmatmul.mubr.msk.f32.gmra.mrb[2].mxu0 %vm417_vm1, %v404_v40  ;;  %vm1313_vm1 = vcmp.gt.f32.partialorder %v987_v7, 0.5 }
  0x2a   : > { %1337 = vperm.xlu1 %4232, %v1316_v41   ;;  %1958 = vmatprep.mubr.f32.mxu0 %v7313_v0  ;;  %v1331_v9 = vsel %vm1313_vm1, 1, %v7316_v1 }
  0x2c   : > { %4249 = vset.pattern.permute.xlu0 %v7316_v1 }
  0x2d   : > { %1848 = vperm.xlu0 %4249, %v1840_v51  }
  0x2e   : > { %1343 = vperm.xlu1 %4232, %v1318_v42  }
  0x31   : > { %519 = vperm.xlu0 %4249, %v506_v52  }
  0x32   : > { %4233 = vset.pattern.permute.xlu1 %v7316_v1 }
  0x33   : > { %1012 = vperm.xlu1 %4233, %v975_v43  }
  0x35   : > { %992 = vperm.xlu0 %4249, %v4701_v25   ;;  %v1834_v25 = vld [vmem:[%s7307_s8] sm:$0xff] }
  0x37   : > { %4234 = vset.pattern.permute.xlu1 %v7311_v21 }
  0x38   : > { %1152 = vperm.xlu1 %4234, %v975_v43  }
  0x39   : > { %997 = vperm.xlu0 %4249, %v4709_v28   ;;  %v503_v28 = vld [vmem:[%s7305_s6 + $0x10] sm:$0xf] }
  0x3c   : > { %1156 = vperm.xlu1 %4234, %v4756_v44  }
  0x3d   : > { %1002 = vperm.xlu0 %4249, %v4714_v29   ;;  %v1836_v29 = vld [vmem:[%s7307_s8 + $0x10] sm:$0xff] }
  0x40   : > { %4235 = vset.pattern.permute.xlu1 %v4573_v39 }
  0x41   : > { %1346 = vperm.xlu1 %4235, %v1319_v45   ;;  %1007 = vperm.xlu0 %4249, %v4724_v34  }
  0x45   : > { %4236 = vset.pattern.permute.xlu1 %v7316_v1  ;;  %1017 = vperm.xlu0 %4249, %v4756_v44  }
  0x46   : > { %1022 = vperm.xlu1 %4236, %v4730_v36  }
  0x49   : > { %1037 = vperm.xlu0 %4249, %v980_v53  }
  0x4a   : > { %1027 = vperm.xlu1 %4236, %v978_v46  }
  0x4d   : > { %1057 = vperm.xlu0 %4249, %v984_v57  }
  0x4e   : > { %4237 = vset.pattern.permute.xlu1 %v7311_v21 }
  0x4f   : > { %1164 = vperm.xlu1 %4237, %v978_v46  }
  0x51   : > { %1077 = vperm.xlu0 %4249, %v988_v59  }
  0x53   : > { %4238 = vset.pattern.permute.xlu1 %v4573_v39 }
  0x54   : > { %1355 = vperm.xlu1 %4238, %v1322_v48   ;;  %v775_v48 = vlaneseq }
  0x55   : > { %4253 = vset.pattern.permute.xlu0 %v4573_v39 }
  0x56   : > { %1340 = vperm.xlu0 %4253, %v1317_v60   ;;  %v4938_v51 = vshrl.u32 %v775_v48, 7 }
  0x58   : > { %4239 = vset.pattern.permute.xlu1 %v7316_v1 }
  0x59   : > { %1032 = vperm.xlu1 %4239, %v979_v50  }
  0x5a   : > { %1349 = vperm.xlu0 %4253, %v1320_v61  }
  0x5d   : > { %4240 = vset.pattern.permute.xlu1 %v7311_v21 }
  0x5e   : > { %1168 = vperm.xlu1 %4240, %v979_v50   ;;  %1352 = vperm.xlu0 %4253, %v1321_v63  }
  0x62   : > { %1172 = vperm.xlu1 %4240, %v980_v53   ;;  %1361 = vperm.xlu0 %4253, %v1324_v2   ;;  %v4945_v53 = vld [vmem:[%s7302_s3 + $0x8] sm:$0xff] }
  0x66   : > { %4241 = vset.pattern.permute.xlu1 %v4573_v39  ;;  %1364 = vperm.xlu0 %4253, %v1325_v4  }
  0x67   : > { %1358 = vperm.xlu1 %4241, %v1323_v54   ;;  %v4948_v54 = vsub.s32 0, %v4938_v51 }
  0x6a   : > { %1373 = vperm.xlu0 %4253, %v1328_v5  }
  0x6b   : > { %4242 = vset.pattern.permute.xlu1 %v7316_v1 }
  0x6c   : > { %1042 = vperm.xlu1 %4242, %v4771_v47  }
  0x6e   : > { %1376 = vperm.xlu0 %4253, %v1329_v6  }
  0x70   : > { %1047 = vperm.xlu1 %4242, %v982_v55  }
  0x72   : > { %1382 = vperm.xlu0 %4253, %v1331_v9  }
  0x74   : > { %4243 = vset.pattern.permute.xlu1 %v7311_v21 }
  0x75   : > { %1180 = vperm.xlu1 %4243, %v982_v55  }
  0x79   : > { %4244 = vset.pattern.permute.xlu1 %v4573_v39 }
  0x7a   : > { %1367 = vperm.xlu1 %4244, %v1326_v56  }
  0x7e   : > { %4245 = vset.pattern.permute.xlu1 %v7316_v1 }
  0x7f   : > { %1052 = vperm.xlu1 %4245, %v983_v58  }
  0x83   : > { %4246 = vset.pattern.permute.xlu1 %v7311_v21 }
  0x84   : > { %1184 = vperm.xlu1 %4246, %v983_v58   ;;  %v4954_v58 = vrot.slane %v4945_v53, %v4948_v54 }
  0x86   : > { %7454 = vst [vmem:[#allocation9_spill] sm:$0xff] %v4954_v58 }
  0x88   : > { %1188 = vperm.xlu1 %4246, %v984_v57  }
  0x8c   : > { %4247 = vset.pattern.permute.xlu1 %v4573_v39 }
  0x8d   : > { %1370 = vperm.xlu1 %4247, %v1327_v62  }
  0x8e   : > { %v410_v11 = vpop.permute.xlu0 %409 }
  0x8f   : > { %v1859_v33 = vpop.permute.xlu1 %1858 }
  0x91   : > { %4248 = vset.pattern.permute.xlu1 %v7316_v1 }
  0x92   : > { %1062 = vperm.xlu1 %4248, %v4778_v49   ;;  %v415_v14 = vpop.permute.xlu0 %414 }
  0x93   : > { %v1864_v34 = vpop.permute.xlu1 %1863 }
  0x96   : > { %1067 = vperm.xlu1 %4248, %v986_v3  }
  0x97   : > { %v4908_v35 = vpop.permute.xlu1 %1853  ;;  %v4920_v41 = vpop.permute.xlu0 %1136 }
  0x9a   : > { %4250 = vset.pattern.permute.xlu1 %v7311_v21 }
  0x9b   : > { %1196 = vperm.xlu1 %4250, %v986_v3   ;;  %v4924_v43 = vpop.permute.xlu0 %1144 }
  0x9c   : > { %v4910_v36 = vpop.permute.xlu1 %1140 }
  0x9f   : > { %4251 = vset.pattern.permute.xlu1 %v4573_v39  ;;  %v4928_v45 = vpop.permute.xlu0 %1160 }
  0xa0   : > { %1379 = vperm.xlu1 %4251, %v1330_v8   ;;  %v4912_v37 = vpop.permute.xlu1 %1148 }
  0xa3   : > { %v4932_v47 = vpop.permute.xlu0 %1176 }
  0xa4   : > { %4252 = vset.pattern.permute.xlu1 %v7316_v1  ;;  %7451 = vst [vmem:[#allocation6_spill] sm:$0xff] %v4932_v47 }
  0xa5   : > { %1072 = vperm.xlu1 %4252, %v987_v7   ;;  %v4914_v38 = vpop.permute.xlu1 %1334 }
  0xa6   : > { %vm1387_vm13 = vcmp.eq.s32.totalorder %v4914_v38, 1 }
  0xa7   : > { %v4936_v50 = vpop.permute.xlu0 %1192 }
  0xa8   : > { %7452 = vst [vmem:[#allocation7_spill] sm:$0xff] %v4936_v50 }
  0xa9   : > { %4254 = vset.pattern.permute.xlu1 %v7311_v21  ;;  %v2061_v21 = vsub.s32 5, %v4938_v51 }
  0xaa   : > { %1200 = vperm.xlu1 %4254, %v987_v7  }
  0xac   : > { %v1849_v55 = vpop.permute.xlu0 %1848 }
  0xae   : > { %1204 = vperm.xlu1 %4254, %v988_v59  }
  0xb0   : > { %v520_v6 = vpop.permute.xlu0 %519 }
  0xb2   : > { %4255 = vset.pattern.permute.xlu1 %v4573_v39  ;;  %v4916_v39 = vpop.permute.xlu1 %1337 }
  0xb3   : > { %1385 = vperm.xlu1 %4255, %v1332_v10  }
  0xb6   : > { %v4918_v40 = vpop.permute.xlu1 %1343 }
  0xba   : > { %v4922_v42 = vpop.permute.xlu1 %1012 }
  0xbe   : > { %v4926_v44 = vpop.permute.xlu1 %1152 }
  0xc2   : > { %v4930_v46 = vpop.permute.xlu1 %1156 }
  0xc6   : > { %v4934_v49 = vpop.permute.xlu1 %1346 }
  0xca   : > { %v4940_v52 = vpop.permute.xlu1 %1022 }
  0xce   : > { %v4960_v62 = vpop.permute.xlu1 %1027 }
  0xf8   : > { %v490_v12 = vpop.f32.mrb[0].mxu0 }
  0xf9   : > { %v492_v13 = vpop.f32.mrb[1].mxu0  ;;  %v4859_v20 = vadd.f32 %v490_v12, %v410_v11 }
  0xfa   : > { %v4855_v18 = vadd.f32 %v492_v13, %v410_v11  ;;  %v4973_v13 = vpop.permute.xlu1 %1164 }
  0xfb   : > { %7450 = vst [vmem:[#allocation5_spill] sm:$0xff] %v4859_v20 }
  0xfc   : > { %v496_v15 = vpop.f32.mrb[2].mxu0  ;;  %7448 = vst [vmem:[#allocation3_spill] sm:$0xff] %v4855_v18 }
  0xfd   : > { %v4853_v16 = vadd.f32 %v496_v15, %v415_v14  ;;  %v498_v17 = vpop.f32.mrb[3].mxu0 }
  0xfe   : > { %v4857_v19 = vadd.f32 %v498_v17, %v415_v14 }
  0xff   : > { %7447 = vst [vmem:[#allocation2_spill] sm:$0xff] %v4853_v16  ;;  %v4071_v23 = vpack.c.bf16 %v4853_v16, %v4859_v20  ;;  %v2073_v16 = vsub.s32 6, %v4938_v51 }
 0x100   : > { %7449 = vst [vmem:[#allocation4_spill] sm:$0xff] %v4857_v19  ;;  %v4069_v22 = vpack.c.bf16 %v4857_v19, %v4855_v18 }
 0x102   : > { %4070 = vmatprep.subr.bf16.mxu1 %v4069_v22  ;;  %4110 = vmatprep.subr.bf16.mxu0 %v4069_v22 }
 0x103   : > { %4072 = vmatpush1.bf16.msra.mxu1 %v4071_v23  ;;  %4112 = vmatpush1.bf16.msra.mxu0 %v4071_v23 }
 0x106   : > { %3962 = vmatmul.mubr.msk.f32.vlgmr.msra.gmra.mrb[0].mxu1 %vm7401_vm3, %v501_v24  ;;  %3967 = vmatmul.mubr.msk.f32.vlgmr.msra.gmra.mrb[4].mxu0 %vm7401_vm3, %v1834_v25 }
 0x107   : > { %602 = vmatprep.mubr.f32.mxu1 %v7313_v0  ;;  %1964 = vmatprep.mubr.f32.mxu0 %v7313_v0 }
 0x10a   : > { %3963 = vmatmul.mubr.msk.f32.gmra.mrb[2].mxu1 %vm7401_vm3, %v502_v26  ;;  %3968 = vmatmul.mubr.msk.f32.gmra.mrb[6].mxu0 %vm7401_vm3, %v1835_v27 }
 0x10b   : > { %608 = vmatprep.mubr.f32.mxu1 %v7313_v0  ;;  %1970 = vmatprep.mubr.f32.mxu0 %v7313_v0 }
 0x10e   : > { %3964 = vmatmul.mubr.msk.f32.gmra.mrb[4].mxu1 %vm7401_vm3, %v503_v28  ;;  %3969 = vmatmul.mubr.msk.f32.gmra.mrb[8].mxu0 %vm7401_vm3, %v1836_v29  ;;  %v4979_v29 = vpop.permute.xlu1 %1355 }
 0x10f   : > { %1976 = vmatprep.mubr.f32.mxu0 %v7313_v0 }
 0x112   : > { %3970 = vmatmul.mubr.msk.f32.gmra.mrb[10].mxu0 %vm7401_vm3, %v1837_v30  ;;  %v4984_v30 = vld [vmem:[%s7302_s3] sm:$0xff]  ;;  %v4998_v48 = vpop.permute.xlu1 %1032 }
 0x113   : > { %1982 = vmatprep.mubr.f32.mxu0 %v7313_v0 }
 0x116   : > { %3971 = vmatmul.mubr.msk.f32.gmra.mrb[12].mxu0 %vm7401_vm3, %v1838_v31 }
 0x117   : > { %1988 = vmatprep.mubr.f32.mxu0 %v7313_v0  ;;  %v5102_v0 = vrot.slane %v4945_v53, %v2061_v21 }
 0x119   : > { %7468 = vst [vmem:[#allocation23_spill] sm:$0xff] %v5102_v0 }
 0x11a   : > { %3972 = vmatmul.mubr.msk.f32.gmra.mrb[14].mxu0 %vm7401_vm3, %v1839_v32  ;;  %v4990_v32 = vrot.slane %v4984_v30, %v4948_v54 }
 0x11c   : > { %7458 = vst [vmem:[#allocation13_spill] sm:$0xff] %v4990_v32 }
 0x1d9   : > { %v4950_v56 = vpop.f32.mrb[0].mxu1  ;;  %v1960_v57 = vpop.f32.mrb[4].mxu0 }
 0x1da   : > { %7453 = vst [vmem:[#allocation8_spill] sm:$0xff] %v4950_v56  ;;  %v4956_v59 = vpop.f32.mrb[1].mxu1  ;;  %v1962_v60 = vpop.f32.mrb[5].mxu0  ;;  %v4986_v31 = vadd.f32 %v1960_v57, %v1849_v55 }
 0x1db   : > { %7455 = vst [vmem:[#allocation10_spill] sm:$0xff] %v4956_v59  ;;  %v4958_v61 = vadd.f32 %v1962_v60, %v1849_v55 }
 0x1dd   : > { %v4962_v63 = vpop.f32.mrb[2].mxu1  ;;  %v1966_v2 = vpop.f32.mrb[6].mxu0  ;;  %v2008_v3 = vmul.f32 %v4954_v58, %v4958_v61 }
 0x1de   : > { %7456 = vst [vmem:[#allocation11_spill] sm:$0xff] %v4962_v63  ;;  %v4966_v4 = vpop.f32.mrb[3].mxu1  ;;  %v1968_v5 = vpop.f32.mrb[7].mxu0  ;;  %v5001_v60 = vadd.f32 %v1966_v2, %v4908_v35 }
 0x1df   : > { %7457 = vst [vmem:[#allocation12_spill] sm:$0xff] %v4966_v4  ;;  %3975 = vmatprep.mubr.msk.f32.mxu0 %vm7401_vm3, %v2008_v3  ;;  %v2007_v3 = vmul.f32 %v4990_v32, %v4986_v31  ;;  %v5018_v2 = vpop.permute.xlu1 %1168 }
 0x1e1   : > { %v610_v7 = vpop.f32.mrb[4].mxu1  ;;  %v1972_v8 = vpop.f32.mrb[8].mxu0 }
 0x1e2   : > { %v4969_v9 = vadd.f32 %v610_v7, %v520_v6  ;;  %v612_v10 = vpop.f32.mrb[5].mxu1  ;;  %v1974_v11 = vpop.f32.mrb[9].mxu0  ;;  %v1973_v22 = vadd.f32 %v1972_v8, %v1859_v33  ;;  %v5023_v7 = vsub.s32 2, %v4938_v51 }
 0x1e3   : > { %v4971_v12 = vadd.f32 %v612_v10, %v520_v6  ;;  %v1975_v25 = vadd.f32 %v1974_v11, %v1859_v33  ;;  %v4993_v33 = vadd.f32 %v1968_v5, %v4908_v35  ;;  %v2009_v5 = vmul.f32 %v4990_v32, %v5001_v60 }
 0x1e4   : > { %v617_v14 = vrot.slane %v4969_v9, 2  ;;  %v5032_v11 = vrot.slane %v4945_v53, %v5023_v7 }
 0x1e5   : > { %v1978_v15 = vpop.f32.mrb[10].mxu0  ;;  %v618_v17 = vrot.slane %v4971_v12, 2  ;;  %v2010_v55 = vmul.f32 %v4954_v58, %v4993_v33  ;;  %v2070_v20 = vmul.f32 %v5102_v0, %v4993_v33 }
 0x1e6   : > { %v1979_v23 = vadd.f32 %v1978_v15, %v1864_v34  ;;  %v1980_v24 = vpop.f32.mrb[11].mxu0  ;;  %621 = vxpose.xlu1.b32.start.end [1/1] (short) %v617_v14, 128  ;;  %7461 = vst [vmem:[#allocation16_spill] sm:$0xff] %v5032_v11  ;;  %v5034_v14 = vpop.permute.xlu1 %1172 }
 0x1e7   : > { %v1981_v26 = vadd.f32 %v1980_v24, %v1864_v34  ;;  %653 = vxpose.xlu0.b32.start.end [1/1] (short) (narrow) %v618_v17, 16  ;;  %v4996_v34 = vsub.s32 1, %v4938_v51  ;;  %v5041_v17 = vrot.slane %v4984_v30, %v5023_v7 }
 0x1e8   : > { %v4116_v27 = vpack.c.bf16 %v1979_v23, %v1973_v22  ;;  %v2032_v22 = vmul.f32 %v5032_v11, %v4958_v61  ;;  %v5046_v23 = vsub.s32 3, %v4938_v51 }
 0x1e9   : > { %v4113_v28 = vpack.c.bf16 %v1981_v26, %v1975_v25  ;;  %v5009_v57 = vrot.slane %v4945_v53, %v4996_v34  ;;  %v5016_v35 = vrot.slane %v4984_v30, %v4996_v34  ;;  %7462 = vst [vmem:[#allocation17_spill] sm:$0xff] %v5041_v17  ;;  %v2031_v24 = vmul.f32 %v5041_v17, %v4986_v31 }
 0x1ea   : > { %v5051_v25 = vpop.permute.xlu1 %1358  ;;  %v2034_v26 = vmul.f32 %v5032_v11, %v4993_v33 }
 0x1eb   : > { %4115 = vmatprep.subr.msk.bf16.mxu0 %vm4114_vm4, %v4113_v28  ;;  %7459 = vst [vmem:[#allocation14_spill] sm:$0xff] %v5009_v57  ;;  %7460 = vst [vmem:[#allocation15_spill] sm:$0xff] %v5016_v35  ;;  %v2020_v6 = vmul.f32 %v5009_v57, %v4958_v61  ;;  %v2019_v8 = vmul.f32 %v5016_v35, %v4986_v31  ;;  %v2022_v10 = vmul.f32 %v5009_v57, %v4993_v33 }
 0x1ec   : > { %4117 = vmatpush1.bf16.xpose.msra.mxu0 %v4116_v27  ;;  %v2021_v15 = vmul.f32 %v5016_v35, %v5001_v60  ;;  %v5057_v27 = vrot.slane %v4945_v53, %v5046_v23  ;;  %v2033_v28 = vmul.f32 %v5041_v17, %v5001_v60 }
 0x1ee   : > { %7463 = vst [vmem:[#allocation18_spill] sm:$0xff] %v5057_v27 }
 0x1f3   : > { %2250 = vmatmul.mubr.f32.vlgmr.msra.gmra.mrb[16].mxu0 %v2007_v3  ;;  %v5065_v3 = vrot.slane %v4984_v30, %v5046_v23 }
 0x1f4   : > { %3976 = vmatprep.mubr.msk.f32.mxu0 %vm7401_vm3, %v2010_v55  ;;  %v2044_v55 = vmul.f32 %v5057_v27, %v4958_v61 }
 0x1f5   : > { %7464 = vst [vmem:[#allocation19_spill] sm:$0xff] %v5065_v3 }
 0x1f7   : > { %2255 = vmatmul.mubr.f32.gmra.mrb[18].mxu0 %v2009_v5  ;;  %v2049_v5 = vsub.s32 4, %v4938_v51 }
 0x1f8   : > { %3977 = vmatprep.mubr.msk.f32.mxu0 %vm7401_vm3, %v2020_v6  ;;  %v5070_v6 = vpop.permute.xlu1 %1042 }
 0x1f9   : > { %7465 = vst [vmem:[#allocation20_spill] sm:$0xff] %v5070_v6 }
 0x1fb   : > { %2260 = vmatmul.mubr.f32.gmra.mrb[20].mxu0 %v2019_v8  ;;  %v2043_v8 = vmul.f32 %v5065_v3, %v4986_v31 }
 0x1fc   : > { %3978 = vmatprep.mubr.msk.f32.mxu0 %vm7401_vm3, %v2022_v10  ;;  %v2046_v10 = vmul.f32 %v5057_v27, %v4993_v33  ;;  %v2085_v27 = vsub.s32 7, %v4938_v51 }
 0x1ff   : > { %2265 = vmatmul.mubr.f32.gmra.mrb[22].mxu0 %v2021_v15  ;;  %v5078_v15 = vrot.slane %v4945_v53, %v2049_v5 }
 0x200   : > { %3979 = vmatprep.mubr.msk.f32.mxu0 %vm7401_vm3, %v2032_v22  ;;  %v5080_v22 = vpop.permute.xlu0 %992 }
 0x201   : > { %7466 = vst [vmem:[#allocation21_spill] sm:$0xff] %v5078_v15 }
 0x203   : > { %2270 = vmatmul.mubr.f32.gmra.mrb[24].mxu0 %v2031_v24  ;;  %v2045_v24 = vmul.f32 %v5065_v3, %v5001_v60 }
 0x204   : > { %3980 = vmatprep.mubr.msk.f32.mxu0 %vm7401_vm3, %v2034_v26  ;;  %4258 = vset.pattern.permute.xlu1 %v7316_v1  ;;  %v5086_v26 = vrot.slane %v4984_v30, %v2049_v5  ;;  %v2058_v5 = vmul.f32 %v5078_v15, %v4993_v33 }
 0x206   : > { %7467 = vst [vmem:[#allocation22_spill] sm:$0xff] %v5086_v26 }
 0x207   : > { %2275 = vmatmul.mubr.f32.gmra.mrb[26].mxu0 %v2033_v28  ;;  %v5088_v28 = vpop.permute.xlu1 %1047 }
 0x208   : > { %3981 = vmatprep.mubr.msk.f32.mxu0 %vm7401_vm3, %v2044_v55  ;;  %v2056_v55 = vmul.f32 %v5078_v15, %v4958_v61 }
 0x20b   : > { %2280 = vmatmul.mubr.f32.gmra.mrb[28].mxu0 %v2043_v8  ;;  %v5095_v8 = vpop.permute.xlu0 %997  ;;  %v5104_v19 = vpop.permute.xlu1 %1180 }
 0x20c   : > { %3982 = vmatprep.mubr.msk.f32.mxu0 %vm7401_vm3, %v2046_v10  ;;  %v2055_v10 = vmul.f32 %v5086_v26, %v4986_v31 }
 0x20f   : > { %2285 = vmatmul.mubr.f32.gmra.mrb[30].mxu0 %v2045_v24  ;;  %v2057_v24 = vmul.f32 %v5086_v26, %v5001_v60  ;;  %v5115_v18 = vpop.permute.xlu0 %1002 }
 0x210   : > { %3983 = vmatprep.mubr.msk.f32.mxu0 %vm7401_vm3, %v2056_v55  ;;  %4256 = vset.pattern.permute.xlu0 %v7316_v1  ;;  %v5110_v55 = vrot.slane %v4984_v30, %v2061_v21  ;;  %v2068_v1 = vmul.f32 %v5102_v0, %v4958_v61  ;;  %v5125_v21 = vrot.slane %v4945_v53, %v2073_v16 }
 0x212   : > { %7469 = vst [vmem:[#allocation24_spill] sm:$0xff] %v5110_v55  ;;  %7471 = vst [vmem:[#allocation26_spill] sm:$0xff] %v5125_v21  ;;  %v2080_v26 = vmul.f32 %v5125_v21, %v4958_v61 }
 0x213   : > { %2290 = vmatmul.mubr.f32.gmra.mrb[32].mxu0 %v2055_v10  ;;  %v2067_v10 = vmul.f32 %v5110_v55, %v4986_v31  ;;  %v5128_v15 = vpop.permute.xlu0 %1007 }
 0x214   : > { %3984 = vmatprep.mubr.msk.f32.mxu0 %vm7401_vm3, %v2058_v5  ;;  %v5120_v5 = vpop.permute.xlu1 %1367 }
 0x215   : > { %7470 = vst [vmem:[#allocation25_spill] sm:$0xff] %v5120_v5 }
 0x217   : > { %2295 = vmatmul.mubr.f32.gmra.mrb[34].mxu0 %v2057_v24  ;;  %v2069_v24 = vmul.f32 %v5110_v55, %v5001_v60  ;;  %v5146_v55 = vrot.slane %v4945_v53, %v2085_v27  ;;  %v1998_v53 = vld [vmem:[%s7302_s3 + $0x18] sm:$0x3] }
 0x218   : > { %3985 = vmatprep.mubr.msk.f32.mxu0 %vm7401_vm3, %v2068_v1  ;;  %v5133_v1 = vrot.slane %v4984_v30, %v2073_v16  ;;  %v5138_v0 = vpop.permute.xlu1 %1052  ;;  %v5148_v16 = vpop.permute.xlu0 %1017 }
 0x219   : > { %7473 = vst [vmem:[#allocation28_spill] sm:$0xff] %v5138_v0  ;;  %7474 = vst [vmem:[#allocation29_spill] sm:$0xff] %v5146_v55  ;;  %v2092_v3 = vmul.f32 %v5146_v55, %v4958_v61 }
 0x21a   : > { %7472 = vst [vmem:[#allocation27_spill] sm:$0xff] %v5133_v1  ;;  %v2081_v51 = vmul.f32 %v5133_v1, %v5001_v60 }
 0x21b   : > { %2300 = vmatmul.mubr.f32.gmra.mrb[36].mxu0 %v2067_v10  ;;  %v2082_v10 = vmul.f32 %v5125_v21, %v4993_v33 }
 0x21c   : > { %3986 = vmatprep.mubr.msk.f32.mxu0 %vm7401_vm3, %v2070_v20  ;;  %v2079_v20 = vmul.f32 %v5133_v1, %v4986_v31 }
 0x21f   : > { %2305 = vmatmul.mubr.f32.gmra.mrb[38].mxu0 %v2069_v24  ;;  %v5154_v24 = vrot.slane %v4984_v30, %v2085_v27  ;;  %v2094_v30 = vmul.f32 %v5146_v55, %v4993_v33  ;;  %v5171_v27 = vrot.slane %v1998_v53, %v4948_v54 }
 0x220   : > { %3987 = vmatprep.mubr.msk.f32.mxu0 %vm7401_vm3, %v2080_v26  ;;  %v5156_v26 = vpop.permute.xlu1 %1184 }
 0x221   : > { %7475 = vst [vmem:[#allocation30_spill] sm:$0xff] %v5154_v24  ;;  %7476 = vst [vmem:[#allocation31_spill] sm:$0xff] %v5156_v26  ;;  %v2104_v55 = vmul.f32 %v5171_v27, %v4958_v61 }
 0x222   : > { %7477 = vst [vmem:[#allocation32_spill] sm:$0xff] %v5171_v27 }
 0x223   : > { %2310 = vmatmul.mubr.f32.gmra.mrb[40].mxu0 %v2079_v20  ;;  %v5164_v20 = vpop.permute.xlu0 %1037 }
 0x224   : > { %3988 = vmatprep.mubr.msk.f32.mxu0 %vm7401_vm3, %v2082_v10  ;;  %v2091_v10 = vmul.f32 %v5154_v24, %v4986_v31  ;;  %v5176_v21 = vpop.permute.xlu1 %1188 }
 0x225   : > { %7478 = vst [vmem:[#allocation33_spill] sm:$0xff] %v5176_v21 }
 0x227   : > { %2315 = vmatmul.mubr.f32.gmra.mrb[42].mxu0 %v2081_v51  ;;  %v1997_v51 = vld [vmem:[%s7302_s3 + $0x10] sm:$0x3]  ;;  %v5186_v11 = vpop.permute.xlu0 %1057 }
 0x228   : > { %3989 = vmatprep.mubr.msk.f32.mxu0 %vm7401_vm3, %v2092_v3  ;;  %v2093_v3 = vmul.f32 %v5154_v24, %v5001_v60  ;;  %v5182_v1 = vrot.slane %v1997_v51, %v4948_v54  ;;  %7480 = vst [vmem:[#allocation35_spill] sm:$0xff] %v5186_v11  ;;  %v5191_v17 = vpop.permute.xlu1 %1370  ;;  %v5196_v24 = vrot.slane %v1998_v53, %v4996_v34  ;;  %v7616_v38 = vld [vmem:[#allocation31_spill] sm:$0xff] }
 0x229   : > { %7481 = vst [vmem:[#allocation36_spill] sm:$0xff] %v5191_v17 }
 0x22a   : > { %7479 = vst [vmem:[#allocation34_spill] sm:$0xff] %v5182_v1  ;;  %7482 = vst [vmem:[#allocation37_spill] sm:$0xff] %v5196_v24  ;;  %v2116_v58 = vmul.f32 %v5196_v24, %v4958_v61 }
 0x22b   : > { %2320 = vmatmul.mubr.f32.gmra.mrb[44].mxu0 %v2091_v10  ;;  %v2103_v10 = vmul.f32 %v5182_v1, %v4986_v31  ;;  %v5199_v57 = vpop.permute.xlu0 %1077 }
 0x22c   : > { %3990 = vmatprep.mubr.msk.f32.mxu0 %vm7401_vm3, %v2094_v30  ;;  %v2106_v30 = vmul.f32 %v5171_v27, %v4993_v33  ;;  %7483 = vst [vmem:[#allocation38_spill] sm:$0xff] %v5199_v57  ;;  %v5208_v35 = vpop.permute.xlu1 %1062 }
 0x22d   : > { %7485 = vst [vmem:[#allocation40_spill] sm:$0xff] %v5208_v35 }
 0x22f   : > { %2325 = vmatmul.mubr.f32.gmra.mrb[46].mxu0 %v2093_v3  ;;  %v2105_v3 = vmul.f32 %v5182_v1, %v5001_v60 }
 0x230   : > { %3991 = vmatprep.mubr.msk.f32.mxu0 %vm7401_vm3, %v2104_v55  ;;  %v5204_v55 = vrot.slane %v1997_v51, %v4996_v34  ;;  %v5219_v51 = vpop.permute.xlu0 %1340 }
 0x232   : > { %7484 = vst [vmem:[#allocation39_spill] sm:$0xff] %v5204_v55  ;;  %v2115_v53 = vmul.f32 %v5204_v55, %v4986_v31  ;;  %v5228_v31 = vpop.permute.xlu1 %1067 }
 0x233   : > { %2330 = vmatmul.mubr.f32.gmra.mrb[48].mxu0 %v2103_v10  ;;  %v5213_v10 = vpop.f32.mrb[12].mxu0  ;;  %7490 = vst [vmem:[#allocation45_spill] sm:$0xff] %v5228_v31 }
 0x234   : > { %3992 = vmatprep.mubr.msk.f32.mxu0 %vm7401_vm3, %v2106_v30  ;;  %7486 = vst [vmem:[#allocation41_spill] sm:$0xff] %v5213_v10  ;;  %v2118_v30 = vmul.f32 %v5196_v24, %v4993_v33  ;;  %v5217_v27 = vpop.f32.mrb[13].mxu0  ;;  %v5231_v33 = vpop.permute.xlu0 %1349  ;;  %v7505_v10 = vmov 1  }
 0x235   : > { %7487 = vst [vmem:[#allocation42_spill] sm:$0xff] %v5217_v27  ;;  %v5221_v1 = vpop.f32.mrb[14].mxu0  ;;  %7492 = vst [vmem:[#allocation46_spill] sm:$0xff] %v5231_v33 }
 0x236   : > { %7488 = vst [vmem:[#allocation43_spill] sm:$0xff] %v5221_v1  ;;  %v5224_v61 = vpop.f32.mrb[15].mxu0  ;;  %v5233_v24 = vpop.permute.xlu1 %1196 }
 0x237   : > { %2335 = vmatmul.mubr.f32.gmra.mrb[50].mxu0 %v2105_v3  ;;  %7489 = vst [vmem:[#allocation44_spill] sm:$0xff] %v5224_v61  ;;  %v7491_v3 = vmov 0.0   ;;  %7493 = vst [vmem:[#allocation47_spill] sm:$0xff] %v5233_v24  ;;  %v7506_v24 = vmov 0  }
 0x238   : > { %3993 = vmatprep.mubr.msk.f32.mxu0 %vm7401_vm3, %v2116_v58  ;;  %v2117_v58 = vmul.f32 %v5204_v55, %v5001_v60  ;;  %v5235_v32 = vpop.permute.xlu0 %1352 }
 0x239   : > { %7494 = vst [vmem:[#allocation48_spill] sm:$0xff] %v5235_v32 }
 0x23b   : > { %2340 = vmatmul.mubr.f32.gmra.mrb[52].mxu0 %v2115_v53  ;;  %v5237_v53 = vpop.permute.xlu1 %1379 }
 0x23c   : > { %3994 = vmatprep.mubr.msk.f32.mxu0 %vm7401_vm3, %v2118_v30  ;;  %7495 = vst [vmem:[#allocation49_spill] sm:$0xff] %v5237_v53  ;;  %v5239_v4 = vpop.permute.xlu0 %1361 }
 0x23d   : > { %7496 = vst [vmem:[#allocation50_spill] sm:$0xff] %v5239_v4 }
 0x23f   : > { %2345 = vmatmul.mubr.f32.gmra.mrb[54].mxu0 %v2117_v58  ;;  %v5241_v30 = vpop.permute.xlu1 %1072 }
 0x240   : > { %2694 = vmatprep.mubr.f32.mxu0 %v7491_v3  ;;  %7497 = vst [vmem:[#allocation51_spill] sm:$0xff] %v5241_v30  ;;  %v5243_v63 = vpop.permute.xlu0 %1364 }
 0x241   : > { %7498 = vst [vmem:[#allocation52_spill] sm:$0xff] %v5243_v63 }
 0x243   : > { %v5245_v60 = vpop.permute.xlu1 %1200 }
 0x244   : > { %7499 = vst [vmem:[#allocation53_spill] sm:$0xff] %v5245_v60  ;;  %v5247_v55 = vpop.permute.xlu0 %1373 }
 0x245   : > { %7500 = vst [vmem:[#allocation54_spill] sm:$0xff] %v5247_v55 }
 0x247   : > { %v5249_v58 = vpop.permute.xlu1 %1204 }
 0x248   : > { %7501 = vst [vmem:[#allocation55_spill] sm:$0xff] %v5249_v58  ;;  %v5251_v3 = vpop.permute.xlu0 %1376 }
 0x249   : > { %7502 = vst [vmem:[#allocation56_spill] sm:$0xff] %v5251_v3 }
 0x24b   : > { %v5253_v56 = vpop.permute.xlu1 %1385 }
 0x24c   : > { %7503 = vst [vmem:[#allocation57_spill] sm:$0xff] %v5253_v56  ;;  %v5255_v59 = vpop.permute.xlu0 %1382 }
 0x24d   : > { %7504 = vst [vmem:[#allocation58_spill] sm:$0xff] %v5255_v59 }
 0x266   : > { %v637_v61 = vpop.trf.xlu1 }
 0x267   : > { %v669_v1 = vpop.trf.xlu0  ;;  %687 = vperm.xlu0 %4256, %v637_v61  }
 0x268   : > { %767 = vperm.xlu1 %4258, %v669_v1  }
 0x26a   : > { %v638_v27 = vpop.trf.xlu1 }
 0x26b   : > { %4257 = vset.pattern.permute.xlu0 %v7505_v10  ;;  %v670_v31 = vpop.trf.xlu0 }
 0x26c   : > { %4259 = vset.pattern.permute.xlu1 %v7505_v10  ;;  %820 = vperm.xlu0 %4257, %v637_v61  }
 0x26d   : > { %884 = vperm.xlu1 %4259, %v669_v1  }
 0x26e   : > { %v639_v53 = vpop.trf.xlu1 }
 0x270   : > { %824 = vperm.xlu0 %4257, %v638_v27  }
 0x271   : > { %4260 = vset.pattern.permute.xlu1 %v7506_v24 }
 0x272   : > { %692 = vperm.xlu1 %4260, %v638_v27   ;;  %v640_v3 = vpop.trf.xlu1 }
 0x274   : > { %4261 = vset.pattern.permute.xlu0 %v7506_v24 }
 0x275   : > { %772 = vperm.xlu0 %4261, %v670_v31  }
 0x276   : > { %4262 = vset.pattern.permute.xlu1 %v7505_v10  ;;  %v641_v55 = vpop.trf.xlu1 }
 0x277   : > { %888 = vperm.xlu1 %4262, %v670_v31  }
 0x279   : > { %697 = vperm.xlu0 %4261, %v639_v53  }
 0x27a   : > { %v642_v63 = vpop.trf.xlu1 }
 0x27b   : > { %836 = vperm.xlu1 %4262, %v641_v55  }
 0x27d   : > { %4263 = vset.pattern.permute.xlu0 %v7505_v10 }
 0x27e   : > { %828 = vperm.xlu0 %4263, %v639_v53   ;;  %v643_v1 = vpop.trf.xlu1 }
 0x27f   : > { %4267 = vset.pattern.permute.xlu1 %v7506_v24 }
 0x280   : > { %712 = vperm.xlu1 %4267, %v642_v63  }
 0x282   : > { %4264 = vset.pattern.permute.xlu0 %v7506_v24  ;;  %v644_v27 = vpop.trf.xlu1 }
 0x283   : > { %702 = vperm.xlu0 %4264, %v640_v3  }
 0x284   : > { %722 = vperm.xlu1 %4267, %v644_v27  }
 0x286   : > { %v645_v61 = vpop.trf.xlu1 }
 0x287   : > { %4265 = vset.pattern.permute.xlu0 %v7505_v10 }
 0x288   : > { %832 = vperm.xlu0 %4265, %v640_v3   ;;  %4271 = vset.pattern.permute.xlu1 %v7505_v10 }
 0x289   : > { %848 = vperm.xlu1 %4271, %v644_v27  }
 0x28a   : > { %v646_v31 = vpop.trf.xlu1 }
 0x28c   : > { %4266 = vset.pattern.permute.xlu0 %v7506_v24 }
 0x28d   : > { %707 = vperm.xlu0 %4266, %v641_v55   ;;  %4272 = vset.pattern.permute.xlu1 %v7506_v24 }
 0x28e   : > { %727 = vperm.xlu1 %4272, %v645_v61   ;;  %v647_v53 = vpop.trf.xlu1 }
 0x291   : > { %4268 = vset.pattern.permute.xlu0 %v7505_v10 }
 0x292   : > { %840 = vperm.xlu0 %4268, %v642_v63   ;;  %4273 = vset.pattern.permute.xlu1 %v7505_v10  ;;  %v648_v3 = vpop.trf.xlu1 }
 0x293   : > { %852 = vperm.xlu1 %4273, %v645_v61  }
 0x296   : > { %4269 = vset.pattern.permute.xlu0 %v7506_v24  ;;  %v649_v63 = vpop.trf.xlu1 }
 0x297   : > { %717 = vperm.xlu0 %4269, %v643_v1   ;;  %856 = vperm.xlu1 %4273, %v646_v31  }
 0x29a   : > { %v650_v55 = vpop.trf.xlu1 }
 0x29b   : > { %4270 = vset.pattern.permute.xlu0 %v7505_v10  ;;  %4276 = vset.pattern.permute.xlu1 %v7506_v24 }
 0x29c   : > { %844 = vperm.xlu0 %4270, %v643_v1   ;;  %742 = vperm.xlu1 %4276, %v648_v3  }
 0x29e   : > { %v651_v1 = vpop.trf.xlu1 }
 0x2a0   : > { %4274 = vset.pattern.permute.xlu0 %v7506_v24  ;;  %4277 = vset.pattern.permute.xlu1 %v7505_v10 }
 0x2a1   : > { %732 = vperm.xlu0 %4274, %v646_v31   ;;  %864 = vperm.xlu1 %4277, %v648_v3  }
 0x2a2   : > { %v652_v27 = vpop.trf.xlu1 }
 0x2a5   : > { %737 = vperm.xlu0 %4274, %v647_v53   ;;  %4278 = vset.pattern.permute.xlu1 %v7506_v24 }
 0x2a6   : > { %747 = vperm.xlu1 %4278, %v649_v63  }
 0x2a9   : > { %4275 = vset.pattern.permute.xlu0 %v7505_v10 }
 0x2aa   : > { %860 = vperm.xlu0 %4275, %v647_v53   ;;  %4279 = vset.pattern.permute.xlu1 %v7505_v10 }
 0x2ab   : > { %868 = vperm.xlu1 %4279, %v649_v63  }
 0x2ae   : > { %4280 = vset.pattern.permute.xlu0 %v7506_v24 }
 0x2af   : > { %872 = vperm.xlu1 %4279, %v650_v55   ;;  %752 = vperm.xlu0 %4280, %v650_v55  }
 0x2b3   : > { %4282 = vset.pattern.permute.xlu1 %v7506_v24  ;;  %757 = vperm.xlu0 %4280, %v651_v1  }
 0x2b4   : > { %762 = vperm.xlu1 %4282, %v652_v27  }
 0x2b7   : > { %4281 = vset.pattern.permute.xlu0 %v7505_v10 }
 0x2b8   : > { %876 = vperm.xlu0 %4281, %v651_v1   ;;  %4283 = vset.pattern.permute.xlu1 %v7505_v10 }
 0x2b9   : > { %880 = vperm.xlu1 %4283, %v652_v27  }
 0x2bc   : > { %4284 = vset.pattern.permute.xlu0 %v7506_v24 }
 0x2bd   : > { %4285 = vset.pattern.permute.xlu1 %v7506_v24 }
 0x2c6   : > { %v5285_v61 = vpop.f32.mrb[16].mxu0 }
 0x2c7   : > { %7507 = vst [vmem:[#allocation59_spill] sm:$0xff] %v5285_v61  ;;  %v2253_v31 = vpop.f32.mrb[17].mxu0 }
 0x2ca   : > { %v5287_v53 = vpop.f32.mrb[18].mxu0 }
 0x2cb   : > { %7508 = vst [vmem:[#allocation60_spill] sm:$0xff] %v5287_v53  ;;  %v2258_v3 = vpop.f32.mrb[19].mxu0  ;;  %v2353_v10 = vsel %vm7401_vm3, %v5287_v53, -inf }
 0x2cc   : > { %v2350_v3 = vsel %vm7401_vm3, %v5285_v61, -inf }
 0x2ce   : > { %v5289_v63 = vpop.f32.mrb[20].mxu0 }
 0x2cf   : > { %7509 = vst [vmem:[#allocation61_spill] sm:$0xff] %v5289_v63  ;;  %v2263_v55 = vpop.f32.mrb[21].mxu0  ;;  %v2356_v31 = vsel %vm7401_vm3, %v5289_v63, -inf }
 0x2d2   : > { %v5291_v35 = vpop.f32.mrb[22].mxu0 }
 0x2d3   : > { %7510 = vst [vmem:[#allocation62_spill] sm:$0xff] %v5291_v35  ;;  %v2268_v50 = vpop.f32.mrb[23].mxu0 }
 0x2d4   : > { %v2359_v50 = vsel %vm7401_vm3, %v5291_v35, -inf }
 0x2d6   : > { %v5293_v1 = vpop.f32.mrb[24].mxu0 }
 0x2d7   : > { %7511 = vst [vmem:[#allocation63_spill] sm:$0xff] %v5293_v1  ;;  %v2273_v27 = vpop.f32.mrb[25].mxu0  ;;  %2354 = vmax.xlane.f32.xlu0 %v2353_v10  ;;  %v2362_v10 = vsel %vm7401_vm3, %v5293_v1, -inf }
 0x2da   : > { %v5297_v24 = vpop.f32.mrb[26].mxu0 }
 0x2db   : > { %7512 = vst [vmem:[#allocation64_spill] sm:$0xff] %v5297_v24  ;;  %v2278_v4 = vpop.f32.mrb[27].mxu0  ;;  %2357 = vmax.xlane.f32.xlu0 %v2356_v31 }
 0x2dd   : > { %2351 = vmax.xlane.f32.xlu1 %v2350_v3  ;;  %v2365_v3 = vsel %vm7401_vm3, %v5297_v24, -inf }
 0x2de   : > { %v5303_v55 = vpop.f32.mrb[28].mxu0 }
 0x2df   : > { %7513 = vst [vmem:[#allocation65_spill] sm:$0xff] %v5303_v55  ;;  %v2283_v17 = vpop.f32.mrb[29].mxu0  ;;  %2360 = vmax.xlane.f32.xlu0 %v2359_v50  ;;  %v5323_v50 = vrot.slane %v4969_v9, %v4948_v54 }
 0x2e0   : > { %v2368_v17 = vsel %vm7401_vm3, %v5303_v55, -inf }
 0x2e2   : > { %v5307_v27 = vpop.f32.mrb[30].mxu0 }
 0x2e3   : > { %7514 = vst [vmem:[#allocation66_spill] sm:$0xff] %v5307_v27  ;;  %v2288_v53 = vpop.f32.mrb[31].mxu0  ;;  %2363 = vmax.xlane.f32.xlu0 %v2362_v10  ;;  %v5331_v10 = vrot.slane %v4971_v12, %v4948_v54  ;;  %v2371_v32 = vsel %vm7401_vm3, %v5307_v27, -inf }
 0x2e4   : > { %v5327_v53 = vrot.slane %v4969_v9, %v4996_v34 }
 0x2e6   : > { %v5311_v4 = vpop.f32.mrb[32].mxu0  ;;  %v5313_v31 = vpop.permute.xlu0 %687 }
 0x2e7   : > { %7515 = vst [vmem:[#allocation67_spill] sm:$0xff] %v5311_v4  ;;  %v2293_v63 = vpop.f32.mrb[33].mxu0  ;;  %2366 = vmax.xlane.f32.xlu0 %v2365_v3  ;;  %v768_v61 = vpop.permute.xlu1 %767  ;;  %v2374_v6 = vsel %vm7401_vm3, %v5311_v4, -inf }
 0x2e8   : > { %v5335_v63 = vrot.slane %v4971_v12, %v4996_v34  ;;  %v815_v1 = vmul.f32 %v5323_v50, %v768_v61  ;;  %v816_v21 = vmul.f32 %v5331_v10, %v768_v61 }
 0x2ea   : > { %v5317_v35 = vpop.f32.mrb[34].mxu0 }
 0x2eb   : > { %7516 = vst [vmem:[#allocation68_spill] sm:$0xff] %v5317_v35  ;;  %v2298_v3 = vpop.f32.mrb[35].mxu0  ;;  %v5337_v24 = vpop.permute.xlu0 %820  ;;  %2369 = vmax.xlane.f32.xlu0 %v2368_v17 }
 0x2ec   : > { %v885_v55 = vpop.permute.xlu1 %884 }
 0x2ed   : > { %v931_v9 = vmul.f32 %v5327_v53, %v885_v55  ;;  %v932_v5 = vmul.f32 %v5335_v63, %v885_v55 }
 0x2ee   : > { %v5343_v11 = vpop.f32.mrb[36].mxu0 }
 0x2ef   : > { %7517 = vst [vmem:[#allocation69_spill] sm:$0xff] %v5343_v11  ;;  %v5347_v12 = vadd.f32 %v931_v9, %v815_v1  ;;  %v5349_v3 = vadd.f32 %v932_v5, %v816_v21  ;;  %v2303_v26 = vpop.f32.mrb[37].mxu0  ;;  %v5351_v17 = vpop.permute.xlu0 %824  ;;  %2372 = vmax.xlane.f32.xlu0 %v2371_v32  ;;  %v2380_v61 = vsel %vm7401_vm3, %v5343_v11, -inf  ;;  %v2377_v1 = vsel %vm7401_vm3, %v5317_v35, -inf  ;;  %v989_v35 = vld [vmem:[%s7301_s2] sm:$0xf] }
 0x2f0   : > { %2381 = vmax.xlane.f32.xlu1 %v2380_v61  ;;  %v1088_v47 = vrot.slane %v989_v35, %v5023_v7 }
 0x2f1   : > { %7518 = vst [vmem:[#allocation70_spill] sm:$0xff] %v5347_v12  ;;  %7519 = vst [vmem:[#allocation71_spill] sm:$0xff] %v5349_v3  ;;  %v5355_v0 = vpop.permute.xlu1 %692  ;;  %v1214_v12 = vrot.slane %v989_v35, %v5046_v23 }
 0x2f2   : > { %v5357_v55 = vpop.f32.mrb[38].mxu0 }
 0x2f3   : > { %7520 = vst [vmem:[#allocation72_spill] sm:$0xff] %v5357_v55  ;;  %v2308_v27 = vpop.f32.mrb[39].mxu0  ;;  %2375 = vmax.xlane.f32.xlu0 %v2374_v6  ;;  %v2383_v5 = vsel %vm7401_vm3, %v5357_v55, -inf  ;;  %v5408_v23 = vrot.slane %v1214_v12, %v4996_v34 }
 0x2f4   : > { %v5363_v21 = vpop.permute.xlu0 %772  ;;  %2384 = vmax.xlane.f32.xlu1 %v2383_v5 }
 0x2f5   : > { %vm1228_vm8 = vcmp.eq.f32.partialorder %v4910_v36, %v5408_v23  ;;  %vm1226_vm9 = vcmp.eq.f32.partialorder %v4920_v41, %v5408_v23  ;;  %vm1234_vm1 = vcmp.eq.f32.partialorder %v4926_v44, %v5408_v23 }
 0x2f6   : > { %v5365_v32 = vpop.f32.mrb[40].mxu0  ;;  %v5367_v26 = vpop.permute.xlu1 %888 }
 0x2f7   : > { %7521 = vst [vmem:[#allocation73_spill] sm:$0xff] %v5365_v32  ;;  %v2313_v9 = vpop.f32.mrb[41].mxu0  ;;  %2378 = vmax.xlane.f32.xlu0 %v2377_v1  ;;  %v2386_v61 = vsel %vm7401_vm3, %v5365_v32, -inf }
 0x2f8   : > { %v5373_v27 = vpop.permute.xlu0 %697  ;;  %2387 = vmax.xlane.f32.xlu1 %v2386_v61 }
 0x2fa   : > { %v5375_v6 = vpop.f32.mrb[42].mxu0  ;;  %v5377_v4 = vpop.permute.xlu1 %836 }
 0x2fb   : > { %7522 = vst [vmem:[#allocation74_spill] sm:$0xff] %v5375_v6  ;;  %7523 = vst [vmem:[#allocation75_spill] sm:$0xff] %v5377_v4  ;;  %v2318_v5 = vpop.f32.mrb[43].mxu0  ;;  %v2389_v55 = vsel %vm7401_vm3, %v5375_v6, -inf  ;;  %v1084_v6 = vrot.slane %v989_v35, %v4948_v54 }
 0x2fc   : > { %2390 = vmax.xlane.f32.xlu1 %v2389_v55  ;;  %v1210_v5 = vrot.slane %v989_v35, %v4996_v34  ;;  %v5416_v35 = vrot.slane %v1088_v47, %v4948_v54 }
 0x2fd   : > { %v5384_v1 = vpop.permute.xlu0 %828 }
 0x2fe   : > { %v5386_v9 = vpop.f32.mrb[44].mxu0  ;;  %vm1100_vm11 = vcmp.eq.f32.partialorder %v5080_v22, %v5416_v35  ;;  %vm1108_vm0 = vcmp.eq.f32.partialorder %v4922_v42, %v5416_v35  ;;  %vm1102_vm4 = vcmp.eq.f32.partialorder %v5095_v8, %v5416_v35  ;;  %vm1114_vm12 = vcmp.eq.f32.partialorder %v4960_v62, %v5416_v35 }
 0x2ff   : > { %7524 = vst [vmem:[#allocation76_spill] sm:$0xff] %v5386_v9  ;;  %v2323_v32 = vpop.f32.mrb[45].mxu0  ;;  %v5388_v11 = vpop.permute.xlu1 %712  ;;  %v2392_v61 = vsel %vm7401_vm3, %v5386_v9, -inf  ;;  %vm7566_vm14 = vcmp.eq.f32.partialorder %v4998_v48, %v5416_v35 }
 0x300   : > { %7525 = vst [vmem:[#allocation77_spill] sm:$0xff] %v5388_v11  ;;  %2393 = vmax.xlane.f32.xlu1 %v2392_v61  ;;  %v5403_v11 = vrot.slane %v1210_v5, %v4996_v34  ;;  %v5411_v61 = vrot.slane %v1084_v6, %v4948_v54 }
 0x302   : > { %v5395_v4 = vpop.f32.mrb[46].mxu0  ;;  %v5397_v55 = vpop.permute.xlu0 %702  ;;  %vm1227_vm5 = vcmp.eq.f32.partialorder %v4910_v36, %v5403_v11  ;;  %vm1225_vm6 = vcmp.eq.f32.partialorder %v4920_v41, %v5403_v11  ;;  %vm1099_vm7 = vcmp.eq.f32.partialorder %v5080_v22, %v5411_v61  ;;  %vm1101_vm15 = vcmp.eq.f32.partialorder %v5095_v8, %v5411_v61 }
 0x303   : > { %7526 = vst [vmem:[#allocation78_spill] sm:$0xff] %v5395_v4  ;;  %v2328_v3 = vpop.f32.mrb[47].mxu0  ;;  %v5400_v32 = vpop.permute.xlu1 %722  ;;  %v2395_v9 = vsel %vm7401_vm3, %v5395_v4, -inf  ;;  %vm5454_vm2 = vmor %vm1099_vm7, %vm1225_vm6  ;;  %vm1233_vm10 = vcmp.eq.f32.partialorder %v4926_v44, %v5403_v11  ;;  %v899_v44 = vmul.f32 %v5327_v53, %v5337_v24  ;;  %v933_v8 = vmul.f32 %v5327_v53, %v5367_v26 }
 0x304   : > { %7527 = vst [vmem:[#allocation79_spill] sm:$0xff] %v5400_v32  ;;  %2396 = vmax.xlane.f32.xlu1 %v2395_v9  ;;  %vm5473_vm6 = vmor %vm1100_vm11, %vm1226_vm9  ;;  %vm1240_vm9 = vcmp.eq.f32.partialorder %v4973_v13, %v5408_v23  ;;  %v7549_v9 = vmov 0  ;;  %v817_v41 = vmul.f32 %v5323_v50, %v5363_v21 }
 0x305   : > { %vm5495_vm11 = vmor %vm1101_vm15, %vm1227_vm5 }
 0x306   : > { %v5413_v33 = vpop.f32.mrb[48].mxu0  ;;  %vm5507_vm7 = vmor %vm1108_vm0, %vm1234_vm1  ;;  %vm1242_vm0 = vcmp.eq.f32.partialorder %v5018_v2, %v5408_v23 }
 0x307   : > { %7528 = vst [vmem:[#allocation80_spill] sm:$0xff] %v5413_v33  ;;  %v2333_v7 = vpop.f32.mrb[49].mxu0  ;;  %v5418_v3 = vpop.permute.xlu0 %832  ;;  %v2398_v5 = vsel %vm7401_vm3, %v5413_v33, -inf  ;;  %vm5520_vm15 = vmor %vm1102_vm4, %vm1228_vm8  ;;  %v786_v33 = vmul.f32 %v5331_v10, %v5355_v0  ;;  %vm1103_vm4 = vcmp.eq.f32.partialorder %v5115_v18, %v5411_v61 }
 0x308   : > { %v5428_v34 = vpop.permute.xlu1 %848  ;;  %2399 = vmax.xlane.f32.xlu1 %v2398_v5  ;;  %v900_v7 = vmul.f32 %v5335_v63, %v5337_v24  ;;  %vm5536_vm1 = vmand %vm5454_vm2, %vm1387_vm13  ;;  %vm7551_vm2 = vcmp.eq.s32.totalorder %v4916_v39, 1  ;;  %v785_v39 = vmul.f32 %v5323_v50, %v5355_v0  ;;  %v783_v0 = vmul.f32 %v5323_v50, %v5313_v31 }
 0x309   : > { %vm5544_vm8 = vmand %vm5473_vm6, %vm1387_vm13  ;;  %vm7546_vm13 = vcmp.eq.f32.partialorder %v4922_v42, %v5411_v61 }
 0x30a   : > { %v5445_v47 = vpop.f32.mrb[50].mxu0  ;;  %vm5564_vm6 = vmor %vm7546_vm13, %vm1233_vm10  ;;  %vm7569_vm13 = vcmp.eq.f32.partialorder %v4924_v43, %v5408_v23 }
 0x30b   : > { %7529 = vst [vmem:[#allocation81_spill] sm:$0xff] %v5445_v47  ;;  %v2338_v12 = vpop.f32.mrb[51].mxu0  ;;  %v2401_v6 = vsel %vm7401_vm3, %v5445_v47, -inf  ;;  %v784_v47 = vmul.f32 %v5331_v10, %v5313_v31  ;;  %vm5583_vm10 = vmand %vm5495_vm11, %vm7551_vm2  ;;  %v903_v31 = vmul.f32 %v5327_v53, %v5384_v1 }
 0x30c   : > { %v5479_v5 = vpop.permute.xlu0 %707  ;;  %2402 = vmax.xlane.f32.xlu1 %v2401_v6  ;;  %v5806_v12 = vadd.f32 %v933_v8, %v817_v41  ;;  %v905_v8 = vmul.f32 %v5327_v53, %v5418_v3 }
 0x30d   : > { %v5499_v22 = vpop.permute.xlu1 %727 }
 0x30e   : > { %7536 = vst [vmem:[#allocation82_spill] sm:$0xff] %v5499_v22  ;;  %v5530_v4 = vpop.f32.mrb[52].mxu0 }
 0x30f   : > { %7541 = vst [vmem:[#allocation83_spill] sm:$0xff] %v5530_v4  ;;  %v2343_v54 = vpop.f32.mrb[53].mxu0  ;;  %v2404_v22 = vsel %vm7401_vm3, %v5530_v4, -inf  ;;  %vm5574_vm3 = vmor %vm1114_vm12, %vm1240_vm9  ;;  %v902_v4 = vmul.f32 %v5335_v63, %v5351_v17  ;;  %vm7562_vm12 = vcmp.eq.f32.partialorder %v4973_v13, %v5403_v11  ;;  %v901_v13 = vmul.f32 %v5327_v53, %v5351_v17 }
 0x310   : > { %v7550_v9 = vsel %vm5574_vm3, 4294967295, %v7549_v9  ;;  %v936_v54 = vadd.f32 %v900_v7, %v784_v47  ;;  %2405 = vmax.xlane.f32.xlu0 %v2404_v22  ;;  %vm7554_vm9 = vmmov %vm7551_vm2  ;;  %vm7557_vm2 = vcmp.eq.f32.partialorder %v4924_v43, %v5403_v11  ;;  %v934_v22 = vmul.f32 %v5335_v63, %v5367_v26 }
 0x311   : > { %vm5599_vm11 = vmand %vm5520_vm15, %vm7554_vm9  ;;  %v5612_v24 = vpop.permute.xlu0 %840  ;;  %v938_v7 = vadd.f32 %v902_v4, %v786_v33  ;;  %vm7563_vm9 = vcmp.eq.f32.partialorder %v4960_v62, %v5411_v61  ;;  %v7567_v4 = vmov 0  ;;  %v935_v17 = vadd.f32 %v899_v44, %v783_v0  ;;  %v7699_v62 = vld [vmem:[#allocation52_spill] sm:$0xff] }
 0x312   : > { %vm5625_vm5 = vmor %vm1103_vm4, %vm7557_vm2  ;;  %v5635_v6 = vpop.f32.mrb[54].mxu0  ;;  %v5637_v32 = vpop.permute.xlu1 %852  ;;  %v937_v44 = vadd.f32 %v901_v13, %v785_v39  ;;  %v788_v0 = vmul.f32 %v5331_v10, %v5373_v27  ;;  %v792_v26 = vmul.f32 %v5331_v10, %v5479_v5 }
 0x313   : > { %7560 = vst [vmem:[#allocation84_spill] sm:$0xff] %v5635_v6  ;;  %7561 = vst [vmem:[#allocation85_spill] sm:$0xff] %v5637_v32  ;;  %v904_v6 = vmul.f32 %v5335_v63, %v5384_v1  ;;  %v2348_v43 = vpop.f32.mrb[55].mxu0  ;;  %v5699_v1 = vsel %vm5544_vm8, %v936_v54, -1e+30  ;;  %v787_v54 = vmul.f32 %v5323_v50, %v5373_v27  ;;  %vm7593_vm8 = vcmp.eq.s32.totalorder %v4934_v49, 1 }
 0x314   : > { %vm5649_vm15 = vmor %vm7563_vm9, %vm7562_vm12  ;;  %vm7570_vm12 = vcmp.eq.f32.partialorder %v5115_v18, %v5416_v35  ;;  %v7575_v18 = vmov 0  ;;  %7577 = vst [vmem:[#allocation86_spill] sm:$0xff] %v5699_v1  ;;  %v818_v43 = vmul.f32 %v5331_v10, %v5363_v21  ;;  %v5744_v27 = vsel %vm5599_vm11, %v938_v7, -1e+30  ;;  %v7596_v32 = vld [vmem:[#allocation71_spill] sm:$0xff] }
 0x315   : > { %vm5659_vm4 = vmor %vm7566_vm14, %vm1242_vm0  ;;  %vm7573_vm0 = vcmp.eq.f32.partialorder %v4912_v37, %v5403_v11  ;;  %vm7411_vm14 = vcmp.eq.s32.totalorder %v5253_v56, 1  ;;  %7586 = vst [vmem:[#allocation87_spill] sm:$0xff] %v5744_v27  ;;  %v939_v7 = vadd.f32 %v903_v31, %v787_v54  ;;  %v5775_v47 = vsel %vm5536_vm1, %v935_v17, -1e+30 }
 0x316   : > { %v7568_v4 = vsel %vm5659_vm4, 4294967295, %v7567_v4  ;;  %vm5670_vm9 = vmor %vm7570_vm12, %vm7569_vm13  ;;  %vm7574_vm13 = vcmp.eq.f32.partialorder %v5128_v15, %v5411_v61  ;;  %vm7582_vm4 = vcmp.eq.f32.partialorder %v5249_v58, %v5408_v23  ;;  %v970_v39 = vadd.f32 %v934_v22, %v818_v43  ;;  %v5746_v13 = vpop.permute.xlu0 %717  ;;  %v7590_v43 = vld [vmem:[#allocation46_spill] sm:$0xff]  ;;  %7599 = vst [vmem:[#allocation71_spill] sm:$0xff] %v5806_v12 }
 0x317   : > { %vm5690_vm12 = vmor %vm7574_vm13, %vm7573_vm0  ;;  %vm7578_vm0 = vcmp.eq.f32.partialorder %v5245_v60, %v5408_v23  ;;  %vm7579_vm13 = vcmp.eq.f32.partialorder %v5241_v30, %v5416_v35  ;;  %v5748_v60 = vpop.permute.xlu1 %856  ;;  %v940_v22 = vadd.f32 %v904_v6, %v788_v0  ;;  %v906_v6 = vmul.f32 %v5335_v63, %v5418_v3  ;;  %v7600_v0 = vld [vmem:[#allocation6_spill] sm:$0xff]  ;;  %v7615_v3 = vld [vmem:[#allocation28_spill] sm:$0xff] }
 0x318   : > { %v7576_v18 = vsel %vm5690_vm12, 4294967295, %v7575_v18  ;;  %vm5711_vm2 = vmor %vm7579_vm13, %vm7578_vm0  ;;  %vm7583_vm12 = vcmp.eq.f32.partialorder %v5199_v57, %v5416_v35  ;;  %vm7591_vm13 = vcmp.eq.s32.totalorder %v5255_v59, 1  ;;  %v5800_v17 = vsel %vm5583_vm10, %v937_v44, -1e+30  ;;  %v1845_v30 = vld [vmem:[%s7308_s9 + $0x28] sm:$0xff] }
 0x319   : > { %vm5737_vm3 = vmor %vm7583_vm12, %vm7582_vm4  ;;  %vm7587_vm12 = vcmp.eq.s32.totalorder %v5219_v51, 1  ;;  %v790_v44 = vmul.f32 %v5331_v10, %v5397_v55  ;;  %v909_v56 = vmul.f32 %v5327_v53, %v5612_v24 }
 0x31a   : > { %vm5758_vm0 = vmand %vm5625_vm5, %vm7587_vm12  ;;  %vm7592_vm12 = vcmask 130048  }
 0x31b   : > { %vm1438_vm5 = vmand %vm5711_vm2, %vm7591_vm13  ;;  %v5779_v21 = vsel %vm7592_vm12, %v5699_v1, -inf  ;;  %v7601_v1 = vld [vmem:[#allocation20_spill] sm:$0xff]  ;;  %v5858_v41 = vsel %vm5758_vm0, %v939_v7, -1e+30  ;;  %vm7621_vm0 = vcmp.eq.f32.partialorder %v4998_v48, %v5411_v61  ;;  %v789_v7 = vmul.f32 %v5323_v50, %v5397_v55 }
 0x31c   : > { %vm5787_vm11 = vmand %vm5507_vm7, %vm7593_vm8  ;;  %v5796_v36 = vsel %vm1438_vm5, %v7596_v32, -1e+30  ;;  %v845_v32 = vpop.permute.xlu0 %844  ;;  %v914_v48 = vmul.f32 %v5335_v63, %v5428_v34  ;;  %v7630_v55 = vmov 0  ;;  %vm7642_vm7 = vnez %v7568_v4 }
 0x31d   : > { %vm1440_vm1 = vmand %vm5737_vm3, %vm7411_vm14  ;;  %7597 = vst [vmem:[#allocation46_spill] sm:$0xff] %v5796_v36  ;;  %vm7602_vm3 = vcmp.eq.s32.totalorder %v5219_v51, 1  ;;  %v941_v49 = vadd.f32 %v905_v8, %v789_v7  ;;  %v913_v4 = vmul.f32 %v5327_v53, %v5428_v34  ;;  %v7718_v59 = vmax.f32 %v5775_v47, %v5858_v41 }
 0x31e   : > { %vm7598_vm2 = vmmov %vm7592_vm12  ;;  %v5816_v42 = vsel %vm1440_vm1, %v970_v39, -1e+30  ;;  %vm7608_vm12 = vnez %v7550_v9  ;;  %v7617_v9 = vld [vmem:[#allocation75_spill] sm:$0xff] }
 0x31f   : > { %v5804_v54 = vsel %vm7598_vm2, %v5744_v27, -inf  ;;  %vm1410_vm13 = vmand %vm5670_vm9, %vm7602_vm3  ;;  %7603 = vst [vmem:[#allocation6_spill] sm:$0xff] %v5816_v42  ;;  %vm7607_vm9 = vcmp.eq.s32.totalorder %v4979_v29, 1  ;;  %vm7611_vm2 = vcmp.eq.f32.partialorder %v4912_v37, %v5408_v23  ;;  %vm7612_vm3 = vcmp.eq.f32.partialorder %v5128_v15, %v5416_v35  ;;  %v5864_v27 = vpop.permute.xlu1 %742  ;;  %v1844_v42 = vld [vmem:[%s7308_s9 + $0x20] sm:$0xff] }
 0x320   : > { %vm7604_vm10 = vmmov %vm7593_vm8  ;;  %v908_v39 = vmul.f32 %v5335_v63, %v7617_v9  ;;  %v5860_v37 = vsel %vm1410_vm13, %v940_v22, -1e+30  ;;  %v910_v15 = vmul.f32 %v5335_v63, %v5612_v24  ;;  %7619 = vst [vmem:[#allocation28_spill] sm:$0xff] %v5864_v27  ;;  %v791_v22 = vmul.f32 %v5323_v50, %v5479_v5  ;;  %v7649_v24 = vld [vmem:[#allocation79_spill] sm:$0xff]  ;;  %1868 = vperm.xlu1 %4285, %v1844_v42  }
 0x321   : > { %vm5828_vm5 = vmand %vm5564_vm6, %vm7604_vm10  ;;  %7618 = vst [vmem:[#allocation20_spill] sm:$0xff] %v5860_v37  ;;  %v907_v5 = vmul.f32 %v5327_v53, %v7617_v9  ;;  %vm7641_vm8 = vcmp.eq.s32.totalorder %v5051_v25, 1  ;;  %v798_v33 = vmul.f32 %v5331_v10, %v7649_v24  ;;  %v912_v9 = vmul.f32 %v5335_v63, %v845_v32  ;;  %v7727_v27 = vld [vmem:[#allocation35_spill] sm:$0xff] }
 0x322   : > { %vm5836_vm1 = vmand %vm7608_vm12, %vm7607_vm9  ;;  %vm7620_vm12 = vcmp.eq.f32.partialorder %v5018_v2, %v5403_v11  ;;  %v942_v2 = vadd.f32 %v906_v6, %v790_v44  ;;  %vm7628_vm9 = vcmp.eq.f32.partialorder %v4928_v45, %v5408_v23  ;;  %v7632_v6 = vld [vmem:[#allocation48_spill] sm:$0xff] }
 0x323   : > { %vm5846_vm14 = vmor %vm7612_vm3, %vm7611_vm2  ;;  %vm7629_vm3 = vcmp.eq.f32.partialorder %v4940_v52, %v5416_v35  ;;  %v950_v58 = vadd.f32 %v914_v48, %v798_v33  ;;  %v943_v34 = vadd.f32 %v907_v5, %v791_v22  ;;  %v6014_v57 = vpop.permute.xlu1 %864  ;;  %v7675_v48 = vld [vmem:[#allocation36_spill] sm:$0xff]  ;;  %v911_v33 = vmul.f32 %v5327_v53, %v845_v32 }
 0x324   : > { %vm5877_vm13 = vmor %vm7621_vm0, %vm7620_vm12  ;;  %vm7624_vm12 = vcmp.eq.s32.totalorder %v4918_v40, 1  ;;  %vm7625_vm0 = vnez %v7576_v18  ;;  %v7633_v18 = vld [vmem:[#allocation77_spill] sm:$0xff]  ;;  %1873 = vperm.xlu1 %4285, %v1845_v30   ;;  %v796_v32 = vmul.f32 %v5331_v10, %v5746_v13  ;;  %v7689_v30 = vld [vmem:[#allocation7_spill] sm:$0xff]  ;;  %v921_v8 = vmul.f32 %v5327_v53, %v6014_v57 }
 0x325   : > { %vm5897_vm2 = vmand %vm7625_vm0, %vm7624_vm12  ;;  %v793_v44 = vmul.f32 %v5323_v50, %v7633_v18  ;;  %v794_v36 = vmul.f32 %v5331_v10, %v7633_v18  ;;  %vm7634_vm12 = vcmp.eq.s32.totalorder %v4979_v29, 1  ;;  %vm7638_vm0 = vcmp.eq.s32.totalorder %v4918_v40, 1 }
 0x326   : > { %vm5907_vm6 = vmor %vm7629_vm3, %vm7628_vm9  ;;  %v7647_v40 = vmov 0  ;;  %v944_v18 = vadd.f32 %v908_v39, %v792_v26  ;;  %v7658_v39 = vld [vmem:[#allocation85_spill] sm:$0xff] }
 0x327   : > { %v7631_v55 = vsel %vm5907_vm6, 4294967295, %v7630_v55  ;;  %vm7635_vm9 = vmmov %vm5649_vm15  ;;  %v946_v26 = vadd.f32 %v910_v15, %v794_v36  ;;  %v916_v7 = vmul.f32 %v5335_v63, %v7658_v39  ;;  %v915_v5 = vmul.f32 %v5327_v53, %v7658_v39 }
 0x328   : > { %vm5924_vm3 = vmand %vm7635_vm9, %vm7634_vm12  ;;  %vm7645_vm12 = vcmp.eq.f32.partialorder %v4928_v45, %v5403_v11  ;;  %vm7646_vm9 = vcmp.eq.f32.partialorder %v4940_v52, %v5411_v61  ;;  %v7651_v45 = vld [vmem:[#allocation25_spill] sm:$0xff]  ;;  %v7760_v52 = vld [vmem:[#allocation51_spill] sm:$0xff] }
 0x329   : > { %vm5932_vm10 = vmand %vm5846_vm14, %vm7638_vm0  ;;  %vm7653_vm0 = vcmp.eq.f32.partialorder %v5148_v16, %v5416_v35  ;;  %vm7657_vm14 = vcmask 130048  }
 0x32a   : > { %vm5940_vm4 = vmand %vm7642_vm7, %vm7641_vm8  ;;  %vm7652_vm8 = vcmp.eq.f32.partialorder %v4930_v46, %v5408_v23  ;;  %v5977_v42 = vsel %vm7657_vm14, %v5860_v37, -inf  ;;  %vm7663_vm7 = vcmp.eq.f32.partialorder %v5088_v28, %v5416_v35  ;;  %v6010_v15 = vsel %vm5932_vm10, %v942_v2, -1e+30  ;;  %v6012_v37 = vpop.permute.xlu0 %732 }
 0x32b   : > { %vm5950_vm15 = vmor %vm7646_vm9, %vm7645_vm12  ;;  %vm7662_vm9 = vcmp.eq.f32.partialorder %v5104_v19, %v5408_v23  ;;  %7666 = vst [vmem:[#allocation31_spill] sm:$0xff] %v6010_v15  ;;  %vm7671_vm10 = vcmp.eq.f32.partialorder %v4930_v46, %v5403_v11 }
 0x32c   : > { %v7648_v40 = vsel %vm5950_vm15, 4294967295, %v7647_v40  ;;  %vm5967_vm12 = vmor %vm7653_vm0, %vm7652_vm8  ;;  %vm7659_vm8 = vcmp.eq.s32.totalorder %v5051_v25, 1  ;;  %v797_v25 = vmul.f32 %v5323_v50, %v7649_v24  ;;  %v6063_v24 = vsel %vm5787_vm11, %v944_v18, -1e+30 }
 0x32d   : > { %vm5988_vm0 = vmand %vm5877_vm13, %vm7659_vm8  ;;  %vm7667_vm13 = vcmp.eq.f32.partialorder %v5104_v19, %v5403_v11  ;;  %vm7672_vm8 = vcmp.eq.f32.partialorder %v5148_v16, %v5411_v61  ;;  %v7676_v19 = vld [vmem:[#allocation82_spill] sm:$0xff]  ;;  %v6059_v16 = vsel %vm5897_vm2, %v941_v49, -1e+30  ;;  %7683 = vst [vmem:[#allocation75_spill] sm:$0xff] %v6063_v24  ;;  %vm7690_vm2 = vcmp.eq.s32.totalorder %v7590_v43, 1 }
 0x32e   : > { %vm6000_vm15 = vmor %vm7663_vm7, %vm7662_vm9  ;;  %vm7668_vm7 = vcmp.eq.f32.partialorder %v5088_v28, %v5411_v61  ;;  %v800_v22 = vmul.f32 %v5331_v10, %v7676_v19  ;;  %v945_v28 = vadd.f32 %v909_v56, %v793_v44  ;;  %v7682_v56 = vld [vmem:[#allocation50_spill] sm:$0xff]  ;;  %v949_v44 = vadd.f32 %v913_v4, %v797_v25  ;;  %v738_v39 = vpop.permute.xlu0 %737 }
 0x32f   : > { %vm6022_vm9 = vmor %vm7668_vm7, %vm7667_vm13  ;;  %vm7677_vm13 = vcmp.eq.s32.totalorder %v7590_v43, 1  ;;  %v799_v12 = vmul.f32 %v5323_v50, %v7676_v19  ;;  %v6097_v18 = vsel %vm5836_vm1, %v950_v58, -1e+30  ;;  %v795_v43 = vmul.f32 %v5323_v50, %v5746_v13  ;;  %v6120_v58 = vpop.permute.xlu1 %747 }
 0x330   : > { %vm6032_vm14 = vmor %vm7672_vm8, %vm7671_vm10  ;;  %vm7678_vm10 = vcmp.eq.f32.partialorder %v5034_v14, %v5403_v11  ;;  %vm7679_vm8 = vcmp.eq.f32.partialorder %v5164_v20, %v5411_v61  ;;  %v952_v31 = vadd.f32 %v916_v7, %v800_v22  ;;  %7693 = vst [vmem:[#allocation77_spill] sm:$0xff] %v6097_v18  ;;  %v948_v13 = vadd.f32 %v912_v9, %v796_v32 }
 0x331   : > { %vm1416_vm7 = vmand %vm5967_vm12, %vm7677_vm13  ;;  %vm7684_vm12 = vcmp.eq.f32.partialorder %v5034_v14, %v5408_v23  ;;  %vm7685_vm13 = vcmp.eq.f32.partialorder %v5164_v20, %v5416_v35  ;;  %v504_v14 = vld [vmem:[%s7306_s7] sm:$0xff]  ;;  %v7691_v20 = vld [vmem:[#allocation40_spill] sm:$0xff]  ;;  %v951_v25 = vadd.f32 %v915_v5, %v799_v12  ;;  %v1503_v19 = vmax.f32 %v5779_v21, %v5977_v42 }
 0x332   : > { %vm6052_vm6 = vmor %vm7679_vm8, %vm7678_vm10  ;;  %v6078_v49 = vsel %vm1416_vm7, %v946_v26, -1e+30  ;;  %v6101_v26 = vsel %vm5828_vm5, %v943_v34, -1e+30  ;;  %v1478_v22 = vmax.f32 %v5800_v17, %v6059_v16  ;;  %v947_v5 = vadd.f32 %v911_v33, %v795_v43  ;;  %509 = vperm.xlu0 %4284, %v504_v14   ;;  %v861_v14 = vpop.permute.xlu0 %860  ;;  %v7731_v43 = vld [vmem:[#allocation45_spill] sm:$0xff] }
 0x333   : > { %vm6072_vm10 = vmor %vm7685_vm13, %vm7684_vm12  ;;  %7688 = vst [vmem:[#allocation48_spill] sm:$0xff] %v6078_v49  ;;  %vm7692_vm12 = vcmask 130048   ;;  %vm7696_vm13 = vcmp.eq.f32.partialorder %v7601_v1, %v5416_v35  ;;  %vm7710_vm1 = vcmp.eq.f32.partialorder %v7601_v1, %v5411_v61  ;;  %v7716_v1 = vld [vmem:[#allocation54_spill] sm:$0xff]  ;;  %v6186_v29 = vmax.f32 %v7718_v59, %v6101_v26 }
 0x334   : > { %vm1415_vm8 = vmand %vm6032_vm14, %vm7690_vm2  ;;  %v1504_v4 = vsel %vm7692_vm12, %v6010_v15, -inf  ;;  %7694 = vst [vmem:[#allocation79_spill] sm:$0xff] %v6101_v26  ;;  %vm7695_vm14 = vcmp.eq.f32.partialorder %v7600_v0, %v5408_v23  ;;  %v1506_v51 = vsel %vm7692_vm12, %v6063_v24, -inf  ;;  %v6201_v12 = vsel %vm5988_vm0, %v951_v25, -1e+30 }
 0x335   : > { %vm6111_vm2 = vmor %vm7696_vm13, %vm7695_vm14  ;;  %v6118_v34 = vsel %vm1415_vm8, %v945_v28, -1e+30  ;;  %vm7701_vm14 = vcmp.eq.f32.partialorder %v7616_v38, %v5403_v11  ;;  %vm7702_vm13 = vcmp.eq.f32.partialorder %v7615_v3, %v5411_v61  ;;  %v1508_v28 = vsel %vm7692_vm12, %v6078_v49, -inf }
 0x336   : > { %7700 = vst [vmem:[#allocation25_spill] sm:$0xff] %v6118_v34  ;;  %vm6130_vm7 = vmor %vm7702_vm13, %vm7701_vm14  ;;  %vm7705_vm14 = vcmp.eq.f32.partialorder %v7616_v38, %v5408_v23  ;;  %vm7706_vm13 = vcmp.eq.f32.partialorder %v7615_v3, %v5416_v35  ;;  %vm7709_vm8 = vcmp.eq.f32.partialorder %v7600_v0, %v5403_v11  ;;  %v1505_v42 = vmax.f32 %v5804_v54, %v1504_v4 }
 0x337   : > { %vm6148_vm5 = vmor %vm7706_vm13, %vm7705_vm14  ;;  %v6165_v38 = vsel %vm5924_vm3, %v949_v44, -1e+30  ;;  %v6169_v3 = vsel %vm5940_vm4, %v952_v31, -1e+30  ;;  %v802_v0 = vmul.f32 %v5331_v10, %v6012_v37  ;;  %vm7714_vm12 = vcmp.eq.s32.totalorder %v7632_v6, 1 }
 0x338   : > { %vm6158_vm11 = vmor %vm7710_vm1, %vm7709_vm8  ;;  %7713 = vst [vmem:[#allocation85_spill] sm:$0xff] %v6169_v3  ;;  %vm7715_vm1 = vnez %v7631_v55  ;;  %vm7717_vm13 = vcmask 130048   ;;  %v6188_v44 = vmax.f32 %v1503_v19, %v1506_v51  ;;  %v6191_v33 = vmax.f32 %v1478_v22, %v6118_v34  ;;  %v7732_v51 = vld [vmem:[#allocation47_spill] sm:$0xff]  ;;  %v869_v22 = vpop.permute.xlu1 %868 }
 0x339   : > { %vm1418_vm8 = vmand %vm7715_vm1, %vm7714_vm12  ;;  %v6180_v54 = vsel %vm7717_vm13, %v6097_v18, -inf  ;;  %vm7720_vm3 = vnez %v7648_v40  ;;  %v6197_v55 = vmax.f32 %v1505_v42, %v1508_v28  ;;  %v918_v31 = vmul.f32 %v5335_v63, %v5748_v60  ;;  %v7725_v40 = vld [vmem:[#allocation33_spill] sm:$0xff] }
 0x33a   : > { %vm7719_vm4 = vmmov %vm7714_vm12  ;;  %v6205_v32 = vsel %vm1418_vm8, %v948_v13, -1e+30  ;;  %vm7722_vm1 = vcmp.eq.s32.totalorder %v7651_v45, 1  ;;  %vm7728_vm0 = vcmp.eq.f32.partialorder %v7727_v27, %v5411_v61  ;;  %v801_v13 = vmul.f32 %v5323_v50, %v6012_v37 }
 0x33b   : > { %vm1417_vm12 = vmand %vm7720_vm3, %vm7719_vm4  ;;  %7721 = vst [vmem:[#allocation36_spill] sm:$0xff] %v6205_v32  ;;  %vm7726_vm4 = vcmp.eq.f32.partialorder %v7725_v40, %v5403_v11  ;;  %v920_v19 = vmul.f32 %v5335_v63, %v861_v14  ;;  %v954_v37 = vadd.f32 %v918_v31, %v802_v0  ;;  %v804_v42 = vmul.f32 %v5331_v10, %v738_v39  ;;  %v7746_v31 = vld [vmem:[#allocation56_spill] sm:$0xff] }
 0x33c   : > { %vm6211_vm13 = vmand %vm6000_vm15, %vm7722_vm1  ;;  %vm7733_vm15 = vcmask 130048   ;;  %v6233_v25 = vsel %vm1417_vm12, %v947_v5, -1e+30  ;;  %vm7735_vm1 = vcmp.eq.f32.partialorder %v7725_v40, %v5408_v23  ;;  %v922_v5 = vmul.f32 %v5335_v63, %v6014_v57  ;;  %v873_v34 = vpop.permute.xlu1 %872 }
 0x33d   : > { %vm6221_vm3 = vmor %vm7728_vm0, %vm7726_vm4  ;;  %v6231_v36 = vsel %vm7733_vm15, %v6169_v3, -inf  ;;  %7734 = vst [vmem:[#allocation82_spill] sm:$0xff] %v6233_v25  ;;  %vm7736_vm4 = vcmp.eq.f32.partialorder %v7727_v27, %v5416_v35  ;;  %v919_v59 = vmul.f32 %v5327_v53, %v861_v14  ;;  %vm7739_vm8 = vcmp.eq.s32.totalorder %v7651_v45, 1  ;;  %v7753_v3 = vld [vmem:[#allocation28_spill] sm:$0xff] }
 0x33e   : > { %vm6244_vm0 = vmor %vm7736_vm4, %vm7735_vm1  ;;  %vm7743_vm12 = vcmp.eq.s32.totalorder %v7675_v48, 1  ;;  %v917_v14 = vmul.f32 %v5327_v53, %v5748_v60  ;;  %v924_v27 = vmul.f32 %v5335_v63, %v869_v22  ;;  %v805_v57 = vmul.f32 %v5323_v50, %v7753_v3  ;;  %v7755_v48 = vld [vmem:[#allocation49_spill] sm:$0xff] }
 0x33f   : > { %vm7740_vm1 = vmmov %vm6022_vm9  ;;  %vm7747_vm9 = vcmask 130048   ;;  %v806_v18 = vmul.f32 %v5331_v10, %v7753_v3  ;;  %v803_v46 = vmul.f32 %v5323_v50, %v738_v39  ;;  %v1481_v2 = vmax.f32 %v6186_v29, %v6233_v25  ;;  %v753_v3 = vpop.permute.xlu0 %752  ;;  %v7761_v39 = vld [vmem:[#allocation53_spill] sm:$0xff] }
 0x340   : > { %vm6260_vm4 = vmand %vm7740_vm1, %vm7739_vm8  ;;  %v1510_v45 = vsel %vm7747_vm9, %v6205_v32, -inf  ;;  %vm7748_vm8 = vcmp.eq.s32.totalorder %v7682_v56, 1  ;;  %v956_v32 = vadd.f32 %v920_v19, %v804_v42  ;;  %v953_v49 = vadd.f32 %v917_v14, %v801_v13  ;;  %v7762_v42 = vld [vmem:[#allocation38_spill] sm:$0xff]  ;;  %v7764_v14 = vld [vmem:[#allocation55_spill] sm:$0xff] }
 0x341   : > { %vm6268_vm15 = vmand %vm6148_vm5, %vm7743_vm12  ;;  %v808_v24 = vmul.f32 %v5331_v10, %v6120_v58  ;;  %v923_v15 = vmul.f32 %v5327_v53, %v869_v22  ;;  %v1511_v29 = vmax.f32 %v6188_v44, %v1510_v45  ;;  %v958_v19 = vadd.f32 %v922_v5, %v806_v18 }
 0x342   : > { %vm6284_vm5 = vmand %vm6052_vm6, %vm7748_vm8  ;;  %v955_v22 = vadd.f32 %v919_v59, %v803_v46  ;;  %v957_v25 = vadd.f32 %v921_v8, %v805_v57  ;;  %v807_v26 = vmul.f32 %v5323_v50, %v6120_v58  ;;  %vm7766_vm14 = vcmp.eq.f32.partialorder %v7691_v20, %v5416_v35 }
 0x343   : > { %vm6292_vm1 = vmand %vm6130_vm7, %vm7743_vm12  ;;  %vm7756_vm7 = vcmp.eq.f32.partialorder %v7689_v30, %v5403_v11  ;;  %vm7757_vm12 = vcmp.eq.f32.partialorder %v7691_v20, %v5411_v61  ;;  %v960_v44 = vadd.f32 %v924_v27, %v808_v24  ;;  %v809_v5 = vmul.f32 %v5323_v50, %v753_v3  ;;  %v758_v45 = vpop.permute.xlu0 %757 }
 0x344   : > { %vm7754_vm6 = vmmov %vm7748_vm8  ;;  %v925_v59 = vmul.f32 %v5327_v53, %v873_v34  ;;  %v926_v24 = vmul.f32 %v5335_v63, %v873_v34  ;;  %v1482_v20 = vmax.f32 %v6191_v33, %v6165_v38  ;;  %v6378_v34 = vsel %vm6211_vm13, %v958_v19, -1e+30 }
 0x345   : > { %vm1424_vm9 = vmand %vm6072_vm10, %vm7754_vm6  ;;  %vm1259_vm6 = vcmp.eq.f32.partialorder %v7764_v14, %v5403_v11  ;;  %v1515_v4 = vmax.f32 %v1511_v29, %v6231_v36  ;;  %vm7776_vm13 = vcmp.eq.f32.partialorder %v7732_v51, %v5403_v11  ;;  %v6407_v28 = vsel %vm6260_vm4, %v957_v25, -1e+30  ;;  %v7803_v14 = vld [vmem:[#allocation58_spill] sm:$0xff] }
 0x346   : > { %vm6317_vm10 = vmor %vm7757_vm12, %vm7756_vm7  ;;  %v6326_v13 = vsel %vm1424_vm9, %v954_v37, -1e+30  ;;  %vm7763_vm7 = vcmp.eq.s32.totalorder %v7699_v62, 1  ;;  %v810_v37 = vmul.f32 %v5331_v10, %v753_v3  ;;  %vm7765_vm9 = vcmp.eq.f32.partialorder %v7689_v30, %v5408_v23 }
 0x347   : > { %vm1426_vm12 = vmand %vm6111_vm2, %vm7763_vm7  ;;  %v6360_v30 = vsel %vm6284_vm5, %v953_v49, -1e+30  ;;  %v1513_v49 = vmax.f32 %v6197_v55, %v6180_v54  ;;  %v6392_v55 = vsel %vm6268_vm15, %v960_v44, -1e+30  ;;  %v961_v0 = vadd.f32 %v925_v59, %v809_v5  ;;  %v877_v57 = vpop.permute.xlu0 %876 }
 0x348   : > { %vm6345_vm8 = vmor %vm7766_vm14, %vm7765_vm9  ;;  %v6349_v7 = vsel %vm1426_vm12, %v956_v32, -1e+30  ;;  %vm7770_vm14 = vcmask 130048   ;;  %v959_v32 = vadd.f32 %v923_v15, %v807_v26  ;;  %vm7771_vm12 = vcmp.eq.s32.totalorder %v7716_v1, 1  ;;  %v763_v15 = vpop.permute.xlu1 %762  ;;  %v7810_v1 = vld [vmem:[#allocation46_spill] sm:$0xff] }
 0x349   : > { %vm7769_vm2 = vmmov %vm7763_vm7  ;;  %v1516_v58 = vsel %vm7770_vm14, %v6326_v13, -inf  ;;  %v962_v33 = vadd.f32 %v926_v24, %v810_v37  ;;  %v1483_v26 = vmax.f32 %v1481_v2, %v6201_v12  ;;  %v1484_v6 = vmax.f32 %v1482_v20, %v6360_v30 }
 0x34a   : > { %vm1425_vm7 = vmand %vm6158_vm11, %vm7769_vm2  ;;  %vm7777_vm2 = vcmp.eq.f32.partialorder %v7731_v43, %v5411_v61  ;;  %v1517_v36 = vmax.f32 %v1513_v49, %v1516_v58  ;;  %vm7781_vm15 = vcmp.eq.f32.partialorder %v7731_v43, %v5416_v35  ;;  %v6424_v25 = vsel %vm6292_vm1, %v959_v32, -1e+30  ;;  %v7806_v49 = vld [vmem:[#allocation57_spill] sm:$0xff] }
 0x34b   : > { %vm6370_vm9 = vmand %vm6221_vm3, %vm7771_vm12  ;;  %v6380_v21 = vsel %vm1425_vm7, %v955_v22, -1e+30  ;;  %vm7785_vm4 = vcmp.eq.s32.totalorder %v7746_v31, 1  ;;  %v812_v60 = vmul.f32 %v5331_v10, %v758_v45  ;;  %v813_v2 = vmul.f32 %v5323_v50, %v763_v15 }
 0x34c   : > { %vm7774_vm11 = vmmov %vm7771_vm12  ;;  %v1485_v9 = vmax.f32 %v1483_v26, %v6380_v21  ;;  %v814_v3 = vmul.f32 %v5331_v10, %v763_v15  ;;  %v927_v56 = vmul.f32 %v5327_v53, %v877_v57  ;;  %v928_v29 = vmul.f32 %v5335_v63, %v877_v57  ;;  %v881_v19 = vpop.permute.xlu1 %880 }
 0x34d   : > { %vm1432_vm5 = vmand %vm6244_vm0, %vm7774_vm11  ;;  %vm7780_vm0 = vcmp.eq.f32.partialorder %v7732_v51, %v5408_v23  ;;  %v811_v51 = vmul.f32 %v5323_v50, %v758_v45  ;;  %v6462_v22 = vsel %vm6370_vm9, %v961_v0, -1e+30  ;;  %v929_v10 = vmul.f32 %v5327_v53, %v881_v19 }
 0x34e   : > { %vm7775_vm3 = vmmov %vm7770_vm14  ;;  %v6426_v40 = vsel %vm1432_vm5, %v962_v33, -1e+30  ;;  %v930_v44 = vmul.f32 %v5335_v63, %v881_v19  ;;  %v1486_v18 = vmax.f32 %v1484_v6, %v6407_v28  ;;  %v964_v24 = vadd.f32 %v928_v29, %v812_v60  ;;  %v7808_v33 = vld [vmem:[#allocation70_spill] sm:$0xff] }
 0x34f   : > { %v1518_v54 = vsel %vm7775_vm3, %v6349_v7, -inf  ;;  %vm6400_vm7 = vmor %vm7777_vm2, %vm7776_vm13  ;;  %v1522_v43 = vsel %vm7775_vm3, %v6392_v55, -inf  ;;  %vm7795_vm2 = vcmp.eq.f32.partialorder %v7761_v39, %v5403_v11  ;;  %v963_v59 = vadd.f32 %v927_v56, %v811_v51 }
 0x350   : > { %vm6415_vm14 = vmor %vm7781_vm15, %vm7780_vm0  ;;  %v1519_v35 = vmax.f32 %v1515_v4, %v1518_v54  ;;  %vm7799_vm9 = vcmp.eq.f32.partialorder %v7762_v42, %v5411_v61  ;;  %v1487_v63 = vmax.f32 %v1485_v9, %v6424_v25  ;;  %v965_v39 = vadd.f32 %v929_v10, %v813_v2  ;;  %v7813_v9 = vld [vmem:[#allocation6_spill] sm:$0xff] }
 0x351   : > { %vm7784_vm12 = vmmov %vm7775_vm3  ;;  %v966_v20 = vadd.f32 %v930_v44, %v814_v3  ;;  %v1488_v58 = vmax.f32 %v1486_v18, %v6462_v22  ;;  %v7815_v3 = vld [vmem:[#allocation84_spill] sm:$0xff] }
 0x352   : > { %v1520_v27 = vsel %vm7784_vm12, %v6378_v34, -inf  ;;  %vm6432_vm11 = vmand %vm6317_vm10, %vm7785_vm4  ;;  %vm7791_vm10 = vcmp.eq.s32.totalorder %v7755_v48, 1 }
 0x353   : > { %vm7788_vm1 = vmmov %vm7785_vm4  ;;  %v1521_v5 = vmax.f32 %v1517_v36, %v1520_v27  ;;  %v7812_v36 = vld [vmem:[#allocation71_spill] sm:$0xff] }
 0x354   : > { %vm6444_vm5 = vmand %vm6345_vm8, %vm7788_vm1 }
 0x355   : > { %vm6456_vm13 = vmand %vm6400_vm7, %vm7791_vm10  ;;  %vm7796_vm7 = vcmp.eq.f32.partialorder %v7760_v52, %v5411_v61  ;;  %v1523_v52 = vmax.f32 %v1519_v35, %v1522_v43  ;;  %v6497_v61 = vsel %vm6432_vm11, %v963_v59, -1e+30  ;;  %v6501_v42 = vsel %vm6444_vm5, %v964_v24, -1e+30 }
 0x356   : > { %vm7794_vm8 = vmmov %vm7775_vm3  ;;  %v1489_v48 = vmax.f32 %v1487_v63, %v6497_v61  ;;  %v6512_v45 = vsel %vm6456_vm13, %v965_v39, -1e+30  ;;  %vm7807_vm11 = vcmp.eq.s32.totalorder %v7806_v49, 1  ;;  %v7817_v39 = vld [vmem:[#allocation79_spill] sm:$0xff] }
 0x357   : > { %v1524_v50 = vsel %vm7794_vm8, %v6426_v40, -inf  ;;  %vm6474_vm0 = vmor %vm7796_vm7, %vm7795_vm2  ;;  %v1490_v4 = vmax.f32 %v1488_v58, %v6512_v45  ;;  %v7818_v58 = vld [vmem:[#allocation25_spill] sm:$0xff] }
 0x358   : > { %vm6485_vm15 = vmor %vm7799_vm9, %vm1259_vm6  ;;  %v1525_v11 = vmax.f32 %v1521_v5, %v1524_v50  ;;  %vm7804_vm6 = vcmp.eq.s32.totalorder %v7803_v14, 1  ;;  %v7819_v14 = vld [vmem:[#allocation82_spill] sm:$0xff] }
 0x359   : > { %vm7802_vm12 = vmmov %vm7791_vm10 }
 0x35a   : > { %vm1436_vm4 = vmand %vm6415_vm14, %vm7802_vm12 }
 0x35b   : > { %vm1437_vm3 = vmand %vm6474_vm0, %vm7804_vm6  ;;  %v6514_v62 = vsel %vm1436_vm4, %v966_v20, -1e+30 }
 0x35c   : > { %vm7805_vm14 = vmmov %vm7794_vm8  ;;  %v6521_v15 = vsel %vm1437_vm3, %v7808_v33, -1e+30 }
 0x35d   : > { %v1526_v32 = vsel %vm7805_vm14, %v6501_v42, -inf  ;;  %vm1439_vm1 = vmand %vm6485_vm15, %vm7807_vm11  ;;  %v1491_v8 = vmax.f32 %v1489_v48, %v6521_v15 }
 0x35e   : > { %v1527_v26 = vmax.f32 %v1523_v52, %v1526_v32  ;;  %vm7809_vm5 = vmmov %vm7794_vm8  ;;  %v6529_v0 = vsel %vm1439_vm1, %v7812_v36, -1e+30 }
 0x35f   : > { %v1528_v54 = vsel %vm7809_vm5, %v6514_v62, -inf  ;;  %vm7811_vm10 = vmmov %vm7809_vm5  ;;  %v1492_v43 = vmax.f32 %v1490_v4, %v6529_v0 }
 0x360   : > { %v1530_v6 = vsel %vm7811_vm10, %v7810_v1, -inf  ;;  %v1529_v27 = vmax.f32 %v1525_v11, %v1528_v54  ;;  %vm7814_vm13 = vmmov %vm7809_vm5 }
 0x361   : > { %v1532_v23 = vsel %vm7814_vm13, %v7813_v9, -inf  ;;  %v1531_v35 = vmax.f32 %v1527_v26, %v1530_v6  ;;  %v1493_v60 = vmax.f32 %v1491_v8, %v1492_v43  ;;  %vm7816_vm8 = vmmov %vm7809_vm5  ;;  %v7822_v43 = vld [vmem:[#allocation20_spill] sm:$0xff] }
 0x362   : > { %v1533_v51 = vmax.f32 %v1529_v27, %v1532_v23  ;;  %v2407_v56 = vsel %vm7816_vm8, %v7815_v3, -inf  ;;  %vm7834_vm2 = vmmov %vm7809_vm5 }
 0x363   : > { %v1494_v46 = vrot.slane %v1493_v60, 4  ;;  %2408 = vmax.xlane.f32.xlu1 %v2407_v56  ;;  %vm7835_vm7 = vmmov %vm7834_vm2 }
 0x364   : > { %v1534_v57 = vmax.f32 %v1531_v35, %v1533_v51  ;;  %vm7836_vm0 = vmmov %vm7834_vm2 }
 0x365   : > { %v1495_v29 = vmax.f32 %v1493_v60, %v1494_v46  ;;  %v7823_v60 = vld [vmem:[#allocation31_spill] sm:$0xff]  ;;  %vm7837_vm9 = vmmov %vm7836_vm0 }
 0x366   : > { %v1535_v2 = vrot.slane %v1534_v57, 4  ;;  %vm7838_vm15 = vmmov %vm7836_vm0 }
 0x367   : > { %v1496_v31 = vrot.slane %v1495_v29, 2  ;;  %vm7840_vm12 = vmmov %vm7836_vm0 }
 0x368   : > { %v1536_v19 = vmax.f32 %v1534_v57, %v1535_v2  ;;  %v7824_v2 = vld [vmem:[#allocation75_spill] sm:$0xff]  ;;  %vm7841_vm4 = vmmov %vm7836_vm0 }
 0x369   : > { %v1497_v10 = vmax.f32 %v1495_v29, %v1496_v31  ;;  %v7825_v29 = vld [vmem:[#allocation48_spill] sm:$0xff]  ;;  %vm7842_vm6 = vmmov %vm7836_vm0 }
 0x36a   : > { %v1537_v50 = vrot.slane %v1536_v19, 2  ;;  %v7826_v31 = vld [vmem:[#allocation36_spill] sm:$0xff]  ;;  %vm7843_vm3 = vmmov %vm7836_vm0 }
 0x36b   : > { %v1498_v37 = vrot.slane %v1497_v10, 1  ;;  %vm7844_vm14 = vmmov %vm7836_vm0 }
 0x36c   : > { %v1538_v44 = vmax.f32 %v1536_v19, %v1537_v50  ;;  %vm7846_vm11 = vmmov %vm7836_vm0 }
 0x36d   : > { %v6537_v5 = vmax.f32 %v1497_v10, %v1498_v37  ;;  %v7827_v10 = vld [vmem:[#allocation77_spill] sm:$0xff]  ;;  %vm7847_vm1 = vmmov %vm7836_vm0 }
 0x36e   : > { %v1539_v18 = vrot.slane %v1538_v44, 1  ;;  %v7828_v37 = vld [vmem:[#allocation85_spill] sm:$0xff]  ;;  %vm7849_vm5 = vmmov %vm7836_vm0 }
 0x36f   : > { %v1541_v24 = vsub.f32 %v5775_v47, %v6537_v5  ;;  %v1543_v53 = vsub.f32 %v5800_v17, %v6537_v5  ;;  %v1545_v63 = vsub.f32 %v5858_v41, %v6537_v5  ;;  %v1547_v52 = vsub.f32 %v6059_v16, %v6537_v5  ;;  %vm7853_vm10 = vmmov %vm7836_vm0 }
 0x370   : > { %v6539_v59 = vmax.f32 %v1538_v44, %v1539_v18  ;;  %v1549_v20 = vsub.f32 %v7817_v39, %v6537_v5  ;;  %v1551_v11 = vsub.f32 %v7818_v58, %v6537_v5  ;;  %v1553_v48 = vsub.f32 %v7819_v14, %v6537_v5  ;;  %vm7854_vm13 = vmmov %vm7836_vm0 }
 0x371   : > { %v1555_v47 = vsub.f32 %v6165_v38, %v6537_v5  ;;  %v1557_v17 = vsub.f32 %v6201_v12, %v6537_v5  ;;  %v1559_v41 = vsub.f32 %v6360_v30, %v6537_v5  ;;  %v1561_v16 = vsub.f32 %v6380_v21, %v6537_v5  ;;  %vm7855_vm8 = vmmov %vm7836_vm0 }
 0x372   : > { %v1563_v32 = vsub.f32 %v6407_v28, %v6537_v5  ;;  %v1565_v49 = vsub.f32 %v6424_v25, %v6537_v5  ;;  %v1567_v33 = vsub.f32 %v6462_v22, %v6537_v5  ;;  %v1569_v38 = vsub.f32 %v6497_v61, %v6537_v5  ;;  %v7820_v22 = vld [vmem:[#allocation86_spill] sm:$0xff] }
 0x373   : > { %v1571_v12 = vsub.f32 %v6512_v45, %v6537_v5  ;;  %v1572_v30 = vsub.f32 %v6514_v62, %v6539_v59  ;;  %v1573_v21 = vsub.f32 %v6521_v15, %v6537_v5  ;;  %v1575_v28 = vsub.f32 %v6529_v0, %v6537_v5  ;;  %v7821_v15 = vld [vmem:[#allocation87_spill] sm:$0xff] }
 0x374   : > { %v1577_v26 = vmul.f32 1.442695, %v1541_v24  ;;  %v1581_v25 = vmul.f32 1.442695, %v1543_v53  ;;  %v1585_v4 = vmul.f32 1.442695, %v1545_v63  ;;  %v1542_v54 = vsub.f32 %v7820_v22, %v6539_v59  ;;  %v2355_v22 = vpop.xlane.xlu0 %2354 }
 0x375   : > { %v1589_v61 = vmul.f32 1.442695, %v1547_v52  ;;  %v1593_v45 = vmul.f32 1.442695, %v1549_v20  ;;  %v1597_v6 = vmul.f32 1.442695, %v1551_v11  ;;  %v1544_v35 = vsub.f32 %v7821_v15, %v6539_v59 }
 0x376   : > { %4406 = vpow2.f32 %v1577_v26  ;;  %v1601_v36 = vmul.f32 1.442695, %v1553_v48  ;;  %v1605_v8 = vmul.f32 1.442695, %v1555_v47  ;;  %v1609_v27 = vmul.f32 1.442695, %v1557_v17 }
 0x377   : > { %4408 = vpow2.f32 %v1581_v25  ;;  %v1613_v23 = vmul.f32 1.442695, %v1559_v41  ;;  %v1546_v51 = vsub.f32 %v7822_v43, %v6539_v59  ;;  %v1548_v57 = vsub.f32 %v7823_v60, %v6539_v59 }
 0x378   : > { %4410 = vpow2.f32 %v1585_v4  ;;  %v1617_v46 = vmul.f32 1.442695, %v1561_v16  ;;  %v1550_v56 = vsub.f32 %v7824_v2, %v6539_v59  ;;  %v1552_v19 = vsub.f32 %v7825_v29, %v6539_v59  ;;  %v7833_v29 = vld [vmem:[#allocation63_spill] sm:$0xff] }
 0x379   : > { %4412 = vpow2.f32 %v1589_v61  ;;  %v1554_v50 = vsub.f32 %v7826_v31, %v6539_v59  ;;  %v1556_v44 = vsub.f32 %v7827_v10, %v6539_v59  ;;  %v1558_v18 = vsub.f32 %v7828_v37, %v6539_v59 }
 0x37a   : > { %4414 = vpow2.f32 %v1593_v45  ;;  %v1560_v24 = vsub.f32 %v6326_v13, %v6539_v59  ;;  %v1562_v53 = vsub.f32 %v6349_v7, %v6539_v59  ;;  %v1564_v63 = vsub.f32 %v6378_v34, %v6539_v59 }
 0x37b   : > { %4416 = vpow2.f32 %v1597_v6  ;;  %v1566_v52 = vsub.f32 %v6392_v55, %v6539_v59  ;;  %v1568_v39 = vsub.f32 %v6426_v40, %v6539_v59  ;;  %v1570_v20 = vsub.f32 %v6501_v42, %v6539_v59  ;;  %v7829_v6 = vld [vmem:[#allocation60_spill] sm:$0xff] }
 0x37c   : > { %4418 = vpow2.f32 %v1601_v36  ;;  %v1574_v58 = vsub.f32 %v7810_v1, %v6539_v59  ;;  %v1621_v14 = vmul.f32 1.442695, %v1563_v32  ;;  %v1576_v48 = vsub.f32 %v7813_v9, %v6539_v59 }
 0x37d   : > { %4420 = vpow2.f32 %v1605_v8  ;;  %v1625_v17 = vmul.f32 1.442695, %v1565_v49  ;;  %v1629_v41 = vmul.f32 1.442695, %v1567_v33  ;;  %v1633_v25 = vmul.f32 1.442695, %v1569_v38 }
 0x37e   : > { %4422 = vpow2.f32 %v1609_v27  ;;  %v1637_v4 = vmul.f32 1.442695, %v1571_v12  ;;  %v1641_v45 = vmul.f32 1.442695, %v1573_v21  ;;  %v2411_v49 = vsub.f32 %v7829_v6, %v2355_v22  ;;  %v7832_v6 = vld [vmem:[#allocation62_spill] sm:$0xff] }
 0x37f   : > { %4424 = vpow2.f32 %v1613_v23  ;;  %v1579_v36 = vmul.f32 1.442695, %v1542_v54  ;;  %v1583_v27 = vmul.f32 1.442695, %v1544_v35  ;;  %v2358_v23 = vpop.xlane.xlu0 %2357  ;;  %v1587_v15 = vmul.f32 1.442695, %v1546_v51  ;;  %v2352_v54 = vpop.xlane.xlu1 %2351 }
 0x380   : > { %v6611_v11 = vpop.eup %4406  ;;  %4426 = vpow2.f32 %v1617_v46  ;;  %v2432_v21 = vmul.f32 1.442695, %v2411_v49  ;;  %v1591_v2 = vmul.f32 1.442695, %v1548_v57  ;;  %v7830_v35 = vld [vmem:[#allocation59_spill] sm:$0xff] }
 0x381   : > { %v6615_v47 = vpop.eup %4408  ;;  %4428 = vpow2.f32 %v1621_v14  ;;  %v1645_v31 = vmul.f32 1.442695, %v1575_v28  ;;  %v1615_v0 = vmul.f32 1.442695, %v1560_v24  ;;  %v1627_v34 = vmul.f32 1.442695, %v1566_v52 }
 0x382   : > { %v1649_v16 = vadd.f32 %v6615_v47, %v6611_v11  ;;  %v6619_v26 = vpop.eup %4410  ;;  %4430 = vpow2.f32 %v1625_v17  ;;  %v2410_v17 = vsub.f32 %v7830_v35, %v2352_v54  ;;  %v1631_v52 = vmul.f32 1.442695, %v1568_v39 }
 0x383   : > { %v6622_v61 = vpop.eup %4412  ;;  %4432 = vpow2.f32 %v1629_v41  ;;  %v2382_v55 = vpop.xlane.xlu1 %2381  ;;  %v1635_v40 = vmul.f32 1.442695, %v1570_v20 }
 0x384   : > { %v1650_v32 = vadd.f32 %v6619_v26, %v1649_v16  ;;  %v6626_v8 = vpop.eup %4414  ;;  %4434 = vpow2.f32 %v1633_v25  ;;  %v7831_v16 = vld [vmem:[#allocation61_spill] sm:$0xff] }
 0x385   : > { %v6628_v38 = vpop.eup %4416  ;;  %4436 = vpow2.f32 %v1637_v4  ;;  %v2412_v25 = vsub.f32 %v7831_v16, %v2358_v23  ;;  %v2361_v4 = vpop.xlane.xlu0 %2360 }
 0x386   : > { %v1651_v33 = vadd.f32 %v6622_v61, %v1650_v32  ;;  %v6631_v43 = vpop.eup %4418  ;;  %4438 = vpow2.f32 %v1641_v45  ;;  %v1595_v32 = vmul.f32 1.442695, %v1550_v56  ;;  %v2430_v45 = vmul.f32 1.442695, %v2410_v17 }
 0x387   : > { %v6633_v60 = vpop.eup %4420  ;;  %4440 = vpow2.f32 %v1579_v36  ;;  %v2413_v57 = vsub.f32 %v7832_v6, %v2361_v4  ;;  %v1599_v36 = vmul.f32 1.442695, %v1552_v19  ;;  %v1603_v56 = vmul.f32 1.442695, %v1554_v50 }
 0x388   : > { %v1652_v12 = vadd.f32 %v6626_v8, %v1651_v33  ;;  %v6636_v14 = vpop.eup %4422  ;;  %4442 = vpow2.f32 %v1583_v27 }
 0x389   : > { %v6639_v41 = vpop.eup %4424  ;;  %4444 = vpow2.f32 %v1587_v15 }
 0x38a   : > { %v1653_v46 = vadd.f32 %v6628_v38, %v1652_v12  ;;  %v6643_v22 = vpop.eup %4426  ;;  %4446 = vpow2.f32 %v2432_v21  ;;  %v2436_v12 = vmul.f32 1.442695, %v2413_v57  ;;  %v2434_v21 = vmul.f32 1.442695, %v2412_v25 }
 0x38b   : > { %v6646_v49 = vpop.eup %4428  ;;  %4448 = vpow2.f32 %v1591_v2  ;;  %v1607_v2 = vmul.f32 1.442695, %v1556_v44 }
 0x38c   : > { %v1654_v51 = vadd.f32 %v6631_v43, %v1653_v46  ;;  %v6652_v27 = vpop.eup %4430  ;;  %4450 = vpow2.f32 %v2430_v45  ;;  %v2364_v46 = vpop.xlane.xlu0 %2363  ;;  %v1619_v45 = vmul.f32 1.442695, %v1562_v53 }
 0x38d   : > { %v6657_v23 = vpop.eup %4432  ;;  %4452 = vpow2.f32 %v1595_v32  ;;  %v2414_v19 = vsub.f32 %v7833_v29, %v2364_v46 }
 0x38e   : > { %v1655_v33 = vadd.f32 %v6633_v60, %v1654_v51  ;;  %v6660_v54 = vpop.eup %4434  ;;  %4454 = vpow2.f32 %v2436_v12  ;;  %v1611_v51 = vmul.f32 1.442695, %v1558_v18  ;;  %v1623_v12 = vmul.f32 1.442695, %v1564_v63 }
 0x38f   : > { %v6666_v35 = vpop.eup %4436  ;;  %4456 = vpow2.f32 %v1599_v36  ;;  %v2438_v44 = vmul.f32 1.442695, %v2414_v19 }
 0x390   : > { %v1656_v15 = vadd.f32 %v6636_v14, %v1655_v33  ;;  %v6672_v17 = vpop.eup %4438  ;;  %4458 = vpow2.f32 %v1603_v56  ;;  %v2367_v25 = vpop.xlane.xlu0 %2366 }
 0x391   : > { %v6677_v16 = vpop.eup %4440  ;;  %4460 = vpow2.f32 %v2434_v21 }
 0x392   : > { %v1657_v50 = vadd.f32 %v6639_v41, %v1656_v15  ;;  %v6680_v4 = vpop.eup %4442  ;;  %4462 = vpow2.f32 %v1607_v2  ;;  %v1672_v5 = vsel %vm7834_vm2, %v6677_v16, 0.0  ;;  %v7839_v2 = vld [vmem:[#allocation64_spill] sm:$0xff]  ;;  %vm7858_vm2 = vmmov %vm7836_vm0 }
 0x393   : > { %v6687_v28 = vpop.eup %4444  ;;  %4464 = vpow2.f32 %v1645_v31  ;;  %v1673_v18 = vsel %vm7835_vm7, %v6680_v4, 0.0  ;;  %v2415_v31 = vsub.f32 %v7839_v2, %v2367_v25  ;;  %v1639_v25 = vmul.f32 1.442695, %v1572_v30  ;;  %vm7859_vm7 = vmmov %vm7836_vm0 }
 0x394   : > { %v1658_v10 = vadd.f32 %v6643_v22, %v1657_v50  ;;  %v6692_v32 = vpop.eup %4446  ;;  %4466 = vpow2.f32 %v1611_v51  ;;  %v1674_v13 = vadd.f32 %v1673_v18, %v1672_v5  ;;  %v6700_v57 = vpop.xlane.xlu0 %2369  ;;  %v1675_v33 = vsel %vm7836_vm0, %v6687_v28, 0.0 }
 0x395   : > { %v6697_v24 = vpop.eup %4448  ;;  %4468 = vpow2.f32 %v2438_v44  ;;  %v2473_v18 = vsel %vm7842_vm6, %v6692_v32, 0.0  ;;  %v2440_v30 = vmul.f32 1.442695, %v2415_v31  ;;  %v7848_v31 = vld [vmem:[#allocation69_spill] sm:$0xff]  ;;  %vm7868_vm6 = vmmov %vm7836_vm0 }
 0x396   : > { %v1659_v37 = vadd.f32 %v6646_v49, %v1658_v10  ;;  %v6704_v36 = vpop.eup %4450  ;;  %4470 = vpow2.f32 %v1615_v0  ;;  %v1676_v7 = vadd.f32 %v1675_v33, %v1674_v13  ;;  %v1677_v21 = vsel %vm7838_vm15, %v6697_v24, 0.0  ;;  %vm7861_vm15 = vmmov %vm7836_vm0 }
 0x397   : > { %v6709_v53 = vpop.eup %4452  ;;  %v2470_v15 = vsel %vm7837_vm9, %v6704_v36, 0.0  ;;  %4472 = vpow2.f32 %v1619_v45  ;;  %vm7860_vm9 = vmmov %vm7836_vm0 }
 0x398   : > { %v1660_v6 = vadd.f32 %v6652_v27, %v1659_v37  ;;  %v6716_v46 = vpop.eup %4454  ;;  %2471 = vadd.xlane.f32.xlu0 %v2470_v15  ;;  %v1678_v63 = vadd.f32 %v1677_v21, %v1676_v7  ;;  %v6725_v50 = vpop.xlane.xlu0 %2372  ;;  %v1679_v10 = vsel %vm7841_vm4, %v6709_v53, 0.0  ;;  %4474 = vpow2.f32 %v1623_v12  ;;  %vm7866_vm4 = vmmov %vm7836_vm0 }
 0x399   : > { %v6721_v29 = vpop.eup %4456  ;;  %v2479_v51 = vsel %vm7840_vm12, %v6716_v46, 0.0  ;;  %4476 = vpow2.f32 %v1627_v34  ;;  %v2385_v21 = vpop.xlane.xlu1 %2384  ;;  %vm7865_vm12 = vmmov %vm7836_vm0 }
 0x39a   : > { %v1661_v56 = vadd.f32 %v6657_v23, %v1660_v6  ;;  %v6731_v44 = vpop.eup %4458  ;;  %2480 = vadd.xlane.f32.xlu1 %v2479_v51  ;;  %v1680_v0 = vadd.f32 %v1679_v10, %v1678_v63  ;;  %v1681_v45 = vsel %vm7843_vm3, %v6721_v29, 0.0  ;;  %4478 = vpow2.f32 %v1631_v52  ;;  %vm7871_vm3 = vmmov %vm7836_vm0 }
 0x39b   : > { %v6736_v5 = vpop.eup %4460  ;;  %v1683_v12 = vsel %vm7844_vm14, %v6731_v44, 0.0  ;;  %4480 = vpow2.f32 %v1639_v25  ;;  %v2420_v51 = vsub.f32 %v7848_v31, %v2382_v55  ;;  %v1647_v25 = vmul.f32 1.442695, %v1576_v48  ;;  %vm7874_vm14 = vmmov %vm7836_vm0 }
 0x39c   : > { %v1662_v19 = vadd.f32 %v6660_v54, %v1661_v56  ;;  %v6746_v13 = vpop.eup %4462  ;;  %2474 = vadd.xlane.f32.xlu0 %v2473_v18  ;;  %v1682_v39 = vadd.f32 %v1681_v45, %v1680_v0  ;;  %v6754_v33 = vpop.xlane.xlu0 %2375  ;;  %v7845_v56 = vld [vmem:[#allocation65_spill] sm:$0xff]  ;;  %v2476_v63 = vsel %vm7846_vm11, %v6736_v5, 0.0  ;;  %4482 = vpow2.f32 %v1635_v40  ;;  %v7850_v45 = vld [vmem:[#allocation72_spill] sm:$0xff]  ;;  %vm7875_vm11 = vmmov %vm7836_vm0 }
 0x39d   : > { %v6751_v6 = vpop.eup %4464  ;;  %v2416_v15 = vsub.f32 %v7845_v56, %v6700_v57  ;;  %v1643_v57 = vmul.f32 1.442695, %v1574_v58  ;;  %4484 = vpow2.f32 %v2440_v30  ;;  %v2421_v40 = vsub.f32 %v7850_v45, %v2385_v21  ;;  %v2388_v1 = vpop.xlane.xlu1 %2387  ;;  %v7852_v56 = vld [vmem:[#allocation73_spill] sm:$0xff] }
 0x39e   : > { %v1663_v37 = vadd.f32 %v6666_v35, %v1662_v19  ;;  %v6758_v7 = vpop.eup %4466  ;;  %v1684_v42 = vadd.f32 %v1683_v12, %v1682_v39  ;;  %v1685_v19 = vsel %vm7847_vm1, %v6746_v13, 0.0  ;;  %v7851_v39 = vld [vmem:[#allocation68_spill] sm:$0xff]  ;;  %v2422_v30 = vsub.f32 %v7852_v56, %v2388_v1  ;;  %vm7876_vm1 = vmmov %vm7836_vm0 }
 0x39f   : > { %v6762_v20 = vpop.eup %4468  ;;  %v2442_v55 = vmul.f32 1.442695, %v2416_v15  ;;  %v2450_v48 = vmul.f32 1.442695, %v2420_v51  ;;  %4486 = vpow2.f32 %v1643_v57  ;;  %v7857_v51 = vld [vmem:[#allocation67_spill] sm:$0xff] }
 0x3a0   : > { %v1664_v62 = vadd.f32 %v6672_v17, %v1663_v37  ;;  %v6769_v2 = vpop.eup %4470  ;;  %2477 = vadd.xlane.f32.xlu0 %v2476_v63  ;;  %v1686_v10 = vadd.f32 %v1685_v19, %v1684_v42  ;;  %v2379_v0 = vpop.xlane.xlu0 %2378  ;;  %v1687_v37 = vsel %vm7849_vm5, %v6758_v7, 0.0  ;;  %v2482_v42 = vsel %vm7853_vm10, %v6762_v20, 0.0  ;;  %vm7877_vm5 = vmmov %vm7836_vm0 }
 0x3a1   : > { %v6780_v18 = vpop.eup %4472  ;;  %v1689_v9 = vsel %vm7854_vm13, %v6769_v2, 0.0  ;;  %v2454_v19 = vmul.f32 1.442695, %v2422_v30  ;;  %4488 = vpow2.f32 %v1647_v25  ;;  %v6799_v57 = vpop.xlane.xlu1 %2390  ;;  %vm7881_vm10 = vmmov %vm7836_vm0 }
 0x3a2   : > { %v1665_v34 = vadd.f32 %v6751_v6, %v1664_v62  ;;  %v2419_v62 = vsub.f32 %v7851_v39, %v2379_v0  ;;  %v1688_v58 = vadd.f32 %v1687_v37, %v1686_v10  ;;  %v6789_v59 = vpop.eup %4474  ;;  %v7856_v10 = vld [vmem:[#allocation66_spill] sm:$0xff]  ;;  %v2452_v0 = vmul.f32 1.442695, %v2421_v40  ;;  %vm7883_vm13 = vmmov %vm7836_vm0 }
 0x3a3   : > { %v6793_v31 = vpop.eup %4476  ;;  %v2418_v39 = vsub.f32 %v7857_v51, %v6754_v33  ;;  %v1693_v25 = vsel %vm7858_vm2, %v6789_v59, 0.0  ;;  %vm7891_vm2 = vmmov %vm7836_vm0 }
 0x3a4   : > { %v1666_v52 = vrot.slane %v1665_v34, 4  ;;  %v2448_v63 = vmul.f32 1.442695, %v2419_v62  ;;  %2483 = vadd.xlane.f32.xlu0 %v2482_v42  ;;  %v1690_v15 = vadd.f32 %v1689_v9, %v1688_v58  ;;  %v6803_v62 = vpop.eup %4478  ;;  %v1695_v40 = vsel %vm7859_vm7, %v6793_v31, 0.0  ;;  %vm7893_vm7 = vmmov %vm7836_vm0 }
 0x3a5   : > { %v6805_v58 = vpop.eup %4480  ;;  %v2446_v9 = vmul.f32 1.442695, %v2418_v39 }
 0x3a6   : > { %v1667_v12 = vadd.f32 %v1666_v52, %v1665_v34  ;;  %v1691_v34 = vsel %vm7855_vm8, %v6780_v18, 0.0  ;;  %v2417_v52 = vsub.f32 %v7856_v10, %v6725_v50  ;;  %4490 = vpow2.f32 %v2448_v63  ;;  %v2394_v63 = vpop.xlane.xlu1 %2393  ;;  %vm7889_vm8 = vmmov %vm7836_vm0 }
 0x3a7   : > { %v1692_v37 = vadd.f32 %v1691_v34, %v1690_v15  ;;  %4492 = vpow2.f32 %v2454_v19  ;;  %v1701_v10 = vsel %vm7861_vm15, %v6805_v58, 0.0  ;;  %vm7897_vm15 = vmmov %vm7836_vm0 }
 0x3a8   : > { %v1668_v21 = vrot.slane %v1667_v12, 2  ;;  %4494 = vpow2.f32 %v2450_v48  ;;  %v2444_v33 = vmul.f32 1.442695, %v2417_v52  ;;  %v1697_v48 = vsel %vm7836_vm0, %v6803_v62, 0.0  ;;  %v7862_v52 = vld [vmem:[#allocation76_spill] sm:$0xff] }
 0x3a9   : > { %v1694_v1 = vadd.f32 %v1693_v25, %v1692_v37  ;;  %4496 = vpow2.f32 %v2442_v55 }
 0x3aa   : > { %v1669_v45 = vadd.f32 %v1668_v21, %v1667_v12  ;;  %v6809_v12 = vpop.eup %4482  ;;  %4498 = vpow2.f32 %v2452_v0  ;;  %v2424_v0 = vsub.f32 %v7862_v52, %v2394_v63  ;;  %v2397_v37 = vpop.xlane.xlu1 %2396 }
 0x3ab   : > { %v1696_v56 = vadd.f32 %v1695_v40, %v1694_v1  ;;  %v6811_v30 = vpop.eup %4484  ;;  %v1699_v55 = vsel %vm7860_vm9, %v6809_v12, 0.0  ;;  %vm7894_vm9 = vmmov %vm7836_vm0 }
 0x3ac   : > { %v1670_v50 = vrot.slane %v1669_v45, 1  ;;  %v6817_v21 = vpop.eup %4486 }
 0x3ad   : > { %v1698_v15 = vadd.f32 %v1697_v48, %v1696_v56  ;;  %v6819_v34 = vpop.eup %4488  ;;  %v1703_v1 = vsel %vm7866_vm4, %v6817_v21, 0.0  ;;  %vm7908_vm4 = vmmov %vm7836_vm0 }
 0x3ae   : > { %v1671_v42 = vadd.f32 %v1670_v50, %v1669_v45  ;;  %v2400_v48 = vpop.xlane.xlu1 %2399 }
 0x3af   : > { %v1700_v19 = vadd.f32 %v1699_v55, %v1698_v15  ;;  %v1705_v15 = vsel %vm7871_vm3, %v6819_v34, 0.0  ;;  %vm7911_vm3 = vmmov %vm7836_vm0 }
 0x3b0   : > { %4500 = vrcp.f32 %v1671_v42  ;;  %v6824_v45 = vpop.eup %4490  ;;  %v2458_v42 = vmul.f32 1.442695, %v2424_v0 }
 0x3b1   : > { %4502 = vpow2.f32 %v2444_v33  ;;  %7863 = vst [vmem:[#allocation50_spill] sm:$0xff] %v6824_v45  ;;  %v1702_v51 = vadd.f32 %v1701_v10, %v1700_v19  ;;  %v6826_v39 = vpop.eup %4492  ;;  %v2497_v25 = vsel %vm7865_vm12, %v6824_v45, 0.0  ;;  %v7873_v19 = vld [vmem:[#allocation80_spill] sm:$0xff]  ;;  %vm7905_vm12 = vmmov %vm7836_vm0 }
 0x3b2   : > { %4504 = vpow2.f32 %v2446_v9  ;;  %7864 = vst [vmem:[#allocation7_spill] sm:$0xff] %v6826_v39  ;;  %v6832_v50 = vpop.eup %4494  ;;  %2498 = vadd.xlane.f32.xlu1 %v2497_v25  ;;  %v2506_v40 = vsel %vm7868_vm6, %v6826_v39, 0.0  ;;  %v7870_v9 = vld [vmem:[#allocation78_spill] sm:$0xff]  ;;  %v2426_v10 = vsub.f32 %v7873_v19, %v2400_v48  ;;  %v7879_v19 = vld [vmem:[#allocation81_spill] sm:$0xff]  ;;  %vm7909_vm6 = vmmov %vm7836_vm0 }
 0x3b3   : > { %7867 = vst [vmem:[#allocation40_spill] sm:$0xff] %v6832_v50  ;;  %v1704_v33 = vadd.f32 %v1703_v1, %v1702_v51  ;;  %v6836_v56 = vpop.eup %4496  ;;  %v2425_v63 = vsub.f32 %v7870_v9, %v2397_v37  ;;  %2507 = vadd.xlane.f32.xlu0 %v2506_v40  ;;  %v2500_v25 = vsel %vm7874_vm14, %v6832_v50, 0.0  ;;  %v2485_v51 = vsel %vm7875_vm11, %v6811_v30, 0.0  ;;  %v2403_v40 = vpop.xlane.xlu1 %2402  ;;  %vm7912_vm14 = vmmov %vm7836_vm0 }
 0x3b4   : > { %7869 = vst [vmem:[#allocation52_spill] sm:$0xff] %v6836_v56  ;;  %v6841_v55 = vpop.eup %4498  ;;  %4506 = vpow2.f32 %v2458_v42  ;;  %vm7913_vm11 = vmmov %vm7836_vm0 }
 0x3b5   : > { %7872 = vst [vmem:[#allocation54_spill] sm:$0xff] %v6841_v55  ;;  %v1706_v52 = vadd.f32 %v1705_v15, %v1704_v33  ;;  %v2460_v37 = vmul.f32 1.442695, %v2425_v63  ;;  %v2503_v9 = vsel %vm7876_vm1, %v6841_v55, 0.0  ;;  %v2488_v33 = vsel %vm7877_vm5, %v6836_v56, 0.0  ;;  %v7887_v56 = vld [vmem:[#allocation44_spill] sm:$0xff]  ;;  %vm7914_vm1 = vmmov %vm7836_vm0 }
 0x3b6   : > { %2501 = vadd.xlane.f32.xlu1 %v2500_v25  ;;  %v2462_v15 = vmul.f32 1.442695, %v2426_v10  ;;  %v2427_v25 = vsub.f32 %v7879_v19, %v2403_v40  ;;  %vm7917_vm5 = vmmov %vm7836_vm0 }
 0x3b7   : > { %v1707_v0 = vrot.slane %v1706_v52, 4  ;;  %2486 = vadd.xlane.f32.xlu0 %v2485_v51  ;;  %4508 = vpow2.f32 %v2460_v37  ;;  %v1869_v19 = vpop.permute.xlu1 %1868 }
 0x3b8   : > { %4510 = vpow2.f32 %v2462_v15 }
 0x3b9   : > { %v1708_v39 = vadd.f32 %v1707_v0, %v1706_v52  ;;  %v2406_v0 = vpop.xlane.xlu0 %2405 }
 0x3ba   : > { %v6848_v1 = vpop.eup %4500  ;;  %2504 = vadd.xlane.f32.xlu1 %v2503_v9 }
 0x3bb   : > { %v6854_v48 = vpop.eup %4502  ;;  %v6859_v50 = vmul.f32 %v6848_v1, %v6611_v11  ;;  %v6865_v63 = vmul.f32 %v6848_v1, %v6615_v47  ;;  %v6869_v51 = vmul.f32 %v6848_v1, %v6619_v26  ;;  %v6873_v10 = vmul.f32 %v6848_v1, %v6622_v61  ;;  %2489 = vadd.xlane.f32.xlu0 %v2488_v33  ;;  %v1874_v37 = vpop.permute.xlu1 %1873 }
 0x3bc   : > { %7878 = vst [vmem:[#allocation33_spill] sm:$0xff] %v6854_v48  ;;  %v6861_v42 = vpop.eup %4504  ;;  %v6877_v52 = vmul.f32 %v6848_v1, %v6626_v8  ;;  %v2464_v11 = vmul.f32 1.442695, %v2427_v25  ;;  %v1709_v40 = vrot.slane %v1708_v39, 2  ;;  %v6881_v47 = vmul.f32 %v6848_v1, %v6628_v38  ;;  %v7882_v25 = vld [vmem:[#allocation83_spill] sm:$0xff] }
 0x3bd   : > { %7880 = vst [vmem:[#allocation35_spill] sm:$0xff] %v6861_v42  ;;  %v6885_v26 = vmul.f32 %v6848_v1, %v6631_v43  ;;  %v2491_v8 = vsel %vm7881_vm10, %v6854_v48, 0.0  ;;  %v2428_v38 = vsub.f32 %v7882_v25, %v2406_v0  ;;  %v2494_v43 = vsel %vm7883_vm13, %v6861_v42, 0.0  ;;  %v7884_v0 = vld [vmem:[#allocation41_spill] sm:$0xff]  ;;  %vm7919_vm10 = vmmov %vm7836_vm0 }
 0x3be   : > { %v1710_v55 = vadd.f32 %v1709_v40, %v1708_v39  ;;  %4512 = vpow2.f32 %v2464_v11  ;;  %v6900_v33 = vmul.f32 %v6848_v1, %v6633_v60  ;;  %v6904_v61 = vmul.f32 %v6848_v1, %v6636_v14  ;;  %v7885_v40 = vld [vmem:[#allocation42_spill] sm:$0xff]  ;;  %vm7920_vm13 = vmmov %vm7836_vm0 }
 0x3bf   : > { %v6908_v15 = vmul.f32 %v6848_v1, %v6639_v41  ;;  %v6912_v39 = vmul.f32 %v6848_v1, %v6643_v22  ;;  %v6916_v11 = vmul.f32 %v6848_v1, %v6646_v49  ;;  %v1985_v60 = vadd.f32 %v7884_v0, %v1869_v19  ;;  %2492 = vadd.xlane.f32.xlu0 %v2491_v8  ;;  %v7886_v22 = vld [vmem:[#allocation43_spill] sm:$0xff]  ;;  %v6930_v0 = vpop.eup %4506 }
 0x3c0   : > { %v1711_v9 = vrot.slane %v1710_v55, 1  ;;  %v1987_v25 = vadd.f32 %v7885_v40, %v1869_v19  ;;  %v6924_v41 = vmul.f32 %v6848_v1, %v6652_v27  ;;  %v1991_v48 = vadd.f32 %v7886_v22, %v1874_v37 }
 0x3c1   : > { %v1993_v45 = vadd.f32 %v7887_v56, %v1874_v37  ;;  %v6936_v8 = vmul.f32 %v6848_v1, %v6657_v23  ;;  %v6940_v27 = vmul.f32 %v6848_v1, %v6660_v54  ;;  %v6950_v37 = vpop.permute.xlu0 %509  ;;  %v6954_v40 = vmul.f32 %v6848_v1, %v6672_v17  ;;  %v7888_v23 = vld [vmem:[#allocation10_spill] sm:$0xff] }
 0x3c2   : > { %v1712_v42 = vadd.f32 %v1711_v9, %v1710_v55  ;;  %v6944_v55 = vmul.f32 %v6848_v1, %v6666_v35  ;;  %v6948_v9 = vpack.c.bf16 %v1991_v48, %v1985_v60  ;;  %v601_v22 = vadd.f32 %v7888_v23, %v6950_v37  ;;  %v6967_v48 = vpop.eup %4508 }
 0x3c3   : > { %v6946_v56 = vpack.c.bf16 %v1993_v45, %v1987_v25  ;;  %2495 = vadd.xlane.f32.xlu0 %v2494_v43  ;;  %v6965_v45 = vmul.f32 %v6848_v1, %v6751_v6  ;;  %v2466_v17 = vmul.f32 1.442695, %v2428_v38  ;;  %v2512_v43 = vsel %vm7891_vm2, %v6930_v0, 0.0  ;;  %v505_v6 = vld [vmem:[%s7306_s7 + $0x8] sm:$0xff]  ;;  %vm7924_vm2 = vmmov %vm7836_vm0 }
 0x3c4   : > { %4514 = vrcp.f32 %v1712_v42  ;;  %3965 = vmatprep.mubr.msk.f32.mxu1 %vm7889_vm8, %v601_v22  ;;  %v6971_v42 = vpop.eup %4510  ;;  %v2515_v1 = vsel %vm7893_vm7, %v6967_v48, 0.0  ;;  %vm7923_vm8 = vmmov %vm7836_vm0 }
 0x3c5   : > { %4119 = vmatprep.subr.bf16.mxu0 %v6946_v56  ;;  %7890 = vst [vmem:[#allocation45_spill] sm:$0xff] %v6971_v42  ;;  %4516 = vpow2.f32 %v2466_v17  ;;  %v2518_v23 = vsel %vm7836_vm0, %v6971_v42, 0.0  ;;  %vm7927_vm7 = vmmov %vm7836_vm0 }
 0x3c6   : > { %4121 = vmatpush1.bf16.msra.mxu0 %v6948_v9 }
 0x3c7   : > { %2513 = vadd.xlane.f32.xlu0 %v2512_v43 }
 0x3c8   : > { %v6977_v25 = vpop.eup %4512 }
 0x3c9   : > { %7892 = vst [vmem:[#allocation47_spill] sm:$0xff] %v6977_v25  ;;  %v2521_v22 = vsel %vm7894_vm9, %v6977_v25, 0.0  ;;  %vm7930_vm9 = vmmov %vm7836_vm0 }
 0x3cb   : > { %514 = vperm.xlu1 %4285, %v505_v6   ;;  %2516 = vadd.xlane.f32.xlu0 %v2515_v1 }
 0x3ce   : > { %v4515_v38 = vpop.eup %4514 }
 0x3cf   : > { %v1716_v60 = vmul.f32 %v4515_v38, %v6677_v16  ;;  %v1718_v43 = vmul.f32 %v4515_v38, %v6680_v4  ;;  %v1720_v35 = vmul.f32 %v4515_v38, %v6687_v28  ;;  %v1722_v17 = vmul.f32 %v4515_v38, %v6697_v24  ;;  %2519 = vadd.xlane.f32.xlu0 %v2518_v23 }
 0x3d0   : > { %v1724_v54 = vmul.f32 %v4515_v38, %v6709_v53  ;;  %v1726_v6 = vmul.f32 %v4515_v38, %v6721_v29  ;;  %v1728_v1 = vmul.f32 %v4515_v38, %v6731_v44  ;;  %v1730_v19 = vmul.f32 %v4515_v38, %v6746_v13 }
 0x3d1   : > { %v4073_v49 = vpack.c.bf16 %v1718_v43, %v1716_v60  ;;  %v4077_v14 = vpack.c.bf16 %v1722_v17, %v1720_v35  ;;  %v1732_v25 = vmul.f32 %v4515_v38, %v6758_v7  ;;  %v1734_v16 = vmul.f32 %v4515_v38, %v6769_v2 }
 0x3d2   : > { %v4081_v4 = vpack.c.bf16 %v1726_v6, %v1724_v54  ;;  %v4085_v42 = vpack.c.bf16 %v1730_v19, %v1728_v1  ;;  %v1736_v28 = vmul.f32 %v4515_v38, %v6780_v18  ;;  %v1738_v24 = vmul.f32 %v4515_v38, %v6789_v59  ;;  %v7009_v59 = vpop.eup %4516 }
 0x3d3   : > { %4074 = vmatprep.subr.bf16.mxu1 %v4073_v49  ;;  %v4089_v53 = vpack.c.bf16 %v1734_v16, %v1732_v25  ;;  %v1740_v29 = vmul.f32 %v4515_v38, %v6793_v31  ;;  %v1742_v44 = vmul.f32 %v4515_v38, %v6803_v62  ;;  %v1744_v13 = vmul.f32 %v4515_v38, %v6809_v12 }
 0x3d4   : > { %v7895_v7 = vpack.c.bf16 %v6865_v63, %v6859_v50  ;;  %v4093_v2 = vpack.c.bf16 %v1738_v24, %v1736_v28  ;;  %v1746_v54 = vmul.f32 %v4515_v38, %v6805_v58  ;;  %v1748_v19 = vmul.f32 %v4515_v38, %v6817_v21  ;;  %2522 = vadd.xlane.f32.xlu0 %v2521_v22  ;;  %v7898_v58 = vld [vmem:[#allocation74_spill] sm:$0xff]  ;;  %v7916_v24 = vld [vmem:[#allocation12_spill] sm:$0xff] }
 0x3d5   : > { %v1750_v18 = vmul.f32 %v4515_v38, %v6819_v34  ;;  %v4097_v49 = vpack.c.bf16 %v1742_v44, %v1740_v29  ;;  %v7896_v12 = vpack.c.bf16 %v6873_v10, %v6869_v51  ;;  %v2524_v50 = vsel %vm7897_vm15, %v7009_v59, 0.0  ;;  %vm7931_vm15 = vmmov %vm7836_vm0 }
 0x3d6   : > { %4076 = vmatpush1.bf16.msra.mxu1 %v7895_v7  ;;  %v4101_v31 = vpack.c.bf16 %v1746_v54, %v1744_v13  ;;  %v2423_v21 = vsub.f32 %v7898_v58, %v6799_v57  ;;  %v7899_v34 = vpack.c.bf16 %v6881_v47, %v6877_v52  ;;  %v7901_v51 = vpack.c.bf16 %v6908_v15, %v6904_v61  ;;  %v7925_v58 = vld [vmem:[#allocation33_spill] sm:$0xff] }
 0x3d7   : > { %4078 = vmatprep.subr.bf16.mxu1 %v4077_v14  ;;  %v4105_v62 = vpack.c.bf16 %v1750_v18, %v1748_v19  ;;  %v7900_v14 = vpack.c.bf16 %v6900_v33, %v6885_v26  ;;  %v7902_v57 = vpack.c.bf16 %v6916_v11, %v6912_v39  ;;  %v7903_v10 = vpack.c.bf16 %v6936_v8, %v6924_v41  ;;  %v7907_v39 = vld [vmem:[#allocation8_spill] sm:$0xff] }
 0x3d8   : > { %2525 = vadd.xlane.f32.xlu0 %v2524_v50  ;;  %v2456_v63 = vmul.f32 1.442695, %v2423_v21  ;;  %v7904_v47 = vpack.c.bf16 %v6944_v55, %v6940_v27  ;;  %v7906_v15 = vpack.c.bf16 %v6965_v45, %v6954_v40  ;;  %v599_v11 = vadd.f32 %v7907_v39, %v6950_v37 }
 0x3da   : > { %4080 = vmatpush1.bf16.msra.mxu1 %v7896_v12  ;;  %4518 = vpow2.f32 %v2456_v63 }
 0x3db   : > { %4082 = vmatprep.subr.bf16.mxu1 %v4081_v4  ;;  %v7915_v4 = vld [vmem:[#allocation11_spill] sm:$0xff] }
 0x3de   : > { %4084 = vmatpush1.bf16.msra.mxu1 %v7899_v34  ;;  %v7926_v34 = vld [vmem:[#allocation54_spill] sm:$0xff] }
 0x3df   : > { %4086 = vmatprep.subr.bf16.mxu1 %v4085_v42  ;;  %v7910_v42 = vmov 0.0  }
 0x3e2   : > { %4088 = vmatpush1.bf16.msra.mxu1 %v7900_v14 }
 0x3e3   : > { %4090 = vmatprep.subr.bf16.mxu1 %v4089_v53 }
 0x3e4   : > { %v7033_v52 = vpop.eup %4518 }
 0x3e5   : > { %v2509_v26 = vsel %vm7905_vm12, %v7033_v52, 0.0  ;;  %vm7932_vm12 = vmmov %vm7836_vm0 }
 0x3e6   : > { %4092 = vmatpush1.bf16.msra.mxu1 %v7901_v51 }
 0x3e7   : > { %4094 = vmatprep.subr.bf16.mxu1 %v4093_v2  ;;  %v7918_v2 = vld [vmem:[#allocation50_spill] sm:$0xff] }
 0x3ea   : > { %4096 = vmatpush1.bf16.msra.mxu1 %v7902_v57  ;;  %v7928_v57 = vld [vmem:[#allocation35_spill] sm:$0xff] }
 0x3eb   : > { %4098 = vmatprep.subr.bf16.mxu1 %v4097_v49  ;;  %v7921_v49 = vld [vmem:[#allocation52_spill] sm:$0xff] }
 0x3ee   : > { %4100 = vmatpush1.bf16.msra.mxu1 %v7903_v10 }
 0x3ef   : > { %4102 = vmatprep.subr.bf16.mxu1 %v4101_v31  ;;  %2510 = vadd.xlane.f32.xlu1 %v2509_v26 }
 0x3f0   : > { %v2409_v61 = vpop.xlane.xlu1 %2408 }
 0x3f1   : > { %v2429_v33 = vsub.f32 %v7815_v3, %v2409_v61 }
 0x3f2   : > { %4104 = vmatpush1.bf16.msra.mxu1 %v7904_v47  ;;  %v7929_v47 = vld [vmem:[#allocation7_spill] sm:$0xff] }
 0x3f3   : > { %4106 = vmatprep.subr.bf16.mxu1 %v4105_v62  ;;  %v2468_v41 = vmul.f32 1.442695, %v2429_v33  ;;  %v7922_v62 = vld [vmem:[#allocation40_spill] sm:$0xff] }
 0x3f5   : > { %4520 = vpow2.f32 %v2468_v41 }
 0x3f6   : > { %4108 = vmatpush1.bf16.msra.mxu1 %v7906_v15 }
 0x3f7   : > { %4158 = vmatprep.subr.bf16.mxu1 %v6946_v56 }
 0x3f9   : > { %1822 = vmatmul.mubr.f32.vlgmr.msra.gmra.mrb[6].mxu1 %v599_v11 }
 0x3fa   : > { %4159 = vmatpush1.bf16.msra.mxu1 %v6948_v9 }
 0x3ff   : > { %v7048_v8 = vpop.eup %4520 }
 0x400   : > { %v2527_v27 = vsel %vm7908_vm4, %v7048_v8, 0.0  ;;  %vm7933_vm4 = vmmov %vm7836_vm0 }
 0x401   : > { %2528 = vadd.xlane.f32.xlu1 %v2527_v27 }
 0x425   : > { %v2472_v3 = vpop.xlane.xlu0 %2471 }
 0x426   : > { %4522 = vrcp.f32 %v2472_v3 }
 0x427   : > { %v2481_v40 = vpop.xlane.xlu1 %2480 }
 0x429   : > { %v2475_v55 = vpop.xlane.xlu0 %2474 }
 0x42a   : > { %4524 = vrcp.f32 %v2475_v55 }
 0x42d   : > { %v2478_v35 = vpop.xlane.xlu0 %2477 }
 0x42e   : > { %4526 = vrcp.f32 %v2478_v35 }
 0x42f   : > { %4528 = vrcp.f32 %v2481_v40 }
 0x430   : > { %v4523_v37 = vpop.eup %4522 }
 0x431   : > { %v2531_v56 = vmul.f32 %v4523_v37, %v6704_v36  ;;  %v2484_v45 = vpop.xlane.xlu0 %2483 }
 0x432   : > { %4530 = vrcp.f32 %v2484_v45 }
 0x433   : > { %3995 = vmatmul.mubr.msk.f32.vlgmr.msra.gmra.mrb[56].mxu0 %vm7909_vm6, %v2531_v56  ;;  %vm7934_vm6 = vmmov %vm7836_vm0 }
 0x434   : > { %v4525_v9 = vpop.eup %4524  ;;  %2700 = vmatprep.mubr.f32.mxu0 %v7910_v42 }
 0x435   : > { %v2533_v60 = vmul.f32 %v4525_v9, %v6692_v32 }
 0x437   : > { %3996 = vmatmul.mubr.msk.f32.gmra.mrb[58].mxu0 %vm7911_vm3, %v2533_v60  ;;  %vm7936_vm3 = vmmov %vm7836_vm0 }
 0x438   : > { %v4527_v25 = vpop.eup %4526  ;;  %2706 = vmatprep.mubr.f32.mxu0 %v7910_v42 }
 0x439   : > { %v2535_v38 = vmul.f32 %v4527_v25, %v6736_v5  ;;  %v4529_v23 = vpop.eup %4528 }
 0x43a   : > { %v2537_v36 = vmul.f32 %v4529_v23, %v6716_v46 }
 0x43b   : > { %3997 = vmatmul.mubr.msk.f32.gmra.mrb[60].mxu0 %vm7912_vm14, %v2535_v38  ;;  %vm7938_vm14 = vmmov %vm7836_vm0 }
 0x43c   : > { %2712 = vmatprep.mubr.f32.mxu0 %v7910_v42  ;;  %v4531_v22 = vpop.eup %4530 }
 0x43d   : > { %v2539_v32 = vmul.f32 %v4531_v22, %v6762_v20 }
 0x43f   : > { %3998 = vmatmul.mubr.msk.f32.gmra.mrb[62].mxu0 %vm7913_vm11, %v2537_v36  ;;  %v2499_v43 = vpop.xlane.xlu1 %2498  ;;  %vm7939_vm11 = vmmov %vm7836_vm0 }
 0x440   : > { %v2508_v17 = vpop.xlane.xlu0 %2507  ;;  %2718 = vmatprep.mubr.f32.mxu0 %v7910_v42  ;;  %4532 = vrcp.f32 %v2499_v43 }
 0x443   : > { %3999 = vmatmul.mubr.msk.f32.gmra.mrb[64].mxu0 %vm7914_vm1, %v2539_v32  ;;  %v2502_v6 = vpop.xlane.xlu1 %2501  ;;  %vm7940_vm1 = vmmov %vm7836_vm0 }
 0x444   : > { %v2487_v5 = vpop.xlane.xlu0 %2486  ;;  %2724 = vmatprep.mubr.f32.mxu0 %v7910_v42 }
 0x445   : > { %4534 = vrcp.f32 %v2487_v5  ;;  %v7941_v5 = vld [vmem:[#allocation13_spill] sm:$0xff] }
 0x446   : > { %4536 = vrcp.f32 %v2502_v6 }
 0x447   : > { %v2505_v1 = vpop.xlane.xlu1 %2504 }
 0x448   : > { %v2490_v46 = vpop.xlane.xlu0 %2489 }
 0x449   : > { %4538 = vrcp.f32 %v2490_v46  ;;  %v7942_v46 = vld [vmem:[#allocation15_spill] sm:$0xff] }
 0x44a   : > { %4540 = vrcp.f32 %v2505_v1  ;;  %v4533_v20 = vpop.eup %4532 }
 0x44b   : > { %v515_v16 = vpop.permute.xlu1 %514  ;;  %v2549_v54 = vmul.f32 %v4533_v20, %v7918_v2 }
 0x44c   : > { %v605_v28 = vadd.f32 %v7915_v4, %v515_v16  ;;  %v607_v53 = vadd.f32 %v7916_v24, %v515_v16  ;;  %v2493_v29 = vpop.xlane.xlu0 %2492  ;;  %v7943_v4 = vld [vmem:[#allocation9_spill] sm:$0xff]  ;;  %v7944_v24 = vld [vmem:[#allocation14_spill] sm:$0xff] }
 0x44d   : > { %4542 = vrcp.f32 %v2493_v29 }
 0x44e   : > { %3966 = vmatprep.mubr.msk.f32.mxu1 %vm7917_vm5, %v607_v53  ;;  %4544 = vrcp.f32 %v2508_v17  ;;  %vm2912_vm5 = vcmask 105472  }
 0x44f   : > { %v4535_v44 = vpop.eup %4534  ;;  %1828 = vmatmul.mubr.f32.gmra.mrb[8].mxu1 %v605_v28 }
 0x450   : > { %v2496_v13 = vpop.xlane.xlu0 %2495  ;;  %v2541_v7 = vmul.f32 %v4535_v44, %v6811_v30  ;;  %2748 = vmatprep.mubr.f32.mxu1 %v7910_v42  ;;  %v4537_v19 = vpop.eup %4536 }
 0x451   : > { %4546 = vrcp.f32 %v2496_v13  ;;  %v2551_v12 = vmul.f32 %v4537_v19, %v7922_v62 }
 0x452   : > { %4000 = vmatmul.mubr.msk.f32.gmra.mrb[66].mxu0 %vm7919_vm10, %v2541_v7  ;;  %vm3103_vm10 = vcmask 97280  }
 0x453   : > { %v4539_v18 = vpop.eup %4538  ;;  %4004 = vmatmul.mubr.msk.f32.vlgmr.msra.gmra.mrb[10].mxu1 %vm7920_vm13, %v2549_v54  ;;  %2730 = vmatprep.mubr.f32.mxu0 %v7910_v42  ;;  %vm7961_vm13 = vmmov %vm7836_vm0 }
 0x454   : > { %v2543_v31 = vmul.f32 %v4539_v18, %v7921_v49  ;;  %2754 = vmatprep.mubr.f32.mxu1 %v7910_v42  ;;  %v4541_v30 = vpop.eup %4540  ;;  %v2514_v61 = vpop.xlane.xlu0 %2513 }
 0x455   : > { %v2553_v63 = vmul.f32 %v4541_v30, %v7926_v34  ;;  %v7946_v30 = vld [vmem:[#allocation16_spill] sm:$0xff] }
 0x456   : > { %4001 = vmatmul.mubr.msk.f32.gmra.mrb[68].mxu0 %vm7923_vm8, %v2543_v31  ;;  %v7945_v31 = vld [vmem:[#allocation17_spill] sm:$0xff]  ;;  %vm3216_vm8 = vcmask 89088  }
 0x457   : > { %v4543_v50 = vpop.eup %4542  ;;  %4005 = vmatmul.mubr.msk.f32.gmra.mrb[12].mxu1 %vm7924_vm2, %v2551_v12  ;;  %2736 = vmatprep.mubr.f32.mxu0 %v7910_v42  ;;  %vm7962_vm2 = vmmov %vm7836_vm0 }
 0x458   : > { %v2545_v21 = vmul.f32 %v4543_v50, %v7925_v58  ;;  %2760 = vmatprep.mubr.f32.mxu1 %v7910_v42  ;;  %v4545_v14 = vpop.eup %4544  ;;  %v2517_v33 = vpop.xlane.xlu0 %2516 }
 0x459   : > { %v2555_v26 = vmul.f32 %v4545_v14, %v7929_v47 }
 0x45a   : > { %4002 = vmatmul.mubr.msk.f32.gmra.mrb[70].mxu0 %vm7927_vm7, %v2545_v21  ;;  %vm7963_vm7 = vmmov %vm7836_vm0 }
 0x45b   : > { %v4547_v51 = vpop.eup %4546  ;;  %4006 = vmatmul.mubr.msk.f32.gmra.mrb[14].mxu1 %vm7836_vm0, %v2553_v63  ;;  %2742 = vmatprep.mubr.f32.mxu0 %v7910_v42  ;;  %vm3329_vm0 = vcmask 7168  }
 0x45c   : > { %v2547_v10 = vmul.f32 %v4547_v51, %v7928_v57  ;;  %2766 = vmatprep.mubr.f32.mxu1 %v7910_v42  ;;  %v2520_v39 = vpop.xlane.xlu0 %2519 }
 0x45e   : > { %4003 = vmatmul.mubr.msk.f32.gmra.mrb[72].mxu0 %vm7930_vm9, %v2547_v10  ;;  %vm7964_vm9 = vmmov %vm7940_vm1 }
 0x45f   : > { %4007 = vmatmul.mubr.msk.f32.gmra.mrb[16].mxu1 %vm7931_vm15, %v2555_v26  ;;  %vm7965_vm15 = vmmov %vm7940_vm1 }
 0x460   : > { %2772 = vmatprep.mubr.f32.mxu1 %v7910_v42 }
 0x461   : > { %v2523_v11 = vpop.xlane.xlu0 %2522 }
 0x465   : > { %v2526_v55 = vpop.xlane.xlu0 %2525 }
 0x47c   : > { %v2511_v15 = vpop.xlane.xlu1 %2510 }
 0x47d   : > { %4548 = vrcp.f32 %v2511_v15 }
 0x47e   : > { %4550 = vrcp.f32 %v2514_v61 }
 0x47f   : > { %4552 = vrcp.f32 %v2517_v33  ;;  %v7947_v33 = vld [vmem:[#allocation19_spill] sm:$0xff] }
 0x480   : > { %4554 = vrcp.f32 %v2520_v39 }
 0x481   : > { %4556 = vrcp.f32 %v2523_v11 }
 0x482   : > { %4558 = vrcp.f32 %v2526_v55 }
 0x487   : > { %v4549_v41 = vpop.eup %4548 }
 0x488   : > { %v2557_v27 = vmul.f32 %v4549_v41, %v7033_v52  ;;  %v4551_v3 = vpop.eup %4550  ;;  %v7935_v52 = vld [vmem:[#allocation45_spill] sm:$0xff]  ;;  %v7948_v41 = vld [vmem:[#allocation18_spill] sm:$0xff] }
 0x489   : > { %v2559_v40 = vmul.f32 %v4551_v3, %v6930_v0  ;;  %v4553_v35 = vpop.eup %4552  ;;  %v7937_v0 = vld [vmem:[#allocation47_spill] sm:$0xff] }
 0x48a   : > { %4008 = vmatmul.mubr.msk.f32.gmra.mrb[18].mxu1 %vm7932_vm12, %v2557_v27  ;;  %v2561_v56 = vmul.f32 %v4553_v35, %v6967_v48  ;;  %v4555_v45 = vpop.eup %4554  ;;  %vm3449_vm12 = vcmask 121856  }
 0x48b   : > { %2778 = vmatprep.mubr.f32.mxu1 %v7910_v42  ;;  %v2563_v9 = vmul.f32 %v4555_v45, %v7935_v52  ;;  %v4557_v60 = vpop.eup %4556 }
 0x48c   : > { %v2565_v25 = vmul.f32 %v4557_v60, %v7937_v0  ;;  %v4559_v38 = vpop.eup %4558  ;;  %v7949_v60 = vld [vmem:[#allocation22_spill] sm:$0xff] }
 0x48d   : > { %v2567_v48 = vmul.f32 %v4559_v38, %v7009_v59  ;;  %v7950_v38 = vld [vmem:[#allocation21_spill] sm:$0xff] }
 0x48e   : > { %4009 = vmatmul.mubr.msk.f32.gmra.mrb[20].mxu1 %vm7933_vm4, %v2559_v40  ;;  %v2529_v37 = vpop.xlane.xlu1 %2528  ;;  %vm7966_vm4 = vmmov %vm7940_vm1 }
 0x48f   : > { %2784 = vmatprep.mubr.f32.mxu1 %v7910_v42  ;;  %4560 = vrcp.f32 %v2529_v37 }
 0x492   : > { %4010 = vmatmul.mubr.msk.f32.gmra.mrb[22].mxu1 %vm7934_vm6, %v2561_v56  ;;  %vm7967_vm6 = vmmov %vm7940_vm1 }
 0x493   : > { %2790 = vmatprep.mubr.f32.mxu1 %v7910_v42 }
 0x496   : > { %4011 = vmatmul.mubr.msk.f32.gmra.mrb[24].mxu1 %vm7936_vm3, %v2563_v9  ;;  %vm3436_vm3 = vcmask 1039360  }
 0x497   : > { %2796 = vmatprep.mubr.f32.mxu1 %v7910_v42 }
 0x499   : > { %v4561_v23 = vpop.eup %4560 }
 0x49a   : > { %4012 = vmatmul.mubr.msk.f32.gmra.mrb[26].mxu1 %vm7938_vm14, %v2565_v25  ;;  %v2569_v36 = vmul.f32 %v4561_v23, %v7048_v8  ;;  %vm3563_vm14 = vcmask 39936  }
 0x49b   : > { %2802 = vmatprep.mubr.f32.mxu1 %v7910_v42 }
 0x49e   : > { %4013 = vmatmul.mubr.msk.f32.gmra.mrb[28].mxu1 %vm7939_vm11, %v2567_v48  ;;  %vm7968_vm11 = vmmov %vm7940_vm1 }
 0x49f   : > { %2808 = vmatprep.mubr.f32.mxu1 %v7910_v42 }
 0x4a2   : > { %4014 = vmatmul.mubr.msk.f32.gmra.mrb[30].mxu1 %vm7940_vm1, %v2569_v36 }
 0x4a3   : > { %2993 = vmatprep.mubr.f32.mxu1 %v7910_v42 }
 0x506   : > { %v2696_v22 = vpop.f32.mrb[56].mxu0 }
 0x507   : > { %v2698_v43 = vpop.f32.mrb[57].mxu0  ;;  %v2815_v1 = vmul.f32 %v2696_v22, %v7941_v5 }
 0x508   : > { %v2816_v28 = vmul.f32 %v2698_v43, %v7943_v4  ;;  %v7951_v43 = vld [vmem:[#allocation24_spill] sm:$0xff] }
 0x50a   : > { %v2702_v17 = vpop.f32.mrb[58].mxu0 }
 0x50b   : > { %v2704_v32 = vpop.f32.mrb[59].mxu0  ;;  %v2817_v44 = vmul.f32 %v2702_v17, %v7941_v5 }
 0x50c   : > { %v2818_v2 = vmul.f32 %v2704_v32, %v7943_v4 }
 0x50e   : > { %v2708_v6 = vpop.f32.mrb[60].mxu0 }
 0x50f   : > { %v2819_v59 = vmul.f32 %v2708_v6, %v7942_v46  ;;  %v2710_v16 = vpop.f32.mrb[61].mxu0 }
 0x510   : > { %v2820_v53 = vmul.f32 %v2710_v16, %v7944_v24 }
 0x511   : > { %v2823_v29 = vadd.f32 %v2819_v59, %v2815_v1 }
 0x512   : > { %v2824_v8 = vadd.f32 %v2820_v53, %v2816_v28  ;;  %v2714_v20 = vpop.f32.mrb[62].mxu0 }
 0x513   : > { %v2821_v13 = vmul.f32 %v2714_v20, %v7942_v46  ;;  %v2716_v7 = vpop.f32.mrb[63].mxu0  ;;  %v7952_v46 = vld [vmem:[#allocation23_spill] sm:$0xff] }
 0x514   : > { %v2822_v54 = vmul.f32 %v2716_v7, %v7944_v24 }
 0x515   : > { %v2825_v19 = vadd.f32 %v2821_v13, %v2817_v44  ;;  %v7953_v13 = vld [vmem:[#allocation27_spill] sm:$0xff] }
 0x516   : > { %v2826_v18 = vadd.f32 %v2822_v54, %v2818_v2  ;;  %v2720_v49 = vpop.f32.mrb[64].mxu0  ;;  %v7954_v54 = vld [vmem:[#allocation26_spill] sm:$0xff] }
 0x517   : > { %v2827_v62 = vmul.f32 %v2720_v49, %v7945_v31  ;;  %v2722_v12 = vpop.f32.mrb[65].mxu0 }
 0x518   : > { %v2828_v50 = vmul.f32 %v2722_v12, %v7946_v30 }
 0x519   : > { %v2831_v58 = vadd.f32 %v2827_v62, %v2823_v29 }
 0x51a   : > { %v2832_v21 = vadd.f32 %v2828_v50, %v2824_v8 }
 0x525   : > { %v2726_v34 = vpop.f32.mrb[66].mxu0 }
 0x526   : > { %v2829_v63 = vmul.f32 %v2726_v34, %v7945_v31  ;;  %v2728_v14 = vpop.f32.mrb[67].mxu0  ;;  %v2750_v51 = vpop.f32.mrb[10].mxu1  ;;  %v7955_v34 = vld [vmem:[#allocation30_spill] sm:$0xff] }
 0x527   : > { %v2830_v57 = vmul.f32 %v2728_v14, %v7946_v30  ;;  %v2752_v10 = vpop.f32.mrb[11].mxu1  ;;  %v2845_v0 = vmul.f32 %v2750_v51, %v7949_v60  ;;  %v7956_v51 = vld [vmem:[#allocation29_spill] sm:$0xff] }
 0x528   : > { %v2833_v47 = vadd.f32 %v2829_v63, %v2825_v19  ;;  %v2846_v48 = vmul.f32 %v2752_v10, %v7950_v38 }
 0x529   : > { %v2834_v26 = vadd.f32 %v2830_v57, %v2826_v18  ;;  %v2732_v61 = vpop.f32.mrb[68].mxu0 }
 0x52a   : > { %v2835_v15 = vmul.f32 %v2732_v61, %v7947_v33  ;;  %v2734_v39 = vpop.f32.mrb[69].mxu0  ;;  %v2756_v11 = vpop.f32.mrb[12].mxu1 }
 0x52b   : > { %v2836_v27 = vmul.f32 %v2734_v39, %v7948_v41  ;;  %v2758_v3 = vpop.f32.mrb[13].mxu1  ;;  %v2851_v28 = vmul.f32 %v2756_v11, %v7951_v43 }
 0x52c   : > { %v2839_v55 = vadd.f32 %v2835_v15, %v2831_v58  ;;  %v2852_v29 = vmul.f32 %v2758_v3, %v7952_v46 }
 0x52d   : > { %v2840_v40 = vadd.f32 %v2836_v27, %v2832_v21  ;;  %v2738_v35 = vpop.f32.mrb[70].mxu0  ;;  %v7957_v27 = vld [vmem:[#allocation34_spill] sm:$0xff] }
 0x52e   : > { %v2837_v37 = vmul.f32 %v2738_v35, %v7947_v33  ;;  %v2740_v56 = vpop.f32.mrb[71].mxu0  ;;  %v2762_v45 = vpop.f32.mrb[14].mxu1 }
 0x52f   : > { %v2838_v52 = vmul.f32 %v2740_v56, %v7948_v41  ;;  %v2764_v9 = vpop.f32.mrb[15].mxu1  ;;  %v2853_v17 = vmul.f32 %v2762_v45, %v7951_v43 }
 0x530   : > { %v2841_v25 = vadd.f32 %v2837_v37, %v2833_v47  ;;  %v2854_v59 = vmul.f32 %v2764_v9, %v7952_v46 }
 0x531   : > { %v2842_v23 = vadd.f32 %v2838_v52, %v2834_v26  ;;  %v2744_v36 = vpop.f32.mrb[72].mxu0 }
 0x532   : > { %v2849_v22 = vadd.f32 %v2845_v0, %v2841_v25  ;;  %v2843_v32 = vmul.f32 %v2744_v36, %v7949_v60  ;;  %v2746_v6 = vpop.f32.mrb[73].mxu0  ;;  %v2768_v5 = vpop.f32.mrb[16].mxu1 }
 0x533   : > { %v2850_v1 = vadd.f32 %v2846_v48, %v2842_v23  ;;  %v2844_v16 = vmul.f32 %v2746_v6, %v7950_v38  ;;  %v2770_v4 = vpop.f32.mrb[17].mxu1  ;;  %v2859_v7 = vmul.f32 %v2768_v5, %v7953_v13  ;;  %v7959_v48 = vld [vmem:[#allocation39_spill] sm:$0xff] }
 0x534   : > { %v2857_v24 = vadd.f32 %v2853_v17, %v2849_v22  ;;  %v2847_v53 = vadd.f32 %v2843_v32, %v2839_v55  ;;  %v2860_v19 = vmul.f32 %v2770_v4, %v7954_v54  ;;  %v7960_v22 = vld [vmem:[#allocation37_spill] sm:$0xff] }
 0x535   : > { %v2858_v8 = vadd.f32 %v2854_v59, %v2850_v1  ;;  %v2848_v20 = vadd.f32 %v2844_v16, %v2840_v40  ;;  %v7958_v40 = vld [vmem:[#allocation32_spill] sm:$0xff] }
 0x536   : > { %v2855_v44 = vadd.f32 %v2851_v28, %v2847_v53 }
 0x537   : > { %v2856_v2 = vadd.f32 %v2852_v29, %v2848_v20 }
 0x538   : > { %v2863_v18 = vadd.f32 %v2859_v7, %v2855_v44 }
 0x539   : > { %v2864_v49 = vadd.f32 %v2860_v19, %v2856_v2 }
 0x55d   : > { %v2774_v31 = vpop.f32.mrb[18].mxu1 }
 0x55e   : > { %v2861_v62 = vmul.f32 %v2774_v31, %v7953_v13  ;;  %v2776_v12 = vpop.f32.mrb[19].mxu1 }
 0x55f   : > { %v2862_v30 = vmul.f32 %v2776_v12, %v7954_v54 }
 0x560   : > { %v2865_v50 = vadd.f32 %v2861_v62, %v2857_v24 }
 0x561   : > { %v2866_v58 = vadd.f32 %v2862_v30, %v2858_v8  ;;  %v2780_v21 = vpop.f32.mrb[20].mxu1 }
 0x562   : > { %v2867_v63 = vmul.f32 %v2780_v21, %v7955_v34  ;;  %v2782_v14 = vpop.f32.mrb[21].mxu1 }
 0x563   : > { %v2868_v57 = vmul.f32 %v2782_v14, %v7956_v51 }
 0x564   : > { %v2871_v10 = vadd.f32 %v2867_v63, %v2863_v18 }
 0x565   : > { %v2872_v47 = vadd.f32 %v2868_v57, %v2864_v49  ;;  %v2786_v26 = vpop.f32.mrb[22].mxu1 }
 0x566   : > { %v2869_v61 = vmul.f32 %v2786_v26, %v7955_v34  ;;  %v2788_v33 = vpop.f32.mrb[23].mxu1 }
 0x567   : > { %v2870_v15 = vmul.f32 %v2788_v33, %v7956_v51 }
 0x568   : > { %v2873_v39 = vadd.f32 %v2869_v61, %v2865_v50 }
 0x569   : > { %v2874_v11 = vadd.f32 %v2870_v15, %v2866_v58  ;;  %v2792_v41 = vpop.f32.mrb[24].mxu1 }
 0x56a   : > { %v2875_v3 = vmul.f32 %v2792_v41, %v7957_v27  ;;  %v2794_v55 = vpop.f32.mrb[25].mxu1 }
 0x56b   : > { %v2876_v35 = vmul.f32 %v2794_v55, %v7958_v40 }
 0x56c   : > { %v2879_v37 = vadd.f32 %v2875_v3, %v2871_v10 }
 0x56d   : > { %v2880_v56 = vadd.f32 %v2876_v35, %v2872_v47  ;;  %v2798_v45 = vpop.f32.mrb[26].mxu1  ;;  %v2921_v47 = vld [vmem:[%s7309_s10] sm:$0xff] }
 0x56e   : > { %v2877_v52 = vmul.f32 %v2798_v45, %v7957_v27  ;;  %v2800_v9 = vpop.f32.mrb[27].mxu1  ;;  %v2922_v27 = vld [vmem:[%s7309_s10 + $0x8] sm:$0xff] }
 0x56f   : > { %v2878_v60 = vmul.f32 %v2800_v9, %v7958_v40  ;;  %v4015_v9 = vld [vmem:[%s7309_s10 + $0x40] sm:$0xff] }
 0x570   : > { %v2881_v0 = vadd.f32 %v2877_v52, %v2873_v39 }
 0x571   : > { %v2882_v25 = vadd.f32 %v2878_v60, %v2874_v11  ;;  %v2804_v38 = vpop.f32.mrb[28].mxu1 }
 0x572   : > { %v2883_v23 = vmul.f32 %v2804_v38, %v7959_v48  ;;  %v2806_v36 = vpop.f32.mrb[29].mxu1 }
 0x573   : > { %v2884_v43 = vmul.f32 %v2806_v36, %v7960_v22 }
 0x574   : > { %v7153_v17 = vadd.f32 %v2883_v23, %v2879_v37 }
 0x575   : > { %v7155_v32 = vadd.f32 %v2884_v43, %v2880_v56  ;;  %v2810_v6 = vpop.f32.mrb[30].mxu1 }
 0x576   : > { %v2885_v5 = vmul.f32 %v2810_v6, %v7959_v48  ;;  %v2812_v1 = vpop.f32.mrb[31].mxu1 }
 0x577   : > { %v2886_v46 = vmul.f32 %v2812_v1, %v7960_v22  ;;  %v4286_v59 = vpack.i.bf16 %v7155_v32, %v7153_v17  ;;  %v4016_v22 = vld [vmem:[%s7309_s10 + $0x48] sm:$0xff] }
 0x578   : > { %v7161_v16 = vadd.f32 %v2885_v5, %v2881_v0 }
 0x579   : > { %v7163_v4 = vadd.f32 %v2886_v46, %v2882_v25  ;;  %4287 = vrot.lane.b32.xlu0 %v4286_v59, %s4574_s28 }
 0x57a   : > { %v4356_v28 = vpack.i.bf16 %v7161_v16, %v7153_v17  ;;  %v4128_v8 = vpack.c.bf16 %v7161_v16, %v7153_v17 }
 0x57b   : > { %v4306_v24 = vpack.i.bf16 %v7163_v4, %v7161_v16  ;;  %v4296_v53 = vpack.i.bf16 %v7163_v4, %v7155_v32  ;;  %v4126_v29 = vpack.c.bf16 %v7163_v4, %v7155_v32 }
 0x57d   : > { %4307 = vrot.lane.b32.xlu0 %v4306_v24, %s4575_s29  ;;  %4292 = vrot.lane.b32.xlu1 %v4306_v24, %s4574_s28 }
 0x581   : > { %4317 = vrot.lane.b32.xlu0 %v4286_v59, %s4576_s30  ;;  %4297 = vrot.lane.b32.xlu1 %v4296_v53, %s4577_s12 }
 0x585   : > { %4327 = vrot.lane.b32.xlu0 %v4296_v53, %s4578_s13  ;;  %4302 = vrot.lane.b32.xlu1 %v4286_v59, %s4575_s29  ;;  %s4052_s29 = sshll.u32 %s7985_s18, 5 }
 0x586   : > { %s386_s13 = scalar_lea.vmem %s7310_s11, %s4052_s29 }
 0x589   : > { %4337 = vrot.lane.b32.xlu0 %v4306_v24, %s4579_s14  ;;  %4312 = vrot.lane.b32.xlu1 %v4296_v53, %s4580_s15 }
 0x58d   : > { %4352 = vrot.lane.b32.xlu0 %v4296_v53, %s4581_s16  ;;  %4322 = vrot.lane.b32.xlu1 %v4306_v24, %s4576_s30 }
 0x591   : > { %4357 = vrot.lane.b32.xlu0 %v4356_v28, %s4581_s16  ;;  %4332 = vrot.lane.b32.xlu1 %v4286_v59, %s4579_s14  ;;  %v4021_v59 = vld [vmem:[%s7309_s10 + $0x10] sm:$0xff] }
 0x595   : > { %4362 = vrot.lane.b32.xlu0 %v4356_v28, %s4582_s19  ;;  %4342 = vrot.lane.b32.xlu1 %v4296_v53, %s4583_s20 }
 0x599   : > { %4382 = vrot.lane.b32.xlu0 %v4296_v53, %s4584_s21  ;;  %4347 = vrot.lane.b32.xlu1 %v4356_v28, %s4585_s22 }
 0x59d   : > { %4387 = vrot.lane.b32.xlu0 %v4356_v28, %s4584_s21  ;;  %4367 = vrot.lane.b32.xlu1 %v4296_v53, %s4586_s23 }
 0x5a1   : > { %4397 = vrot.lane.b32.xlu0 %v4356_v28, %s4587_s24  ;;  %4372 = vrot.lane.b32.xlu1 %v4356_v28, %s4586_s23 }
 0x5a5   : > { %4377 = vrot.lane.b32.xlu1 %v4356_v28, %s4588_s25 }
 0x5a9   : > { %4392 = vrot.lane.b32.xlu1 %v4296_v53, %s4589_s26 }
 0x5ad   : > { %4402 = vrot.lane.b32.xlu1 %v4356_v28, %s4589_s26 }
 0x5eb   : > { %v4288_v20 = vpop.permute.xlu0 %4287 }
 0x5ec   : > { %v4290_v44 = vunpack.i.h.bf16 %v4288_v20  ;;  %v4289_v13 = vunpack.i.l.bf16 %v4288_v20 }
 0x5ee   : > { %v2913_v18 = vsel %vm2912_vm5, %v4289_v13, %v4290_v44 }
 0x5ef   : > { %v4308_v7 = vpop.permute.xlu0 %4307  ;;  %v4293_v2 = vpop.permute.xlu1 %4292 }
 0x5f0   : > { %v4295_v54 = vunpack.i.h.bf16 %v4293_v2  ;;  %v4294_v19 = vunpack.i.l.bf16 %v4293_v2  ;;  %v4310_v58 = vunpack.i.h.bf16 %v4308_v7  ;;  %v4309_v21 = vunpack.i.l.bf16 %v4308_v7  ;;  %v4022_v2 = vld [vmem:[%s7309_s10 + $0x18] sm:$0xff] }
 0x5f2   : > { %v2914_v49 = vsel %vm2912_vm5, %v4294_v19, %v4295_v54  ;;  %v3105_v33 = vsel %vm3103_vm10, %v4309_v21, %v4310_v58 }
 0x5f3   : > { %v4298_v31 = vpop.permute.xlu1 %4297  ;;  %v4122_v62 = vpack.c.bf16 %v2914_v49, %v2913_v18  ;;  %v7175_v12 = vpop.permute.xlu0 %4317 }
 0x5f4   : > { %v4300_v30 = vunpack.i.h.bf16 %v4298_v31  ;;  %v4299_v50 = vunpack.i.l.bf16 %v4298_v31  ;;  %v4320_v3 = vunpack.i.h.bf16 %v7175_v12  ;;  %v4319_v55 = vunpack.i.l.bf16 %v7175_v12 }
 0x5f5   : > { %4123 = vmatprep.subr.bf16.mxu1 %v4122_v62  ;;  %v4025_v62 = vld [vmem:[%s7309_s10 + $0x20] sm:$0xff] }
 0x5f6   : > { %v2919_v34 = vsel %vm2912_vm5, %v4299_v50, %v4289_v13  ;;  %v2920_v63 = vsel %vm2912_vm5, %v4300_v30, %v4294_v19  ;;  %v3217_v60 = vsel %vm3216_vm8, %v4319_v55, %v4320_v3  ;;  %vm3550_vm5 = vcmask 957440  }
 0x5f7   : > { %v4124_v14 = vpack.c.bf16 %v2920_v63, %v2919_v34  ;;  %v4303_v51 = vpop.permute.xlu1 %4302  ;;  %v4328_v26 = vpop.permute.xlu0 %4327 }
 0x5f8   : > { %v4305_v57 = vunpack.i.h.bf16 %v4303_v51  ;;  %v4304_v10 = vunpack.i.l.bf16 %v4303_v51  ;;  %v4330_v43 = vunpack.i.h.bf16 %v4328_v26  ;;  %v4329_v17 = vunpack.i.l.bf16 %v4328_v26 }
 0x5f9   : > { %4125 = vmatpush1.bf16.msra.mxu1 %v4124_v14 }
 0x5fa   : > { %4127 = vmatprep.subr.bf16.mxu1 %v4126_v29  ;;  %v3104_v61 = vsel %vm3103_vm10, %v4304_v10, %v4305_v57  ;;  %v3223_v4 = vsel %vm3216_vm8, %v4329_v17, %v4319_v55 }
 0x5fb   : > { %v4313_v15 = vpop.permute.xlu1 %4312  ;;  %v4130_v39 = vpack.c.bf16 %v3105_v33, %v3104_v61  ;;  %v4338_v35 = vpop.permute.xlu0 %4337 }
 0x5fc   : > { %v4315_v11 = vunpack.i.h.bf16 %v4313_v15  ;;  %v4314_v41 = vunpack.i.l.bf16 %v4313_v15  ;;  %4017 = vmatmul.mubr.msk.f32.vlgmr.msra.gmra.mrb[6].mxu1 %vm7961_vm13, %v2921_v47  ;;  %v4340_v6 = vunpack.i.h.bf16 %v4338_v35  ;;  %v4339_v5 = vunpack.i.l.bf16 %v4338_v35  ;;  %vm7969_vm13 = vmmov %vm7940_vm1 }
 0x5fd   : > { %4129 = vmatpush1.bf16.msra.mxu1 %v4128_v8  ;;  %2999 = vmatprep.mubr.f32.mxu1 %v7910_v42 }
 0x5fe   : > { %4131 = vmatprep.subr.bf16.mxu1 %v4130_v39  ;;  %v3111_v37 = vsel %vm3103_vm10, %v4315_v11, %v4309_v21  ;;  %v3110_v56 = vsel %vm3103_vm10, %v4314_v41, %v4304_v10  ;;  %v3331_v53 = vsel %vm3329_vm0, %v4339_v5, %v4340_v6  ;;  %v4026_v10 = vld [vmem:[%s7309_s10 + $0x28] sm:$0xff]  ;;  %v4029_v39 = vld [vmem:[%s7309_s10 + $0x30] sm:$0xff]  ;;  %vm3677_vm10 = vcmask 31744  }
 0x5ff   : > { %v4323_v40 = vpop.permute.xlu1 %4322  ;;  %v4132_v25 = vpack.c.bf16 %v3111_v37, %v3110_v56  ;;  %v4353_v32 = vpop.permute.xlu0 %4352 }
 0x600   : > { %v4325_v45 = vunpack.i.h.bf16 %v4323_v40  ;;  %v4324_v52 = vunpack.i.l.bf16 %v4323_v40  ;;  %4018 = vmatmul.mubr.msk.f32.gmra.mrb[8].mxu1 %vm7962_vm2, %v2922_v27  ;;  %v4355_v54 = vunpack.i.h.bf16 %v4353_v32  ;;  %v4354_v19 = vunpack.i.l.bf16 %v4353_v32 }
 0x601   : > { %3076 = vmatprep.mubr.f32.mxu1 %v7910_v42  ;;  %vm3664_vm2 = vcmask 949248  }
 0x602   : > { %v3218_v0 = vsel %vm3216_vm8, %v4324_v52, %v4325_v45  ;;  %v3224_v46 = vsel %vm3216_vm8, %v4330_v43, %v4324_v52  ;;  %v4030_v45 = vld [vmem:[%s7309_s10 + $0x38] sm:$0xff]  ;;  %vm7970_vm8 = vmmov %vm7940_vm1 }
 0x603   : > { %v4333_v38 = vpop.permute.xlu1 %4332  ;;  %v4134_v48 = vpack.c.bf16 %v3218_v0, %v3217_v60  ;;  %v4136_v28 = vpack.c.bf16 %v3224_v46, %v3223_v4  ;;  %v4358_v29 = vpop.permute.xlu0 %4357  ;;  %v4034_v46 = vld [vmem:[%s7309_s10 + $0x58] sm:$0xff] }
 0x604   : > { %4019 = vmatmul.mubr.msk.f32.vlgmr.msra.gmra.mrb[6].mxu1 %vm7963_vm7, %v4015_v9  ;;  %v4335_v23 = vunpack.i.h.bf16 %v4333_v38  ;;  %v4334_v36 = vunpack.i.l.bf16 %v4333_v38  ;;  %v4360_v21 = vunpack.i.h.bf16 %v4358_v29  ;;  %v4359_v34 = vunpack.i.l.bf16 %v4358_v29  ;;  %v4033_v38 = vld [vmem:[%s7309_s10 + $0x50] sm:$0xff] }
 0x605   : > { %4133 = vmatpush1.bf16.msra.mxu1 %v4132_v25  ;;  %3082 = vmatprep.mubr.f32.mxu1 %v7910_v42  ;;  %vm3791_vm7 = vcmask 23552  }
 0x606   : > { %4135 = vmatprep.subr.bf16.mxu1 %v4134_v48  ;;  %v3330_v16 = vsel %vm3329_vm0, %v4334_v36, %v4335_v23  ;;  %v3437_v61 = vsel %vm3436_vm3, %v4359_v34, %v4354_v19  ;;  %v3438_v33 = vsel %vm3436_vm3, %v4360_v21, %v4355_v54  ;;  %v7979_v34 = vld [vmem:[#allocation3_spill] sm:$0xff] }
 0x607   : > { %v4343_v1 = vpop.permute.xlu1 %4342  ;;  %v4138_v44 = vpack.c.bf16 %v3331_v53, %v3330_v16  ;;  %v4363_v50 = vpop.permute.xlu0 %4362  ;;  %v4144_v3 = vpack.c.bf16 %v3438_v33, %v3437_v61  ;;  %v4037_v53 = vld [vmem:[%s7309_s10 + $0x60] sm:$0xff] }
 0x608   : > { %4020 = vmatmul.mubr.msk.f32.gmra.mrb[8].mxu1 %vm7964_vm9, %v4016_v22  ;;  %v4345_v8 = vunpack.i.h.bf16 %v4343_v1  ;;  %v4344_v20 = vunpack.i.l.bf16 %v4343_v1  ;;  %v4365_v47 = vunpack.i.h.bf16 %v4363_v50  ;;  %v4364_v26 = vunpack.i.l.bf16 %v4363_v50  ;;  %v7978_v50 = vld [vmem:[#allocation5_spill] sm:$0xff] }
 0x609   : > { %3185 = vmatprep.mubr.f32.mxu1 %v7910_v42 }
 0x60a   : > { %v3337_v49 = vsel %vm3329_vm0, %v4345_v8, %v4339_v5  ;;  %v3336_v31 = vsel %vm3329_vm0, %v4344_v20, %v4334_v36  ;;  %vm7971_vm0 = vmmov %vm7940_vm1 }
 0x60b   : > { %v4348_v24 = vpop.permute.xlu1 %4347  ;;  %v4140_v58 = vpack.c.bf16 %v3337_v49, %v3336_v31  ;;  %v4383_v15 = vpop.permute.xlu0 %4382  ;;  %vm7972_vm9 = vmmov %vm7971_vm0  ;;  %v4042_v31 = vld [vmem:[%s7309_s10 + $0x78] sm:$0xff] }
 0x60c   : > { %4023 = vmatmul.mubr.msk.f32.vlgmr.msra.gmra.mrb[6].mxu1 %vm7965_vm15, %v4021_v59  ;;  %v4350_v13 = vunpack.i.h.bf16 %v4348_v24  ;;  %v4349_v7 = vunpack.i.l.bf16 %v4348_v24  ;;  %v4385_v9 = vunpack.i.h.bf16 %v4383_v15  ;;  %v4384_v60 = vunpack.i.l.bf16 %v4383_v15  ;;  %vm7976_vm3 = vmmov %vm7971_vm0 }
 0x60d   : > { %4137 = vmatpush1.bf16.msra.mxu1 %v4136_v28  ;;  %3191 = vmatprep.mubr.f32.mxu1 %v7910_v42  ;;  %vm3778_vm15 = vcmask 941056  }
 0x60e   : > { %4139 = vmatprep.subr.bf16.mxu1 %v4138_v44  ;;  %v3450_v12 = vsel %vm3449_vm12, %v4354_v19, %v4349_v7  ;;  %v3451_v30 = vsel %vm3449_vm12, %v4355_v54, %v4350_v13  ;;  %vm7973_vm12 = vmmov %vm7971_vm0 }
 0x60f   : > { %v4368_v18 = vpop.permute.xlu1 %4367  ;;  %v4142_v14 = vpack.c.bf16 %v3451_v30, %v3450_v12  ;;  %v4388_v52 = vpop.permute.xlu0 %4387  ;;  %v4046_v12 = vld [vmem:[%s7309_s10 + $0x88] sm:$0xff] }
 0x610   : > { %4024 = vmatmul.mubr.msk.f32.gmra.mrb[8].mxu1 %vm7966_vm4, %v4022_v2  ;;  %v4370_v51 = vunpack.i.h.bf16 %v4368_v18  ;;  %v4369_v57 = vunpack.i.l.bf16 %v4368_v18  ;;  %v4390_v43 = vunpack.i.h.bf16 %v4388_v52  ;;  %v4389_v17 = vunpack.i.l.bf16 %v4388_v52  ;;  %v4038_v2 = vld [vmem:[%s7309_s10 + $0x68] sm:$0xff]  ;;  %v4041_v18 = vld [vmem:[%s7309_s10 + $0x70] sm:$0xff]  ;;  %vm7974_vm4 = vmmov %vm7971_vm0 }
 0x611   : > { %3298 = vmatprep.mubr.f32.mxu1 %v7910_v42 }
 0x612   : > { %v3564_v11 = vsel %vm3563_vm14, %v4369_v57, %v4364_v26  ;;  %v3565_v41 = vsel %vm3563_vm14, %v4370_v51, %v4365_v47  ;;  %v3665_v4 = vsel %vm3664_vm2, %v4389_v17, %v4384_v60  ;;  %v3666_v28 = vsel %vm3664_vm2, %v4390_v43, %v4385_v9  ;;  %vm7977_vm14 = vmmov %vm7971_vm0 }
 0x613   : > { %v4373_v63 = vpop.permute.xlu1 %4372  ;;  %v4146_v35 = vpack.c.bf16 %v3565_v41, %v3564_v11  ;;  %v4398_v32 = vpop.permute.xlu0 %4397  ;;  %v4152_v20 = vpack.c.bf16 %v3666_v28, %v3665_v4 }
 0x614   : > { %4027 = vmatmul.mubr.msk.f32.vlgmr.msra.gmra.mrb[6].mxu1 %vm7967_vm6, %v4025_v62  ;;  %v4375_v55 = vunpack.i.h.bf16 %v4373_v63  ;;  %v4374_v40 = vunpack.i.l.bf16 %v4373_v63  ;;  %v4400_v59 = vunpack.i.h.bf16 %v4398_v32  ;;  %v4399_v16 = vunpack.i.l.bf16 %v4398_v32  ;;  %vm7975_vm6 = vmmov %vm7971_vm0  ;;  %v4045_v62 = vld [vmem:[%s7309_s10 + $0x80] sm:$0xff] }
 0x615   : > { %4141 = vmatpush1.bf16.msra.mxu1 %v4140_v58  ;;  %3304 = vmatprep.mubr.f32.mxu1 %v7910_v42 }
 0x616   : > { %4143 = vmatprep.subr.bf16.mxu1 %v4142_v14  ;;  %v3551_v0 = vsel %vm3550_vm5, %v4374_v40, %v4369_v57  ;;  %v3552_v25 = vsel %vm3550_vm5, %v4375_v55, %v4370_v51  ;;  %v7981_v14 = vld [vmem:[#allocation2_spill] sm:$0xff] }
 0x617   : > { %v4378_v27 = vpop.permute.xlu1 %4377  ;;  %v4148_v22 = vpack.c.bf16 %v3552_v25, %v3551_v0 }
 0x618   : > { %4028 = vmatmul.mubr.msk.f32.gmra.mrb[8].mxu1 %vm7968_vm11, %v4026_v10  ;;  %v4380_v37 = vunpack.i.h.bf16 %v4378_v27  ;;  %v4379_v56 = vunpack.i.l.bf16 %v4378_v27  ;;  %vm7980_vm11 = vmmov %vm7971_vm0  ;;  %v7982_v10 = vld [vmem:[#allocation4_spill] sm:$0xff] }
 0x619   : > { %3411 = vmatprep.mubr.f32.mxu1 %v7910_v42 }
 0x61a   : > { %v3678_v48 = vsel %vm3677_vm10, %v4384_v60, %v4379_v56  ;;  %v3679_v23 = vsel %vm3677_vm10, %v4385_v9, %v4380_v37 }
 0x61b   : > { %v4393_v36 = vpop.permute.xlu1 %4392  ;;  %v4150_v6 = vpack.c.bf16 %v3679_v23, %v3678_v48 }
 0x61c   : > { %4031 = vmatmul.mubr.msk.f32.vlgmr.msra.gmra.mrb[6].mxu1 %vm7940_vm1, %v4029_v39  ;;  %v4395_v5 = vunpack.i.h.bf16 %v4393_v36  ;;  %v4394_v1 = vunpack.i.l.bf16 %v4393_v36  ;;  %vm7983_vm1 = vmmov %vm7971_vm0 }
 0x61d   : > { %4145 = vmatpush1.bf16.msra.mxu1 %v4144_v3  ;;  %3417 = vmatprep.mubr.f32.mxu1 %v7910_v42 }
 0x61e   : > { %4147 = vmatprep.subr.bf16.mxu1 %v4146_v35  ;;  %v3792_v29 = vsel %vm3791_vm7, %v4394_v1, %v4399_v16  ;;  %v3793_v8 = vsel %vm3791_vm7, %v4395_v5, %v4400_v59 }
 0x61f   : > { %v4403_v24 = vpop.permute.xlu1 %4402  ;;  %v4154_v7 = vpack.c.bf16 %v3793_v8, %v3792_v29 }
 0x620   : > { %4032 = vmatmul.mubr.msk.f32.gmra.mrb[8].mxu1 %vm7969_vm13, %v4030_v45  ;;  %v4405_v44 = vunpack.i.h.bf16 %v4403_v24  ;;  %v4404_v13 = vunpack.i.l.bf16 %v4403_v24 }
 0x621   : > { %3525 = vmatprep.mubr.f32.mxu1 %v7910_v42 }
 0x622   : > { %v3779_v54 = vsel %vm3778_vm15, %v4404_v13, %v4394_v1  ;;  %v3780_v19 = vsel %vm3778_vm15, %v4405_v44, %v4395_v5 }
 0x623   : > { %v4156_v49 = vpack.c.bf16 %v3780_v19, %v3779_v54 }
 0x624   : > { %4035 = vmatmul.mubr.msk.f32.vlgmr.msra.gmra.mrb[6].mxu1 %vm7970_vm8, %v4033_v38 }
 0x625   : > { %4149 = vmatpush1.bf16.msra.mxu1 %v4148_v22  ;;  %3531 = vmatprep.mubr.f32.mxu1 %v7910_v42 }
 0x626   : > { %4151 = vmatprep.subr.bf16.mxu1 %v4150_v6 }
 0x628   : > { %4036 = vmatmul.mubr.msk.f32.gmra.mrb[8].mxu1 %vm7971_vm0, %v4034_v46 }
 0x629   : > { %3639 = vmatprep.mubr.f32.mxu1 %v7910_v42 }
 0x62c   : > { %4039 = vmatmul.mubr.msk.f32.vlgmr.msra.gmra.mrb[6].mxu1 %vm7972_vm9, %v4037_v53 }
 0x62d   : > { %4153 = vmatpush1.bf16.msra.mxu1 %v4152_v20  ;;  %3645 = vmatprep.mubr.f32.mxu1 %v7910_v42 }
 0x62e   : > { %4155 = vmatprep.subr.bf16.mxu1 %v4154_v7 }
 0x630   : > { %4040 = vmatmul.mubr.msk.f32.gmra.mrb[8].mxu1 %vm7973_vm12, %v4038_v2 }
 0x631   : > { %3753 = vmatprep.mubr.f32.mxu1 %v7910_v42 }
 0x634   : > { %4043 = vmatmul.mubr.msk.f32.vlgmr.msra.gmra.mrb[6].mxu1 %vm7974_vm4, %v4041_v18 }
 0x635   : > { %4157 = vmatpush1.bf16.msra.mxu1 %v4156_v49  ;;  %3759 = vmatprep.mubr.f32.mxu1 %v7910_v42 }
 0x638   : > { %4044 = vmatmul.mubr.msk.f32.gmra.mrb[8].mxu1 %vm7975_vm6, %v4042_v31 }
 0x639   : > { %3867 = vmatprep.mubr.f32.mxu1 %v7910_v42 }
 0x63c   : > { %4047 = vmatmul.mubr.msk.f32.vlgmr.msra.gmra.mrb[6].mxu1 %vm7976_vm3, %v4045_v62 }
 0x63d   : > { %3873 = vmatprep.mubr.f32.mxu1 %v7910_v42 }
 0x640   : > { %4048 = vmatmul.mubr.msk.f32.gmra.mrb[8].mxu1 %vm7977_vm14, %v4046_v12 }
 0x70f   : > { %v3869_v30 = vpop.f32.mrb[6].mxu1 }
 0x710   : > { %v4160_v58 = vadd.f32 %v3869_v30, %v7978_v50  ;;  %v3871_v21 = vpop.f32.mrb[7].mxu1 }
 0x711   : > { %v4161_v63 = vadd.f32 %v3871_v21, %v7979_v34 }
 0x712   : > { %3892 = vst [vmem:[%s386_s13] sm:$0xff] %v4160_v58 }
 0x713   : > { %3893 = vst.msk [vmem:[%s386_s13 + $0x8] sm:$0xff] %vm7980_vm11, %v4161_v63  ;;  %v3875_v42 = vpop.f32.mrb[8].mxu1 }
 0x714   : > { %v4162_v51 = vadd.f32 %v3875_v42, %v7981_v14  ;;  %v3877_v57 = vpop.f32.mrb[9].mxu1 }
 0x715   : > { %v4163_v47 = vadd.f32 %v3877_v57, %v7982_v10 }
 0x716   : > { %3894 = vst [vmem:[%s386_s13 + $0x10] sm:$0xff] %v4162_v51 }
 0x717   : > { %3895 = vst.msk [vmem:[%s386_s13 + $0x18] sm:$0xff] %vm7983_vm1, %v4163_v47 }
 0x718 PF: > { %s21_s17 = sadd.s32 1, %s4568_s17  }
 0x719   : > { %p18_p4 = scmp.ge.s32.totalorder %s21_s17, 4  }
 0x71b   :  { %20 = sbr.rel (!%p18_p4) target bundleno = 1 (0x1), region = 102 }

</bundles_post_ra>
